<compile_context>
chip_gen: v5e
topology: v5e:2x2
jax: 0.10.0
libtpu: 0.0.40
codegen_flags: <defaults>
</compile_context>

<pallas_src>
import jax
import jax.numpy as jnp
from jax import lax
from jax.experimental import pallas as pl
from jax.experimental.pallas import tpu as pltpu


def _round_up(x, m):
    return ((x + m - 1) // m) * m


def _tpu_vmem_and_min_tiles():
    """Per-generation VMEM capacity and the minimum number of batch tiles.

    v7x exposes 64 MiB of VMEM per TensorCore and has 2 TensorCores per chip, so we
    want >= 2 tiles on the 'parallel' batch axis there; 128 MiB parts (v5e/v6e) have a
    single TensorCore and should keep the biggest tile possible.
    """
    try:
        vmem_cap = int(pltpu.get_tpu_info().vmem_capacity_bytes)
    except Exception:
        return 64 * 1024 * 1024, 1          # conservative default (v7x per-core VMEM)
    min_tiles = 2 if vmem_cap <= 64 * 1024 * 1024 else 1
    return vmem_cap, min_tiles


def _pick_tile_n(n, d, pinned_rows, budget_bytes, min_tiles=1, streamed_score=False):
    """Pick a 128-aligned batch tile that fits the per-generation VMEM budget."""
    n_rounded = _round_up(max(int(n), 1), 128)

    if streamed_score:
        # x + gathered-score blocks (double-buffered) + t temporary.
        per_row = 2 * (2 * d * 4) + 2 * d * 4
        resident = 2 * 4 * (d * d + d)                    # w, a (double-buffered by pipeline)
    else:
        # x block + (T,1) int32 index block (lane dim pads to 128 -> 512 B/row),
        # both double-buffered, plus one-hot / s / t in-kernel temporaries.
        per_row = 2 * (d * 4 + 512) + pinned_rows * 4 + 2 * d * 4
        resident = 2 * 4 * (d * d + d + pinned_rows * d)  # w, a, pinned score matrix

    avail = budget_bytes - resident - (4 << 20)           # slack for outputs / compiler scratch
    if avail < 128 * per_row:
        # TODO(synk): K-tile w (second 'arbitrary' grid axis + partial-sum accumulator)
        # for D large enough that the pinned operands alone exceed VMEM.
        raise ValueError(
            f"Pinned operands (D={d}, pinned score rows={pinned_rows}) leave no room "
            f"for a 128-row batch tile inside the VMEM budget ({budget_bytes} bytes).")

    max_rows = avail // per_row
    # Target >= ~2 MiB of streamed x per grid step so DMA dominates the ~0.35us step cost.
    target_rows = min(8192, max(512, (2 << 20) // (d * 4)))
    tile = min(max_rows, target_rows, n_rounded)
    if min_tiles > 1 and n_rounded >= min_tiles * 128:
        tile = min(tile, n_rounded // min_tiles)          # feed both v7x TensorCores
    return max(128, (tile // 128) * 128)


def _cv_gather_kernel(sc_ref, x_ref, idx_ref, sm_ref, w_ref, a_ref, o_ref):
    """y = (w x + a) . score_matrix[idx] + trace(w) + b, score gathered in-kernel.

    sc_ref  : SMEM scalar-prefetch, shape (1,), value trace(w) + b
    x_ref   : (T, D)  batch rows (streamed)
    idx_ref : (T, 1)  int32 score-row indices (streamed)
    sm_ref  : (R, D)  full score matrix (pinned in VMEM)
    w_ref   : (D, D)  weight matrix (pinned)
    a_ref   : (1, D)  bias vector  (pinned)
    o_ref   : (1, T)  lane-dense output row
    """
    x = x_ref[...]                                    # (T, D)
    idx = idx_ref[...]                                # (T, 1) int32
    tile_n = x.shape[0]
    n_rows = sm_ref.shape[0]

    # Exact in-kernel gather of score rows via a one-hot matmul on the MXU.
    # TODO(synk): for very large score matrices a per-row DMA gather
    # (make_async_copy from HBM) would beat both this and the XLA-gather fallback.
    row_ids = lax.broadcasted_iota(jnp.int32, (tile_n, n_rows), 1)
    onehot = (idx == row_ids).astype(jnp.float32)     # (T, R)
    s = jnp.dot(onehot, sm_ref[...], preferred_element_type=jnp.float32)   # (T, D)

    # (w x + a) . s == (s @ w) . x + s . a  -- single fused lane reduction.
    t = jnp.dot(s, w_ref[...], preferred_element_type=jnp.float32)          # (T, D)
    y = jnp.sum(t * x + s * a_ref[...], axis=-1) + sc_ref[0]                # (T,)
    o_ref[...] = y[None, :]                            # lane-dense store


def _cv_stream_kernel(sc_ref, x_ref, s_ref, w_ref, a_ref, o_ref):
    """Fallback: score rows pre-gathered by XLA and streamed like x."""
    x = x_ref[...]                                    # (T, D)
    s = s_ref[...]                                    # (T, D)
    t = jnp.dot(s, w_ref[...], preferred_element_type=jnp.float32)          # (T, D)
    y = jnp.sum(t * x + s * a_ref[...], axis=-1) + sc_ref[0]
    o_ref[...] = y[None, :]


def stein_quad_poly_cv_minibatch(x_batch, indices, w, a, b, score_matrix,
                                 tile_n=None, force_xla_gather=False,
                                 max_pinned_rows=2048,
                                 max_pinned_bytes=8 * 1024 * 1024):
    """Pallas-backed equivalent of SteinSecondOrderQuadPolyCV.minibatch."""
    x = jnp.asarray(x_batch, jnp.float32)
    w = jnp.asarray(w, jnp.float32)
    a2 = jnp.asarray(a, jnp.float32).reshape(1, -1)
    sm = jnp.asarray(score_matrix, jnp.float32)
    idx = jnp.asarray(indices, jnp.int32)
    n, d = x.shape
    r = sm.shape[0]

    vmem_cap, min_tiles = _tpu_vmem_and_min_tiles()
    budget = int(vmem_cap * 0.70)

    # Pin the score matrix in VMEM (and gather in-kernel) when it is small enough;
    # otherwise fall back to an XLA-side gather feeding a streamed-score kernel.
    pin_score = ((not force_xla_gather)
                 and r <= max_pinned_rows
                 and r * d * 4 <= max_pinned_bytes)

    if tile_n is None:
        tile_n = _pick_tile_n(n, d, r if pin_score else 0, budget,
                              min_tiles=min_tiles, streamed_score=not pin_score)
    else:
        tile_n = max(128, _round_up(int(tile_n), 128))   # keep output tiles lane-dense

    n_pad = _round_up(n, tile_n)
    num_tiles = n_pad // tile_n

    if n_pad != n:
        x = jnp.pad(x, ((0, n_pad - n), (0, 0)))
        idx = jnp.pad(idx, (0, n_pad - n))

    # Fold trace(w) + b into one prefetched scalar.
    sc = (jnp.asarray(b, jnp.float32) + jnp.trace(w)).reshape(1)

    # Per-generation VMEM limit derived from the actual tiling.
    if pin_score:
        vmem_need = (2 * tile_n * (d * 4 + 512)             # x + idx blocks, double-buffered
                     + tile_n * (r * 4 + 2 * d * 4)         # one-hot / s / t temporaries
                     + 2 * 4 * (d * d + d + r * d)          # pinned w, a, score matrix
                     + 2 * tile_n * 4                       # output blocks
                     + (8 << 20))                           # headroom
    else:
        vmem_need = (2 * tile_n * (2 * d * 4)
                     + tile_n * (2 * d * 4)
                     + 2 * 4 * (d * d + d)
                     + 2 * tile_n * 4
                     + (8 << 20))
    vmem_limit = int(min(max(vmem_need, 32 * 1024 * 1024), int(vmem_cap * 0.9)))

    compiler_params = pltpu.CompilerParams(
        dimension_semantics=("parallel",),                  # megacore sharding on v7x
        vmem_limit_bytes=vmem_limit)

    if pin_score:
        out = pl.pallas_call(
            _cv_gather_kernel,
            out_shape=jax.ShapeDtypeStruct((1, n_pad), jnp.float32),
            grid_spec=pltpu.PrefetchScalarGridSpec(
                num_scalar_prefetch=1,                      # trace(w) + b -> SMEM
                grid=(num_tiles,),
                in_specs=[
                    pl.BlockSpec((tile_n, d), lambda i, sc_ref: (i, 0)),   # x (streamed)
                    pl.BlockSpec((tile_n, 1), lambda i, sc_ref: (i, 0)),   # idx (streamed)
                    pl.BlockSpec((r, d), lambda i, sc_ref: (0, 0)),        # score matrix (pinned)
                    pl.BlockSpec((d, d), lambda i, sc_ref: (0, 0)),        # w (pinned)
                    pl.BlockSpec((1, d), lambda i, sc_ref: (0, 0)),        # a (pinned)
                ],
                out_specs=pl.BlockSpec((1, tile_n), lambda i, sc_ref: (0, i)),
            ),
            compiler_params=compiler_params,
        )(sc, x, idx.reshape(n_pad, 1), sm, w, a2)
    else:
        # TODO(synk): replace this XLA gather with an in-kernel per-row DMA gather
        # (scalar-prefetched indices + make_async_copy from HBM score_matrix) to avoid
        # the extra N*D HBM round trip for very large score matrices.
        score = sm[idx]                                     # (n_pad, D)
        out = pl.pallas_call(
            _cv_stream_kernel,
            out_shape=jax.ShapeDtypeStruct((1, n_pad), jnp.float32),
            grid_spec=pltpu.PrefetchScalarGridSpec(
                num_scalar_prefetch=1,
                grid=(num_tiles,),
                in_specs=[
                    pl.BlockSpec((tile_n, d), lambda i, sc_ref: (i, 0)),   # x (streamed)
                    pl.BlockSpec((tile_n, d), lambda i, sc_ref: (i, 0)),   # score (streamed)
                    pl.BlockSpec((d, d), lambda i, sc_ref: (0, 0)),        # w (pinned)
                    pl.BlockSpec((1, d), lambda i, sc_ref: (0, 0)),        # a (pinned)
                ],
                out_specs=pl.BlockSpec((1, tile_n), lambda i, sc_ref: (0, i)),
            ),
            compiler_params=compiler_params,
        )(sc, x, score, w, a2)

    return out[0, :n]                                       # (N,)


def _reference(x_batch, indices, w, a, b, score_matrix):
    """Pure-JAX reference matching the PyTorch forward/minibatch."""
    score = score_matrix[indices]                           # (N, D)
    grad = x_batch @ w.T + a[None, :]                       # (N, D)
    return jnp.sum(grad * score, axis=-1) + jnp.trace(w) + b


if __name__ == "__main__":
    # Small shapes consistent with the module: D_in features, a batch of examples,
    # and a score matrix with n rows (one per sample index).
    D_in = 32
    N = 300          # batch size (not a tile multiple -> exercises padding)
    n_rows = 64      # rows in the score matrix

    key = jax.random.PRNGKey(0)
    k_x, k_s, k_w, k_a, k_b, k_i = jax.random.split(key, 6)

    x_batch = jax.random.normal(k_x, (N, D_in), dtype=jnp.float32)
    score_matrix = jax.random.normal(k_s, (n_rows, D_in), dtype=jnp.float32)
    indices = jax.random.randint(k_i, (N,), 0, n_rows, dtype=jnp.int32)

    # Parameters: shapes from __init__ (w: DxD, a: D, b: scalar), small-normal init.
    w = 0.05 * jax.random.normal(k_w, (D_in, D_in), dtype=jnp.float32)
    a = 0.05 * jax.random.normal(k_a, (D_in,), dtype=jnp.float32)
    b = jax.random.normal(k_b, (), dtype=jnp.float32)

    y_ref = _reference(x_batch, indices, w, a, b, score_matrix)

    # 1) Default path: in-kernel one-hot gather, auto-picked 128-aligned tile.
    y1 = jax.block_until_ready(
        stein_quad_poly_cv_minibatch(x_batch, indices, w, a, b, score_matrix))
    assert y1.shape == (N,)
    assert jnp.allclose(y1, y_ref, atol=2e-4, rtol=2e-4), (y1, y_ref)

    # 2) Forced multi-tile path (128-row, lane-aligned tiles -> padded tail).
    y2 = jax.block_until_ready(
        stein_quad_poly_cv_minibatch(x_batch, indices, w, a, b, score_matrix,
                                     tile_n=128))
    assert y2.shape == (N,)
    assert jnp.allclose(y2, y_ref, atol=2e-4, rtol=2e-4), (y2, y_ref)

    # 3) Streamed-score fallback path (score matrix treated as too large to pin).
    y3 = jax.block_until_ready(
        stein_quad_poly_cv_minibatch(x_batch, indices, w, a, b, score_matrix,
                                     force_xla_gather=True))
    assert y3.shape == (N,)
    assert jnp.allclose(y3, y_ref, atol=2e-4, rtol=2e-4), (y3, y_ref)

    print("KERNEL_OK")
</pallas_src>

<mosaic_0001>
module attributes {stable_mosaic.version = 11 : i64} {
  func.func @_cv_gather_kernel(%arg0: i32, %arg1: memref<1xf32, #tpu.memory_space<smem>>, %arg2: memref<384x32xf32, #tpu.memory_space<vmem>>, %arg3: memref<384x1xi32, #tpu.memory_space<vmem>>, %arg4: memref<64x32xf32, #tpu.memory_space<vmem>>, %arg5: memref<32x32xf32, #tpu.memory_space<vmem>>, %arg6: memref<1x32xf32, #tpu.memory_space<vmem>>, %arg7: memref<1x384xf32, #tpu.memory_space<vmem>>) attributes {dimension_semantics = [#tpu.dimension_semantics<parallel>], iteration_bounds = array<i64: 1>, scalar_prefetch = 1 : i64, scratch_operands = 0 : i64, tpu.core_type = #tpu.core_type<tc>, window_params = [{transform_indices = @transform_0, window_bounds = array<i64: 384, 32>}, {transform_indices = @transform_1, window_bounds = array<i64: 384, 1>}, {pipeline_mode = #tpu.pipeline_mode<synchronous>, transform_indices = @transform_2, window_bounds = array<i64: 64, 32>}, {pipeline_mode = #tpu.pipeline_mode<synchronous>, transform_indices = @transform_3, window_bounds = array<i64: 32, 32>}, {pipeline_mode = #tpu.pipeline_mode<synchronous>, transform_indices = @transform_4, window_bounds = array<i64: 1, 32>}, {transform_indices = @transform_5, window_bounds = array<i64: 1, 384>}]} {
    %c0 = arith.constant 0 : index
    %c0_0 = arith.constant 0 : index
    %0 = vector.load %arg2[%c0, %c0_0] : memref<384x32xf32, #tpu.memory_space<vmem>>, vector<384x32xf32>
    %c0_1 = arith.constant 0 : index
    %c0_2 = arith.constant 0 : index
    %1 = vector.load %arg3[%c0_1, %c0_2] : memref<384x1xi32, #tpu.memory_space<vmem>>, vector<384x1xi32>
    %2 = tpu.iota {dimensions = array<i32: 1>} : vector<384x64xi32>
    %3 = vector.broadcast %1 : vector<384x1xi32> to vector<384x64xi32>
    %4 = arith.cmpi eq, %3, %2 : vector<384x64xi32>
    %5 = arith.extui %4 : vector<384x64xi1> to vector<384x64xi32>
    %6 = arith.sitofp %5 : vector<384x64xi32> to vector<384x64xf32>
    %c0_3 = arith.constant 0 : index
    %c0_4 = arith.constant 0 : index
    %7 = vector.load %arg4[%c0_3, %c0_4] : memref<64x32xf32, #tpu.memory_space<vmem>>, vector<64x32xf32>
    %cst = arith.constant dense<0.000000e+00> : vector<384x32xf32>
    %8 = tpu.matmul %6, %7, %cst {dimension_numbers = #tpu.dot_dimension_numbers<[1], [0], [0], [1], [0, 0, 1, 1], [], []>} : vector<384x64xf32>, vector<64x32xf32>, vector<384x32xf32> -> vector<384x32xf32>
    %c0_5 = arith.constant 0 : index
    %c0_6 = arith.constant 0 : index
    %9 = vector.load %arg5[%c0_5, %c0_6] : memref<32x32xf32, #tpu.memory_space<vmem>>, vector<32x32xf32>
    %cst_7 = arith.constant dense<0.000000e+00> : vector<384x32xf32>
    %10 = tpu.matmul %8, %9, %cst_7 {dimension_numbers = #tpu.dot_dimension_numbers<[1], [0], [0], [1], [0, 0, 1, 1], [], []>} : vector<384x32xf32>, vector<32x32xf32>, vector<384x32xf32> -> vector<384x32xf32>
    %11 = arith.mulf %10, %0 : vector<384x32xf32>
    %c0_8 = arith.constant 0 : index
    %c0_9 = arith.constant 0 : index
    %12 = vector.load %arg6[%c0_8, %c0_9] : memref<1x32xf32, #tpu.memory_space<vmem>>, vector<1x32xf32>
    %13 = vector.broadcast %12 : vector<1x32xf32> to vector<384x32xf32>
    %14 = arith.mulf %8, %13 : vector<384x32xf32>
    %15 = arith.addf %11, %14 : vector<384x32xf32>
    %cst_10 = arith.constant dense<0.000000e+00> : vector<384xf32>
    %16 = vector.multi_reduction <add>, %15, %cst_10 [1] : vector<384x32xf32> to vector<384xf32>
    %c0_11 = arith.constant 0 : index
    %17 = memref.load %arg1[%c0_11] : memref<1xf32, #tpu.memory_space<smem>>
    %18 = vector.broadcast %17 : f32 to vector<384xf32>
    %19 = arith.addf %16, %18 : vector<384xf32>
    %20 = vector.shape_cast %19 : vector<384xf32> to vector<1x384xf32>
    %c0_12 = arith.constant 0 : index
    %c0_13 = arith.constant 0 : index
    %21 = vector.load %arg7[%c0_12, %c0_13] : memref<1x384xf32, #tpu.memory_space<vmem>>, vector<1x384xf32>
    tpu.vector_store %arg7[%c0_12, %c0_13], %20 {strides = array<i32>} : memref<1x384xf32, #tpu.memory_space<vmem>>, vector<1x384xf32>,
    return
  }
  func.func @transform_0(%arg0: i32, %arg1: memref<1xf32, #tpu.memory_space<smem>>) -> (i32, i32) {
    %c0_i32 = arith.constant 0 : i32
    %c0_i32_0 = arith.constant 0 : i32
    return %arg0, %c0_i32 : i32, i32
  }
  func.func @transform_1(%arg0: i32, %arg1: memref<1xf32, #tpu.memory_space<smem>>) -> (i32, i32) {
    %c0_i32 = arith.constant 0 : i32
    %c0_i32_0 = arith.constant 0 : i32
    return %arg0, %c0_i32 : i32, i32
  }
  func.func @transform_2(%arg0: i32, %arg1: memref<1xf32, #tpu.memory_space<smem>>) -> (i32, i32) {
    %c0_i32 = arith.constant 0 : i32
    %c0_i32_0 = arith.constant 0 : i32
    %c0_i32_1 = arith.constant 0 : i32
    return %c0_i32, %c0_i32_0 : i32, i32
  }
  func.func @transform_3(%arg0: i32, %arg1: memref<1xf32, #tpu.memory_space<smem>>) -> (i32, i32) {
    %c0_i32 = arith.constant 0 : i32
    %c0_i32_0 = arith.constant 0 : i32
    %c0_i32_1 = arith.constant 0 : i32
    return %c0_i32, %c0_i32_0 : i32, i32
  }
  func.func @transform_4(%arg0: i32, %arg1: memref<1xf32, #tpu.memory_space<smem>>) -> (i32, i32) {
    %c0_i32 = arith.constant 0 : i32
    %c0_i32_0 = arith.constant 0 : i32
    %c0_i32_1 = arith.constant 0 : i32
    return %c0_i32, %c0_i32_0 : i32, i32
  }
  func.func @transform_5(%arg0: i32, %arg1: memref<1xf32, #tpu.memory_space<smem>>) -> (i32, i32) {
    %c0_i32 = arith.constant 0 : i32
    %c0_i32_0 = arith.constant 0 : i32
    return %c0_i32, %arg0 : i32, i32
  }
}

</mosaic_0001>

<bundles_post_ra>
// kernel: tpu_custom_call.1
= control target key start
LH: loop header
LB: loop body
LE: loop exit
PB: predicated region body
PF: predicated region fallthrough
CT: control target
= control target key end

     0   :  { %v2732_v3 = vmov 0   ;;  %s3993_s0 = inlined_call_operand.<no memory space> [shape: f32[1], index: 0, kind: input, shape index: {}]   ;;  %s3994_s1 = inlined_call_operand.vmem [shape: f32[384,32], index: 1, kind: input, shape index: {}]   ;;  %s3995_s2 = inlined_call_operand.vmem [shape: s32[384,1], index: 2, kind: input, shape index: {}]   ;;  %s3996_s3 = inlined_call_operand.vmem [shape: f32[64,32], index: 3, kind: input, shape index: {}]   ;;  %s3997_s4 = inlined_call_operand.vmem [shape: f32[32,32], index: 4, kind: input, shape index: {}]   ;;  %s3998_s5 = inlined_call_operand.vmem [shape: f32[1,32], index: 5, kind: input, shape index: {}]   ;;  %s3999_s6 = inlined_call_operand.hbm [shape: f32[1,384], index: 6, kind: output, shape index: {}]  }
   0x1   :  { %v75_v0 = vld [vmem:[%s3995_s2 + $0x20] sm:$0xff]  ;;  %v73_v1 = vld [vmem:[%s3995_s2 + $0x10] sm:$0xff]  ;;  %2702 = vset.pattern.permute.xlu2 %v2732_v3  ;;  %2701 = vset.pattern.permute.xlu1 %v2732_v3 }
   0x2   :  { %v71_v2 = vld [vmem:[%s3995_s2] sm:$0xff]  ;;  %2700 = vset.pattern.permute.xlu0 %v2732_v3  ;;  %134 = vperm.xlu2 %2702, %v75_v0  }
   0x3   :  { %128 = vperm.xlu1 %2701, %v73_v1   ;;  %122 = vperm.xlu0 %2700, %v71_v2  }
   0x4   :  { %12 = vsyncpa [#allocation5], 0  ;;  %v76_v4 = vld [vmem:[%s3995_s2 + $0x28] sm:$0xff]  ;;  %v74_v5 = vld [vmem:[%s3995_s2 + $0x18] sm:$0xff]  ;;  %v119_v51 = vlaneseq  ;;  %vm417_vm0 = vcmask 523264   ;;  %v2733_v59 = vmov 0.0  }
   0x5   :  { %v72_v6 = vld [vmem:[%s3995_s2 + $0x8] sm:$0xff]  ;;  %v79_v7 = vld [vmem:[%s3995_s2 + $0x40] sm:$0xff]  ;;  %v78_v8 = vld [vmem:[%s3995_s2 + $0x38] sm:$0xff] }
   0x6   :  { %v77_v9 = vld [vmem:[%s3995_s2 + $0x30] sm:$0xff]  ;;  %v82_v10 = vld [vmem:[%s3995_s2 + $0x58] sm:$0xff]  ;;  %v80_v12 = vld [vmem:[%s3995_s2 + $0x48] sm:$0xff]  ;;  %v2930_v56 = vand.u32 127, %v119_v51 }
   0x7   :  { %v81_v11 = vld [vmem:[%s3995_s2 + $0x50] sm:$0xff]  ;;  %v84_v14 = vld [vmem:[%s3995_s2 + $0x68] sm:$0xff]  ;;  %v83_v15 = vld [vmem:[%s3995_s2 + $0x60] sm:$0xff] }
   0x8   :  { %v85_v13 = vld [vmem:[%s3995_s2 + $0x70] sm:$0xff]  ;;  %v88_v16 = vld [vmem:[%s3995_s2 + $0x88] sm:$0xff]  ;;  %v87_v17 = vld [vmem:[%s3995_s2 + $0x80] sm:$0xff] }
   0x9   :  { %v86_v18 = vld [vmem:[%s3995_s2 + $0x78] sm:$0xff]  ;;  %v91_v19 = vld [vmem:[%s3995_s2 + $0xa0] sm:$0xff]  ;;  %v89_v21 = vld [vmem:[%s3995_s2 + $0x90] sm:$0xff] }
   0xa   :  { %137 = vperm.xlu2 %2702, %v76_v4   ;;  %v90_v20 = vld [vmem:[%s3995_s2 + $0x98] sm:$0xff]  ;;  %v93_v23 = vld [vmem:[%s3995_s2 + $0xb0] sm:$0xff]  ;;  %v92_v24 = vld [vmem:[%s3995_s2 + $0xa8] sm:$0xff] }
   0xb   :  { %131 = vperm.xlu1 %2701, %v74_v5   ;;  %125 = vperm.xlu0 %2700, %v72_v6   ;;  %v94_v22 = vld [vmem:[%s3995_s2 + $0xb8] sm:$0xff]  ;;  %v97_v25 = vld [vmem:[%s3995_s2 + $0xd0] sm:$0xff]  ;;  %v96_v26 = vld [vmem:[%s3995_s2 + $0xc8] sm:$0xff] }
   0xc   :  { %v95_v27 = vld [vmem:[%s3995_s2 + $0xc0] sm:$0xff]  ;;  %v416_v28 = vld [vmem:[%s3996_s3 + $0x38] sm:$0xff]  ;;  %v415_v29 = vld [vmem:[%s3996_s3 + $0x30] sm:$0xff] }
   0xd   :  { %v100_v30 = vld [vmem:[%s3995_s2 + $0xe8] sm:$0xff]  ;;  %570 = vmatpush.msra.mxu0 %v416_v28  ;;  %2685 = vmatpush.msra.mxu2 %v416_v28  ;;  %v99_v31 = vld [vmem:[%s3995_s2 + $0xe0] sm:$0xff]  ;;  %v98_v32 = vld [vmem:[%s3995_s2 + $0xd8] sm:$0xff] }
   0xe   :  { %v414_v33 = vld [vmem:[%s3996_s3 + $0x28] sm:$0xff]  ;;  %v413_v34 = vld [vmem:[%s3996_s3 + $0x20] sm:$0xff]  ;;  %v412_v35 = vld [vmem:[%s3996_s3 + $0x18] sm:$0xff] }
   0xf   :  { %571 = vmatpush.msra.mxu0 %v415_v29  ;;  %2686 = vmatpush.msra.mxu2 %v415_v29  ;;  %v103_v36 = vld [vmem:[%s3995_s2 + $0x100] sm:$0xff]  ;;  %v102_v37 = vld [vmem:[%s3995_s2 + $0xf8] sm:$0xff]  ;;  %v101_v38 = vld [vmem:[%s3995_s2 + $0xf0] sm:$0xff] }
  0x10   :  { %v411_v39 = vld [vmem:[%s3996_s3 + $0x10] sm:$0xff]  ;;  %v410_v40 = vld [vmem:[%s3996_s3 + $0x8] sm:$0xff]  ;;  %v409_v41 = vld [vmem:[%s3996_s3] sm:$0xff] }
  0x11   :  { %572 = vmatpush.msra.mxu0 %v414_v33  ;;  %2687 = vmatpush.msra.mxu2 %v414_v33  ;;  %v106_v42 = vld [vmem:[%s3995_s2 + $0x118] sm:$0xff]  ;;  %v105_v43 = vld [vmem:[%s3995_s2 + $0x110] sm:$0xff]  ;;  %v104_v44 = vld [vmem:[%s3995_s2 + $0x108] sm:$0xff] }
  0x12   :  { %146 = vperm.xlu2 %2702, %v79_v7   ;;  %v109_v45 = vld [vmem:[%s3995_s2 + $0x130] sm:$0xff]  ;;  %v108_v46 = vld [vmem:[%s3995_s2 + $0x128] sm:$0xff]  ;;  %v107_v47 = vld [vmem:[%s3995_s2 + $0x120] sm:$0xff] }
  0x13   :  { %143 = vperm.xlu1 %2701, %v78_v8   ;;  %140 = vperm.xlu0 %2700, %v77_v9   ;;  %v112_v48 = vld [vmem:[%s3995_s2 + $0x148] sm:$0xff]  ;;  %v111_v49 = vld [vmem:[%s3995_s2 + $0x140] sm:$0xff]  ;;  %v110_v50 = vld [vmem:[%s3995_s2 + $0x138] sm:$0xff] }
  0x14   :  { %573 = vmatpush.msra.mxu0 %v413_v34  ;;  %2688 = vmatpush.msra.mxu2 %v413_v34  ;;  %v115_v52 = vld [vmem:[%s3995_s2 + $0x160] sm:$0xff]  ;;  %v114_v54 = vld [vmem:[%s3995_s2 + $0x158] sm:$0xff]  ;;  %v113_v55 = vld [vmem:[%s3995_s2 + $0x150] sm:$0xff] }
  0x15   :  { %v726_v34 = vld [vmem:[%s3997_s4 + $0x18] sm:$0xff] }
  0x16   :  { %574 = vmatpush.msra.mxu0 %v412_v35  ;;  %2689 = vmatpush.msra.mxu2 %v412_v35 }
  0x17   :  { %884 = vmatpush.msra.mxu1 %v726_v34  ;;  %2693 = vmatpush.msra.mxu3 %v726_v34 }
  0x18   :  { %575 = vmatpush.msra.mxu0 %v411_v39  ;;  %2690 = vmatpush.msra.mxu2 %v411_v39  ;;  %v724_v39 = vld [vmem:[%s3997_s4 + $0x8] sm:$0xff] }
  0x1a   :  { %155 = vperm.xlu2 %2702, %v82_v10   ;;  %576 = vmatpush.msra.mxu0 %v410_v40 }
  0x1b   :  { %152 = vperm.xlu1 %2701, %v81_v11   ;;  %149 = vperm.xlu0 %2700, %v80_v12  }
  0x1c   :  { %2691 = vmatpush.msra.mxu2 %v410_v40  ;;  %577 = vmatpush.msra.mxu0 %v409_v41 }
  0x1e   :  { %2692 = vmatpush.msra.mxu2 %v409_v41  ;;  %v723_v41 = vld [vmem:[%s3997_s4] sm:$0xff] }
  0x22   :  { %164 = vperm.xlu2 %2702, %v85_v13  }
  0x23   :  { %161 = vperm.xlu1 %2701, %v84_v14   ;;  %158 = vperm.xlu0 %2700, %v83_v15  }
  0x2a   :  { %173 = vperm.xlu2 %2702, %v88_v16  }
  0x2b   :  { %170 = vperm.xlu1 %2701, %v87_v17   ;;  %167 = vperm.xlu0 %2700, %v86_v18  }
  0x32   :  { %182 = vperm.xlu2 %2702, %v91_v19  }
  0x33   :  { %179 = vperm.xlu1 %2701, %v90_v20   ;;  %176 = vperm.xlu0 %2700, %v89_v21  }
  0x3a   :  { %191 = vperm.xlu2 %2702, %v94_v22  }
  0x3b   :  { %188 = vperm.xlu1 %2701, %v93_v23   ;;  %185 = vperm.xlu0 %2700, %v92_v24  }
  0x42   :  { %200 = vperm.xlu2 %2702, %v97_v25  }
  0x43   :  { %197 = vperm.xlu1 %2701, %v96_v26   ;;  %194 = vperm.xlu0 %2700, %v95_v27  }
  0x4a   :  { %209 = vperm.xlu2 %2702, %v100_v30  }
  0x4b   :  { %206 = vperm.xlu1 %2701, %v99_v31   ;;  %203 = vperm.xlu0 %2700, %v98_v32  }
  0x52   :  { %218 = vperm.xlu2 %2702, %v103_v36  }
  0x53   :  { %215 = vperm.xlu1 %2701, %v102_v37   ;;  %212 = vperm.xlu0 %2700, %v101_v38   ;;  %v725_v38 = vld [vmem:[%s3997_s4 + $0x10] sm:$0xff] }
  0x54   :  { %885 = vmatpush.msra.mxu1 %v725_v38  ;;  %2694 = vmatpush.msra.mxu3 %v725_v38 }
  0x56   :  { %886 = vmatpush.msra.mxu1 %v724_v39  ;;  %2695 = vmatpush.msra.mxu3 %v724_v39 }
  0x58   :  { %887 = vmatpush.msra.mxu1 %v723_v41  ;;  %2696 = vmatpush.msra.mxu3 %v723_v41 }
  0x5a   :  { %227 = vperm.xlu2 %2702, %v106_v42  }
  0x5b   :  { %224 = vperm.xlu1 %2701, %v105_v43   ;;  %221 = vperm.xlu0 %2700, %v104_v44  }
  0x5c   :  { %v135_v53 = vpop.permute.xlu2 %134 }
  0x5d   :  { %vm269_vm5 = vcmp.eq.s32.totalorder %v135_v53, %v2930_v56 }
  0x5e   :  { %v2545_v9 = vsel %vm269_vm5, 1.0, %v2733_v59 }
  0x62   :  { %236 = vperm.xlu2 %2702, %v109_v45  }
  0x63   :  { %233 = vperm.xlu1 %2701, %v108_v46   ;;  %230 = vperm.xlu0 %2700, %v107_v47  }
  0x64   :  { %v138_v61 = vpop.permute.xlu2 %137 }
  0x65   :  { %vm270_vm6 = vcmp.eq.s32.totalorder %v138_v61, %v2930_v56 }
  0x66   :  { %v2546_v15 = vsel %vm270_vm6, 1.0, %v2733_v59 }
  0x6a   :  { %245 = vperm.xlu2 %2702, %v112_v48  }
  0x6b   :  { %242 = vperm.xlu1 %2701, %v111_v49   ;;  %239 = vperm.xlu0 %2700, %v110_v50  }
  0x6c   :  { %v147_v1 = vpop.permute.xlu2 %146 }
  0x6d   :  { %vm273_vm9 = vcmp.eq.s32.totalorder %v147_v1, %v2930_v56 }
  0x6e   :  { %v2549_v25 = vsel %vm273_vm9, 1.0, %v2733_v59 }
  0x72   :  { %254 = vperm.xlu2 %2702, %v115_v52  }
  0x73   :  { %251 = vperm.xlu1 %2701, %v114_v54   ;;  %248 = vperm.xlu0 %2700, %v113_v55  }
  0x74   :  { %v156_v7 = vpop.permute.xlu2 %155 }
  0x75   :  { %v129_v57 = vpop.permute.xlu1 %128  ;;  %v123_v58 = vpop.permute.xlu0 %122  ;;  %vm276_vm15 = vcmp.eq.s32.totalorder %v156_v7, %v2930_v56 }
  0x76   :  { %vm265_vm1 = vcmp.eq.s32.totalorder %v123_v58, %v2930_v56  ;;  %vm267_vm3 = vcmp.eq.s32.totalorder %v129_v57, %v2930_v56  ;;  %v2552_v36 = vsel %vm276_vm15, 1.0, %v2733_v59 }
  0x77   :  { %v2541_v60 = vsel %vm265_vm1, 1.0, %v2733_v59  ;;  %v2543_v2 = vsel %vm267_vm3, 1.0, %v2733_v59 }
  0x78   :  { %2589 = vmatmul.msk.f32.vlgmr.msra.gmra.mxu0 %vm417_vm0, %v2541_v60 }
  0x7c   :  { %v2951_v12 = vpop.permute.xlu2 %164 }
  0x7d   :  { %v132_v62 = vpop.permute.xlu1 %131  ;;  %v126_v63 = vpop.permute.xlu0 %125  ;;  %vm279_vm6 = vcmp.eq.s32.totalorder %v2951_v12, %v2930_v56 }
  0x7e   :  { %vm266_vm2 = vcmp.eq.s32.totalorder %v126_v63, %v2930_v56  ;;  %vm268_vm4 = vcmp.eq.s32.totalorder %v132_v62, %v2930_v56  ;;  %v2555_v48 = vsel %vm279_vm6, 1.0, %v2733_v59 }
  0x7f   :  { %v2542_v0 = vsel %vm266_vm2, 1.0, %v2733_v59  ;;  %v2544_v8 = vsel %vm268_vm4, 1.0, %v2733_v59 }
  0x80   :  { %2590 = vmatmul.msk.f32.gmra.mxu0 %vm417_vm0, %v2542_v0 }
  0x84   :  { %v2960_v16 = vpop.permute.xlu2 %173 }
  0x85   :  { %v144_v3 = vpop.permute.xlu1 %143  ;;  %v141_v4 = vpop.permute.xlu0 %140 }
  0x86   :  { %vm271_vm7 = vcmp.eq.s32.totalorder %v141_v4, %v2930_v56  ;;  %vm272_vm8 = vcmp.eq.s32.totalorder %v144_v3, %v2930_v56 }
  0x87   :  { %v2547_v19 = vsel %vm271_vm7, 1.0, %v2733_v59  ;;  %v2548_v22 = vsel %vm272_vm8, 1.0, %v2733_v59 }
  0x88   :  { %2591 = vmatmul.msk.f32.gmra.mxu0 %vm417_vm0, %v2543_v2 }
  0x8c   :  { %v2970_v20 = vpop.permute.xlu2 %182 }
  0x8d   :  { %v153_v5 = vpop.permute.xlu1 %152  ;;  %v150_v6 = vpop.permute.xlu0 %149 }
  0x8e   :  { %vm274_vm11 = vcmp.eq.s32.totalorder %v150_v6, %v2930_v56  ;;  %vm275_vm13 = vcmp.eq.s32.totalorder %v153_v5, %v2930_v56 }
  0x8f   :  { %v2550_v29 = vsel %vm274_vm11, 1.0, %v2733_v59  ;;  %v2551_v32 = vsel %vm275_vm13, 1.0, %v2733_v59  ;;  %vm282_vm13 = vcmp.eq.s32.totalorder %v2960_v16, %v2930_v56 }
  0x90   :  { %2592 = vmatmul.msk.f32.gmra.mxu0 %vm417_vm0, %v2544_v8  ;;  %v2558_v62 = vsel %vm282_vm13, 1.0, %v2733_v59 }
  0x94   :  { %v2981_v26 = vpop.permute.xlu2 %191 }
  0x95   :  { %v2946_v10 = vpop.permute.xlu1 %161  ;;  %v2948_v11 = vpop.permute.xlu0 %158 }
  0x96   :  { %vm277_vm2 = vcmp.eq.s32.totalorder %v2948_v11, %v2930_v56  ;;  %vm278_vm4 = vcmp.eq.s32.totalorder %v2946_v10, %v2930_v56 }
  0x97   :  { %v2553_v42 = vsel %vm277_vm2, 1.0, %v2733_v59  ;;  %v2554_v45 = vsel %vm278_vm4, 1.0, %v2733_v59  ;;  %vm285_vm4 = vcmp.eq.s32.totalorder %v2970_v20, %v2930_v56 }
  0x98   :  { %2593 = vmatmul.msk.f32.gmra.mxu0 %vm417_vm0, %v2545_v9  ;;  %v2561_v10 = vsel %vm285_vm4, 1.0, %v2733_v59 }
  0x9c   :  { %v201_v31 = vpop.permute.xlu2 %200 }
  0x9d   :  { %v2954_v13 = vpop.permute.xlu1 %170  ;;  %v2956_v14 = vpop.permute.xlu0 %167  ;;  %vm291_vm14 = vcmp.eq.s32.totalorder %v201_v31, %v2930_v56 }
  0x9e   :  { %v2567_v33 = vsel %vm291_vm14, 1.0, %v2733_v59  ;;  %vm280_vm8 = vcmp.eq.s32.totalorder %v2956_v14, %v2930_v56  ;;  %vm281_vm11 = vcmp.eq.s32.totalorder %v2954_v13, %v2930_v56 }
  0x9f   :  { %v2556_v52 = vsel %vm280_vm8, 1.0, %v2733_v59  ;;  %v2557_v57 = vsel %vm281_vm11, 1.0, %v2733_v59  ;;  %vm288_vm11 = vcmp.eq.s32.totalorder %v2981_v26, %v2930_v56 }
  0xa0   :  { %2594 = vmatmul.msk.f32.gmra.mxu0 %vm417_vm0, %v2546_v15 }
  0xa4   :  { %v210_v44 = vpop.permute.xlu2 %209 }
  0xa5   :  { %v2963_v17 = vpop.permute.xlu1 %179  ;;  %v2965_v18 = vpop.permute.xlu0 %176  ;;  %vm294_vm5 = vcmp.eq.s32.totalorder %v210_v44, %v2930_v56 }
  0xa6   :  { %v2570_v46 = vsel %vm294_vm5, 1.0, %v2733_v59  ;;  %vm283_vm15 = vcmp.eq.s32.totalorder %v2965_v18, %v2930_v56  ;;  %vm284_vm2 = vcmp.eq.s32.totalorder %v2963_v17, %v2930_v56 }
  0xa7   :  { %v2559_v2 = vsel %vm283_vm15, 1.0, %v2733_v59  ;;  %v2560_v6 = vsel %vm284_vm2, 1.0, %v2733_v59 }
  0xa8   :  { %2595 = vmatmul.msk.f32.gmra.mxu0 %vm417_vm0, %v2547_v19 }
  0xac   :  { %v219_v54 = vpop.permute.xlu2 %218 }
  0xad   :  { %v2972_v21 = vpop.permute.xlu0 %185  ;;  %v2975_v23 = vpop.permute.xlu1 %188 }
  0xae   :  { %vm286_vm6 = vcmp.eq.s32.totalorder %v2972_v21, %v2930_v56  ;;  %vm287_vm8 = vcmp.eq.s32.totalorder %v2975_v23, %v2930_v56 }
  0xaf   :  { %v2562_v14 = vsel %vm286_vm6, 1.0, %v2733_v59  ;;  %v2563_v18 = vsel %vm287_vm8, 1.0, %v2733_v59  ;;  %vm2401_vm6 = vcmask 261312   ;;  %vm2409_vm8 = vcmask 392512  }
  0xb0   :  { %2596 = vmatmul.msk.f32.gmra.mxu0 %vm417_vm0, %v2548_v22  ;;  %v2564_v22 = vsel %vm288_vm11, 1.0, %v2733_v59  ;;  %vm2417_vm11 = vcmask 523712  }
  0xb4   :  { %v228_v4 = vpop.permute.xlu2 %227 }
  0xb5   :  { %v195_v24 = vpop.permute.xlu0 %194  ;;  %v198_v28 = vpop.permute.xlu1 %197 }
  0xb6   :  { %vm289_vm10 = vcmp.eq.s32.totalorder %v195_v24, %v2930_v56  ;;  %vm290_vm12 = vcmp.eq.s32.totalorder %v198_v28, %v2930_v56 }
  0xb7   :  { %v2565_v27 = vsel %vm289_vm10, 1.0, %v2733_v59  ;;  %v2566_v30 = vsel %vm290_vm12, 1.0, %v2733_v59  ;;  %vm727_vm10 = vcmask 261120   ;;  %vm297_vm12 = vcmp.eq.s32.totalorder %v219_v54, %v2930_v56 }
  0xb8   :  { %2597 = vmatmul.msk.f32.gmra.mxu0 %vm417_vm0, %v2549_v25  ;;  %2613 = vmatmul.msk.f32.vlgmr.msra.gmra.mxu2 %vm417_vm0, %v2565_v27  ;;  %v2573_v58 = vsel %vm297_vm12, 1.0, %v2733_v59 }
  0xbc   :  { %v237_v16 = vpop.permute.xlu2 %236 }
  0xbd   :  { %v204_v35 = vpop.permute.xlu0 %203  ;;  %v207_v40 = vpop.permute.xlu1 %206 }
  0xbe   :  { %vm292_vm1 = vcmp.eq.s32.totalorder %v204_v35, %v2930_v56  ;;  %vm293_vm3 = vcmp.eq.s32.totalorder %v207_v40, %v2930_v56 }
  0xbf   :  { %v2568_v37 = vsel %vm292_vm1, 1.0, %v2733_v59  ;;  %v2569_v43 = vsel %vm293_vm3, 1.0, %v2733_v59  ;;  %vm300_vm3 = vcmp.eq.s32.totalorder %v228_v4, %v2930_v56 }
  0xc0   :  { %2598 = vmatmul.msk.f32.gmra.mxu0 %vm417_vm0, %v2550_v29  ;;  %2614 = vmatmul.msk.f32.gmra.mxu2 %vm417_vm0, %v2566_v30  ;;  %v2576_v7 = vsel %vm300_vm3, 1.0, %v2733_v59 }
  0xc4   :  { %v246_v27 = vpop.permute.xlu2 %245 }
  0xc5   :  { %v213_v47 = vpop.permute.xlu0 %212  ;;  %v216_v50 = vpop.permute.xlu1 %215 }
  0xc6   :  { %vm295_vm7 = vcmp.eq.s32.totalorder %v213_v47, %v2930_v56  ;;  %vm296_vm9 = vcmp.eq.s32.totalorder %v216_v50, %v2930_v56  ;;  %v23_v50 = vld [vmem:[%s3994_s1] sm:$0xff] }
  0xc7   :  { %v2571_v49 = vsel %vm295_vm7, 1.0, %v2733_v59  ;;  %v2572_v53 = vsel %vm296_vm9, 1.0, %v2733_v59  ;;  %vm303_vm9 = vcmp.eq.s32.totalorder %v237_v16, %v2930_v56 }
  0xc8   :  { %2599 = vmatmul.msk.f32.gmra.mxu0 %vm417_vm0, %v2551_v32  ;;  %2615 = vmatmul.msk.f32.gmra.mxu2 %vm417_vm0, %v2567_v33  ;;  %v2579_v19 = vsel %vm303_vm9, 1.0, %v2733_v59  ;;  %vm2413_vm9 = vcmask 458112  }
  0xcc   :  { %v255_v39 = vpop.permute.xlu2 %254 }
  0xcd   :  { %v222_v60 = vpop.permute.xlu0 %221  ;;  %v225_v0 = vpop.permute.xlu1 %224  ;;  %vm309_vm2 = vcmp.eq.s32.totalorder %v255_v39, %v2930_v56 }
  0xce   :  { %vm298_vm14 = vcmp.eq.s32.totalorder %v222_v60, %v2930_v56  ;;  %vm299_vm1 = vcmp.eq.s32.totalorder %v225_v0, %v2930_v56 }
  0xcf   :  { %v2574_v63 = vsel %vm298_vm14, 1.0, %v2733_v59  ;;  %v2575_v3 = vsel %vm299_vm1, 1.0, %v2733_v59  ;;  %vm306_vm14 = vcmp.eq.s32.totalorder %v246_v27, %v2930_v56 }
  0xd0   :  { %2600 = vmatmul.msk.f32.gmra.mxu0 %vm417_vm0, %v2552_v36  ;;  %2616 = vmatmul.msk.f32.gmra.mxu2 %vm417_vm0, %v2568_v37  ;;  %v2582_v30 = vsel %vm306_vm14, 1.0, %v2733_v59  ;;  %vm2429_vm14 = vcmask 720512  }
  0xd5   :  { %v231_v8 = vpop.permute.xlu0 %230  ;;  %v234_v12 = vpop.permute.xlu1 %233 }
  0xd6   :  { %vm301_vm5 = vcmp.eq.s32.totalorder %v231_v8, %v2930_v56  ;;  %vm302_vm7 = vcmp.eq.s32.totalorder %v234_v12, %v2930_v56  ;;  %v25_v8 = vld [vmem:[%s3994_s1 + $0x10] sm:$0xff] }
  0xd7   :  { %v2577_v11 = vsel %vm301_vm5, 1.0, %v2733_v59  ;;  %v2578_v15 = vsel %vm302_vm7, 1.0, %v2733_v59  ;;  %vm2405_vm7 = vcmask 326912  }
  0xd8   :  { %2601 = vmatmul.msk.f32.gmra.mxu0 %vm417_vm0, %v2553_v42  ;;  %2617 = vmatmul.msk.f32.gmra.mxu2 %vm417_vm0, %v2569_v43  ;;  %v2585_v42 = vsel %vm309_vm2, 1.0, %v2733_v59  ;;  %vm2441_vm2 = vcmask 917312  }
  0xdd   :  { %v240_v20 = vpop.permute.xlu0 %239  ;;  %v243_v24 = vpop.permute.xlu1 %242 }
  0xde   :  { %vm304_vm12 = vcmp.eq.s32.totalorder %v240_v20, %v2930_v56  ;;  %vm305_vm13 = vcmp.eq.s32.totalorder %v243_v24, %v2930_v56 }
  0xdf   :  { %v2580_v23 = vsel %vm304_vm12, 1.0, %v2733_v59  ;;  %v2581_v26 = vsel %vm305_vm13, 1.0, %v2733_v59  ;;  %vm2421_vm12 = vcmask 589312   ;;  %vm2425_vm13 = vcmask 654912  }
  0xe0   :  { %2602 = vmatmul.msk.f32.gmra.mxu0 %vm417_vm0, %v2554_v45  ;;  %2618 = vmatmul.msk.f32.gmra.mxu2 %vm417_vm0, %v2570_v46 }
  0xe5   :  { %v249_v31 = vpop.permute.xlu0 %248  ;;  %v252_v35 = vpop.permute.xlu1 %251 }
  0xe6   :  { %vm307_vm15 = vcmp.eq.s32.totalorder %v249_v31, %v2930_v56  ;;  %vm308_vm1 = vcmp.eq.s32.totalorder %v252_v35, %v2930_v56 }
  0xe7   :  { %v2583_v34 = vsel %vm307_vm15, 1.0, %v2733_v59  ;;  %v2584_v38 = vsel %vm308_vm1, 1.0, %v2733_v59  ;;  %vm2433_vm15 = vcmask 786112   ;;  %vm2437_vm1 = vcmask 851712  }
  0xe8   :  { %2603 = vmatmul.msk.f32.gmra.mxu0 %vm417_vm0, %v2555_v48  ;;  %2619 = vmatmul.msk.f32.gmra.mxu2 %vm417_vm0, %v2571_v49  ;;  %v3208_v49 = vld [vmem:[%s3998_s5] ss:$0 sm:$0xff] }
  0xf0   :  { %2604 = vmatmul.msk.f32.gmra.mxu0 %vm417_vm0, %v2556_v52  ;;  %2620 = vmatmul.msk.f32.gmra.mxu2 %vm417_vm0, %v2572_v53 }
  0xf5   :  { %v3047_v55 = vpop.f32.mrf.mxu0 }
  0xf6   :  { %2637 = vmatmul.msk.f32.vlgmr.msra.gmra.mxu1 %vm727_vm10, %v3047_v55  ;;  %v1085_v54 = vmul.f32 %v3208_v49, %v3047_v55 }
  0xf8   :  { %2605 = vmatmul.msk.f32.gmra.mxu0 %vm417_vm0, %v2557_v57  ;;  %2621 = vmatmul.msk.f32.gmra.mxu2 %vm417_vm0, %v2573_v58 }
  0xfd   :  { %v3058_v61 = vpop.f32.mrf.mxu0 }
  0xfe   :  { %2638 = vmatmul.msk.f32.gmra.mxu1 %vm727_vm10, %v3058_v61 }
 0x100   :  { %2606 = vmatmul.msk.f32.gmra.mxu0 %vm417_vm0, %v2558_v62  ;;  %2622 = vmatmul.msk.f32.gmra.mxu2 %vm417_vm0, %v2574_v63  ;;  %v24_v63 = vld [vmem:[%s3994_s1 + $0x8] sm:$0xff] }
 0x105   :  { %v3069_v1 = vpop.f32.mrf.mxu0 }
 0x106   :  { %2639 = vmatmul.msk.f32.gmra.mxu1 %vm727_vm10, %v3069_v1 }
 0x108   :  { %2607 = vmatmul.msk.f32.gmra.mxu0 %vm417_vm0, %v2559_v2  ;;  %2623 = vmatmul.msk.f32.gmra.mxu2 %vm417_vm0, %v2575_v3  ;;  %v1086_v2 = vmul.f32 %v3208_v49, %v3058_v61 }
 0x10d   :  { %v3080_v5 = vpop.f32.mrf.mxu0 }
 0x10e   :  { %2640 = vmatmul.msk.f32.gmra.mxu1 %vm727_vm10, %v3080_v5 }
 0x110   :  { %2608 = vmatmul.msk.f32.gmra.mxu0 %vm417_vm0, %v2560_v6  ;;  %2624 = vmatmul.msk.f32.gmra.mxu2 %vm417_vm0, %v2576_v7 }
 0x115   :  { %v3091_v9 = vpop.f32.mrf.mxu0 }
 0x116   :  { %2641 = vmatmul.msk.f32.gmra.mxu1 %vm727_vm10, %v3091_v9 }
 0x118   :  { %2609 = vmatmul.msk.f32.gmra.mxu0 %vm417_vm0, %v2561_v10  ;;  %2625 = vmatmul.msk.f32.gmra.mxu2 %vm417_vm0, %v2577_v11  ;;  %v1087_v11 = vmul.f32 %v3208_v49, %v3069_v1  ;;  %v116_v1 = vld [vmem:[%s3995_s2 + $0x168] sm:$0xff] }
 0x11d   :  { %v3102_v13 = vpop.f32.mrf.mxu0 }
 0x11e   :  { %2642 = vmatmul.msk.f32.gmra.mxu1 %vm727_vm10, %v3102_v13 }
 0x120   :  { %2610 = vmatmul.msk.f32.gmra.mxu0 %vm417_vm0, %v2562_v14  ;;  %2626 = vmatmul.msk.f32.gmra.mxu2 %vm417_vm0, %v2578_v15 }
 0x125   :  { %v3113_v17 = vpop.f32.mrf.mxu0 }
 0x126   :  { %2643 = vmatmul.msk.f32.gmra.mxu1 %vm727_vm10, %v3113_v17 }
 0x128   :  { %2611 = vmatmul.msk.f32.gmra.mxu0 %vm417_vm0, %v2563_v18  ;;  %2627 = vmatmul.msk.f32.gmra.mxu2 %vm417_vm0, %v2579_v19  ;;  %v26_v18 = vld [vmem:[%s3994_s1 + $0x18] sm:$0xff] }
 0x12d   :  { %v3124_v21 = vpop.f32.mrf.mxu0 }
 0x12e   :  { %2644 = vmatmul.msk.f32.gmra.mxu1 %vm727_vm10, %v3124_v21 }
 0x130   :  { %2612 = vmatmul.msk.f32.gmra.mxu0 %vm417_vm0, %v2564_v22  ;;  %2628 = vmatmul.msk.f32.gmra.mxu2 %vm417_vm0, %v2580_v23  ;;  %v1088_v22 = vmul.f32 %v3208_v49, %v3080_v5 }
 0x135   :  { %v3133_v25 = vpop.f32.mrf.mxu0 }
 0x136   :  { %2645 = vmatmul.msk.f32.gmra.mxu1 %vm727_vm10, %v3133_v25 }
 0x138   :  { %2629 = vmatmul.msk.f32.gmra.mxu2 %vm417_vm0, %v2581_v26 }
 0x13b   :  { %v3139_v28 = vpop.f32.mrf.mxu2 }
 0x13d   :  { %v3142_v29 = vpop.f32.mrf.mxu0 }
 0x13e   :  { %2646 = vmatmul.msk.f32.gmra.mxu1 %vm727_vm10, %v3142_v29 }
 0x140   :  { %2630 = vmatmul.msk.f32.gmra.mxu2 %vm417_vm0, %v2582_v30  ;;  %v27_v30 = vld [vmem:[%s3994_s1 + $0x20] sm:$0xff] }
 0x143   :  { %v3148_v32 = vpop.f32.mrf.mxu2 }
 0x144   :  { %2662 = vmatmul.msk.f32.vlgmr.msra.gmra.mxu3 %vm727_vm10, %v3148_v32 }
 0x145   :  { %v3153_v33 = vpop.f32.mrf.mxu0 }
 0x146   :  { %2647 = vmatmul.msk.f32.gmra.mxu1 %vm727_vm10, %v3153_v33 }
 0x148   :  { %2631 = vmatmul.msk.f32.gmra.mxu2 %vm417_vm0, %v2583_v34  ;;  %v1089_v34 = vmul.f32 %v3208_v49, %v3091_v9 }
 0x14b   :  { %v3159_v36 = vpop.f32.mrf.mxu2 }
 0x14c   :  { %2663 = vmatmul.msk.f32.gmra.mxu3 %vm727_vm10, %v3159_v36 }
 0x14d   :  { %v3164_v37 = vpop.f32.mrf.mxu0 }
 0x14e   :  { %2648 = vmatmul.msk.f32.gmra.mxu1 %vm727_vm10, %v3164_v37 }
 0x150   :  { %2632 = vmatmul.msk.f32.gmra.mxu2 %vm417_vm0, %v2584_v38 }
 0x153   :  { %v3170_v40 = vpop.f32.mrf.mxu2 }
 0x154   :  { %2664 = vmatmul.msk.f32.gmra.mxu3 %vm727_vm10, %v3170_v40 }
 0x155   :  { %v3175_v41 = vpop.f32.mrf.mxu0 }
 0x156   :  { %2649 = vmatmul.msk.f32.gmra.mxu1 %vm727_vm10, %v3175_v41 }
 0x158   :  { %2633 = vmatmul.msk.f32.gmra.mxu2 %vm417_vm0, %v2585_v42 }
 0x15b   :  { %v3181_v43 = vpop.f32.mrf.mxu2 }
 0x15c   :  { %2665 = vmatmul.msk.f32.gmra.mxu3 %vm727_vm10, %v3181_v43 }
 0x15d   :  { %v3185_v44 = vpop.f32.mrf.mxu0 }
 0x15e   :  { %2650 = vmatmul.msk.f32.gmra.mxu1 %vm727_vm10, %v3185_v44 }
 0x163   :  { %v3189_v45 = vpop.f32.mrf.mxu2 }
 0x164   :  { %2666 = vmatmul.msk.f32.gmra.mxu3 %vm727_vm10, %v3189_v45 }
 0x165   :  { %v3193_v46 = vpop.f32.mrf.mxu0 }
 0x166   :  { %2651 = vmatmul.msk.f32.gmra.mxu1 %vm727_vm10, %v3193_v46 }
 0x16b   :  { %v3197_v47 = vpop.f32.mrf.mxu2 }
 0x16c   :  { %2667 = vmatmul.msk.f32.gmra.mxu3 %vm727_vm10, %v3197_v47 }
 0x16d   :  { %v3201_v48 = vpop.f32.mrf.mxu0 }
 0x16e   :  { %2652 = vmatmul.msk.f32.gmra.mxu1 %vm727_vm10, %v3201_v48 }
 0x173   :  { %v3213_v52 = vpop.f32.mrf.mxu2  ;;  %v889_v53 = vpop.f32.mrf.mxu1 }
 0x174   :  { %v1033_v57 = vmul.f32 %v889_v53, %v23_v50  ;;  %2668 = vmatmul.msk.f32.gmra.mxu3 %vm727_vm10, %v3213_v52  ;;  %v28_v50 = vld [vmem:[%s3994_s1 + $0x28] sm:$0xff] }
 0x175   :  { %v3219_v58 = vpop.f32.mrf.mxu0 }
 0x176   :  { %2653 = vmatmul.msk.f32.gmra.mxu1 %vm727_vm10, %v3219_v58  ;;  %v1133_v60 = vadd.f32 %v1085_v54, %v1033_v57  ;;  %v1090_v54 = vmul.f32 %v3208_v49, %v3102_v13 }
 0x178   :  { %v1181_v62 = vsel %vm727_vm10, %v1133_v60, 0.0 }
 0x179   :  { %1182 = vadd.xlane.f32.xlu0 %v1181_v62 }
 0x17b   :  { %v3227_v0 = vpop.f32.mrf.mxu2  ;;  %v892_v55 = vpop.f32.mrf.mxu1 }
 0x17c   :  { %v1034_v3 = vmul.f32 %v892_v55, %v24_v63  ;;  %2669 = vmatmul.msk.f32.gmra.mxu3 %vm727_vm10, %v3227_v0  ;;  %v29_v55 = vld [vmem:[%s3994_s1 + $0x30] sm:$0xff] }
 0x17d   :  { %v3233_v4 = vpop.f32.mrf.mxu0 }
 0x17e   :  { %2654 = vmatmul.msk.f32.gmra.mxu1 %vm727_vm10, %v3233_v4  ;;  %v1134_v6 = vadd.f32 %v1086_v2, %v1034_v3  ;;  %v1091_v3 = vmul.f32 %v3208_v49, %v3113_v17 }
 0x180   :  { %v1184_v7 = vsel %vm727_vm10, %v1134_v6, 0.0 }
 0x181   :  { %1185 = vadd.xlane.f32.xlu1 %v1184_v7 }
 0x183   :  { %v3241_v10 = vpop.f32.mrf.mxu2  ;;  %v895_v61 = vpop.f32.mrf.mxu1 }
 0x184   :  { %v1035_v12 = vmul.f32 %v895_v61, %v25_v8  ;;  %2670 = vmatmul.msk.f32.gmra.mxu3 %vm727_vm10, %v3241_v10 }
 0x185   :  { %v3247_v14 = vpop.f32.mrf.mxu0 }
 0x186   :  { %2655 = vmatmul.msk.f32.gmra.mxu1 %vm727_vm10, %v3247_v14  ;;  %v1135_v15 = vadd.f32 %v1087_v11, %v1035_v12  ;;  %v30_v11 = vld [vmem:[%s3994_s1 + $0x38] sm:$0xff] }
 0x188   :  { %v1187_v16 = vsel %vm727_vm10, %v1135_v15, 0.0  ;;  %v1092_v15 = vmul.f32 %v3208_v49, %v3124_v21 }
 0x189   :  { %1188 = vadd.xlane.f32.xlu2 %v1187_v16 }
 0x18b   :  { %v3258_v19 = vpop.f32.mrf.mxu2  ;;  %v898_v20 = vpop.f32.mrf.mxu1 }
 0x18c   :  { %v1036_v23 = vmul.f32 %v898_v20, %v26_v18  ;;  %2671 = vmatmul.msk.f32.gmra.mxu3 %vm727_vm10, %v3258_v19 }
 0x18d   :  { %v3264_v24 = vpop.f32.mrf.mxu0  ;;  %257 = vperm.xlu0 %2700, %v116_v1  }
 0x18e   :  { %2656 = vmatmul.msk.f32.gmra.mxu1 %vm727_vm10, %v3264_v24  ;;  %v1136_v26 = vadd.f32 %v1088_v22, %v1036_v23  ;;  %v31_v22 = vld [vmem:[%s3994_s1 + $0x40] sm:$0xff] }
 0x190   :  { %v1190_v27 = vsel %vm727_vm10, %v1136_v26, 0.0  ;;  %v1093_v26 = vmul.f32 %v3208_v49, %v3133_v25  ;;  %v117_v25 = vld [vmem:[%s3995_s2 + $0x170] sm:$0xff] }
 0x191   :  { %1191 = vadd.xlane.f32.xlu2 %v1190_v27 }
 0x193   :  { %v3272_v31 = vpop.f32.mrf.mxu2  ;;  %v901_v5 = vpop.f32.mrf.mxu1 }
 0x194   :  { %v1037_v35 = vmul.f32 %v901_v5, %v27_v30  ;;  %2672 = vmatmul.msk.f32.gmra.mxu3 %vm727_vm10, %v3272_v31 }
 0x195   :  { %v3278_v38 = vpop.f32.mrf.mxu0 }
 0x196   :  { %2657 = vmatmul.msk.f32.gmra.mxu1 %vm727_vm10, %v3278_v38  ;;  %v1137_v39 = vadd.f32 %v1089_v34, %v1037_v35 }
 0x198   :  { %v1193_v42 = vsel %vm727_vm10, %v1137_v39, 0.0 }
 0x199   :  { %1194 = vadd.xlane.f32.xlu1 %v1193_v42 }
 0x19b   :  { %v3286_v53 = vpop.f32.mrf.mxu2  ;;  %v904_v9 = vpop.f32.mrf.mxu1 }
 0x19c   :  { %v1038_v57 = vmul.f32 %v904_v9, %v28_v50  ;;  %2673 = vmatmul.msk.f32.gmra.mxu3 %vm727_vm10, %v3286_v53  ;;  %v118_v50 = vld [vmem:[%s3995_s2 + $0x178] sm:$0xff]  ;;  %s2532_s2 = sshll.u32 %s3999_s6, 4  ;;  %s2533_s2 = int_to_ptr.hbm [resolvable:$true] %s2532_s2 }
 0x19d   :  { %v3292_v60 = vpop.f32.mrf.mxu0  ;;  %v34_v9 = vld [vmem:[%s3994_s1 + $0x58] sm:$0xff] }
 0x19e   :  { %2658 = vmatmul.msk.f32.gmra.mxu1 %vm727_vm10, %v3292_v60  ;;  %v1138_v62 = vadd.f32 %v1090_v54, %v1038_v57 }
 0x1a0   :  { %v1196_v63 = vsel %vm727_vm10, %v1138_v62, 0.0  ;;  %v1096_v62 = vmul.f32 %v3208_v49, %v3164_v37 }
 0x1a1   :  { %1197 = vadd.xlane.f32.xlu2 %v1196_v63 }
 0x1a3   :  { %v3300_v2 = vpop.f32.mrf.mxu2  ;;  %v907_v13 = vpop.f32.mrf.mxu1 }
 0x1a4   :  { %v1039_v6 = vmul.f32 %v907_v13, %v29_v55  ;;  %2674 = vmatmul.msk.f32.gmra.mxu3 %vm727_vm10, %v3300_v2 }
 0x1a5   :  { %v3306_v7 = vpop.f32.mrf.mxu0 }
 0x1a6   :  { %2659 = vmatmul.msk.f32.gmra.mxu1 %vm727_vm10, %v3306_v7  ;;  %v1139_v8 = vadd.f32 %v1091_v3, %v1039_v6  ;;  %v35_v6 = vld [vmem:[%s3994_s1 + $0x60] sm:$0xff] }
 0x1a8   :  { %v1199_v61 = vsel %vm727_vm10, %v1139_v8, 0.0 }
 0x1a9   :  { %1200 = vadd.xlane.f32.xlu1 %v1199_v61 }
 0x1ab   :  { %v3314_v12 = vpop.f32.mrf.mxu2  ;;  %v910_v17 = vpop.f32.mrf.mxu1 }
 0x1ac   :  { %v1040_v16 = vmul.f32 %v910_v17, %v30_v11  ;;  %2675 = vmatmul.msk.f32.gmra.mxu3 %vm727_vm10, %v3314_v12  ;;  %v1097_v11 = vmul.f32 %v3208_v49, %v3175_v41 }
 0x1ad   :  { %v3320_v18 = vpop.f32.mrf.mxu0 }
 0x1ae   :  { %2660 = vmatmul.msk.f32.gmra.mxu1 %vm727_vm10, %v3320_v18  ;;  %v1140_v1 = vadd.f32 %v1092_v15, %v1040_v16 }
 0x1b0   :  { %v1202_v20 = vsel %vm727_vm10, %v1140_v1, 0.0  ;;  %v36_v1 = vld [vmem:[%s3994_s1 + $0x68] sm:$0xff] }
 0x1b1   :  { %1203 = vadd.xlane.f32.xlu2 %v1202_v20 }
 0x1b3   :  { %v3328_v23 = vpop.f32.mrf.mxu2  ;;  %v913_v21 = vpop.f32.mrf.mxu1 }
 0x1b4   :  { %v1041_v27 = vmul.f32 %v913_v21, %v31_v22  ;;  %2676 = vmatmul.msk.f32.gmra.mxu3 %vm727_vm10, %v3328_v23  ;;  %v1098_v21 = vmul.f32 %v3208_v49, %v3185_v44  ;;  %v1094_v44 = vmul.f32 %v3208_v49, %v3142_v29  ;;  %v49_v29 = vld [vmem:[%s3994_s1 + $0xd0] sm:$0xff] }
 0x1b6   :  { %2661 = vmatmul.msk.f32.gmra.mxu1 %vm727_vm10, %v3139_v28  ;;  %v1141_v30 = vadd.f32 %v1093_v26, %v1041_v27  ;;  %v32_v27 = vld [vmem:[%s3994_s1 + $0x48] sm:$0xff] }
 0x1b8   :  { %v1205_v5 = vsel %vm727_vm10, %v1141_v30, 0.0 }
 0x1b9   :  { %1206 = vadd.xlane.f32.xlu0 %v1205_v5 }
 0x1bb   :  { %v3337_v34 = vpop.f32.mrf.mxu2  ;;  %v916_v35 = vpop.f32.mrf.mxu1 }
 0x1bc   :  { %2677 = vmatmul.msk.f32.gmra.mxu3 %vm727_vm10, %v3337_v34 }
 0x1c2   :  { %260 = vperm.xlu1 %2701, %v117_v25   ;;  %v48_v25 = vld [vmem:[%s3994_s1 + $0xc8] sm:$0xff] }
 0x1c3   :  { %v3344_v39 = vpop.f32.mrf.mxu2  ;;  %v919_v42 = vpop.f32.mrf.mxu1 }
 0x1c4   :  { %2678 = vmatmul.msk.f32.gmra.mxu3 %vm727_vm10, %v3344_v39 }
 0x1c7   :  { %v964_v63 = vpop.f32.mrf.mxu3 }
 0x1c9   :  { %263 = vperm.xlu2 %2702, %v118_v50   ;;  %v1042_v50 = vmul.f32 %v916_v35, %v32_v27  ;;  %v38_v35 = vld [vmem:[%s3994_s1 + $0x78] sm:$0xff] }
 0x1cb   :  { %v3354_v54 = vpop.f32.mrf.mxu2  ;;  %v922_v57 = vpop.f32.mrf.mxu1 }
 0x1cc   :  { %v1044_v55 = vmul.f32 %v922_v57, %v34_v9  ;;  %2679 = vmatmul.msk.f32.gmra.mxu3 %vm727_vm10, %v3354_v54  ;;  %v1058_v57 = vmul.f32 %v964_v63, %v48_v25 }
 0x1ce   :  { %v1144_v13 = vadd.f32 %v1096_v62, %v1044_v55  ;;  %v33_v62 = vld [vmem:[%s3994_s1 + $0x50] sm:$0xff]  ;;  %v1110_v55 = vmul.f32 %v3208_v49, %v3148_v32  ;;  %v3408_v32 = vstv %s3993_s0 }
 0x1cf   :  { %v967_v17 = vpop.f32.mrf.mxu3 }
 0x1d0   :  { %v1214_v3 = vsel %vm727_vm10, %v1144_v13, 0.0  ;;  %v1142_v13 = vadd.f32 %v1094_v44, %v1042_v50 }
 0x1d1   :  { %1215 = vadd.xlane.f32.xlu0 %v1214_v3  ;;  %v37_v3 = vld [vmem:[%s3994_s1 + $0x70] sm:$0xff] }
 0x1d3   :  { %v3364_v8 = vpop.f32.mrf.mxu2  ;;  %v925_v61 = vpop.f32.mrf.mxu1 }
 0x1d4   :  { %v1045_v37 = vmul.f32 %v925_v61, %v35_v6  ;;  %2680 = vmatmul.msk.f32.gmra.mxu3 %vm727_vm10, %v3364_v8  ;;  %v1043_v6 = vmul.f32 %v919_v42, %v33_v62  ;;  %v3400_v61 = vadd.f32 %v1110_v55, %v1058_v57 }
 0x1d6   :  { %v1145_v15 = vadd.f32 %v1097_v11, %v1045_v37  ;;  %v1095_v11 = vmul.f32 %v3208_v49, %v3153_v33  ;;  %v1111_v33 = vmul.f32 %v3208_v49, %v3159_v36  ;;  %v50_v36 = vld [vmem:[%s3994_s1 + $0xd8] sm:$0xff] }
 0x1d7   :  { %v970_v30 = vpop.f32.mrf.mxu3 }
 0x1d8   :  { %v1217_v16 = vsel %vm727_vm10, %v1145_v15, 0.0  ;;  %v1208_v15 = vsel %vm727_vm10, %v1142_v13, 0.0  ;;  %v1143_v27 = vadd.f32 %v1095_v11, %v1043_v6 }
 0x1d9   :  { %1218 = vadd.xlane.f32.xlu0 %v1217_v16  ;;  %v1100_v16 = vmul.f32 %v3208_v49, %v3201_v48 }
 0x1da   :  { %v1211_v55 = vsel %vm727_vm10, %v1143_v27, 0.0 }
 0x1db   :  { %v3374_v20 = vpop.f32.mrf.mxu2  ;;  %v928_v22 = vpop.f32.mrf.mxu1 }
 0x1dc   :  { %v1046_v41 = vmul.f32 %v928_v22, %v36_v1  ;;  %2681 = vmatmul.msk.f32.gmra.mxu3 %vm727_vm10, %v3374_v20 }
 0x1de   :  { %v1146_v26 = vadd.f32 %v1098_v21, %v1046_v41  ;;  %v1099_v21 = vmul.f32 %v3208_v49, %v3193_v46  ;;  %v1059_v41 = vmul.f32 %v967_v17, %v49_v29  ;;  %v39_v46 = vld [vmem:[%s3994_s1 + $0x80] sm:$0xff]  ;;  %v1101_v29 = vmul.f32 %v3208_v49, %v3219_v58  ;;  %v40_v58 = vld [vmem:[%s3994_s1 + $0x88] sm:$0xff] }
 0x1df   :  { %v973_v63 = vpop.f32.mrf.mxu3 }
 0x1e0   :  { %v1220_v5 = vsel %vm727_vm10, %v1146_v26, 0.0  ;;  %v3425_v17 = vadd.f32 %v1111_v33, %v1059_v41 }
 0x1e1   :  { %1221 = vadd.xlane.f32.xlu0 %v1220_v5 }
 0x1e3   :  { %v931_v9 = vpop.f32.mrf.mxu1 }
 0x1e4   :  { %v1047_v42 = vmul.f32 %v931_v9, %v37_v3 }
 0x1e6   :  { %v1147_v44 = vadd.f32 %v1099_v21, %v1047_v42 }
 0x1e7   :  { %v976_v11 = vpop.f32.mrf.mxu3 }
 0x1eb   :  { %v934_v37 = vpop.f32.mrf.mxu1 }
 0x1ec   :  { %v1048_v1 = vmul.f32 %v934_v37, %v38_v35  ;;  %1209 = vadd.xlane.f32.xlu1 %v1208_v15  ;;  %v1183_v22 = vpop.xlane.xlu0 %1182  ;;  %v1223_v35 = vsel %vm727_vm10, %v1147_v44, 0.0  ;;  %v1060_v15 = vmul.f32 %v970_v30, %v50_v36  ;;  %v51_v30 = vld [vmem:[%s3994_s1 + $0xe0] sm:$0xff] }
 0x1ed   :  { %v1327_v26 = vadd.f32 %v3408_v32, %v1183_v22  ;;  %v1112_v22 = vmul.f32 %v3208_v49, %v3170_v40  ;;  %v1102_v40 = vmul.f32 %v3208_v49, %v3233_v4 }
 0x1ee   :  { %v1148_v5 = vadd.f32 %v1100_v16, %v1048_v1 }
 0x1ef   :  { %v1423_v25 = vperm.slane %v1327_v26, 0  ;;  %v1424_v50 = vperm.slane %v1327_v26, 1  ;;  %v1425_v9 = vperm.slane %v1327_v26, 2  ;;  %v1426_v57 = vperm.slane %v1327_v26, 3 }
 0x1f0   :  { %v1427_v48 = vperm.slane %v1327_v26, 4  ;;  %v1226_v62 = vsel %vm727_vm10, %v1148_v5, 0.0  ;;  %v1428_v13 = vperm.slane %v1327_v26, 5  ;;  %v1429_v3 = vperm.slane %v1327_v26, 6 }
 0x1f1   :  { %1807 = vst [vmem:[#allocation1] ss:$9 sm:$0xff] %v1423_v25  ;;  %1227 = vadd.xlane.f32.xlu0 %v1226_v62  ;;  %v1430_v42 = vperm.slane %v1327_v26, 7  ;;  %v3440_v26 = vadd.f32 %v1112_v22, %v1060_v15  ;;  %v1061_v25 = vmul.f32 %v973_v63, %v51_v30  ;;  %v41_v63 = vld [vmem:[%s3994_s1 + $0x90] sm:$0xff] }
 0x1f2   :  { %1809 = vst [vmem:[#allocation1 + $0x1] ss:$9 sm:$0xff] %v1424_v50  ;;  %1212 = vadd.xlane.f32.xlu2 %v1211_v55 }
 0x1f3   :  { %1811 = vst [vmem:[#allocation1 + $0x2] ss:$9 sm:$0xff] %v1425_v9  ;;  %v937_v6 = vpop.f32.mrf.mxu1  ;;  %v979_v9 = vpop.f32.mrf.mxu3 }
 0x1f4   :  { %1813 = vst [vmem:[#allocation1 + $0x3] ss:$9 sm:$0xff] %v1426_v57  ;;  %v1049_v37 = vmul.f32 %v937_v6, %v39_v46  ;;  %1224 = vadd.xlane.f32.xlu1 %v1223_v35  ;;  %v1186_v16 = vpop.xlane.xlu1 %1185 }
 0x1f5   :  { %1815 = vst [vmem:[#allocation1 + $0x4] ss:$9 sm:$0xff] %v1427_v48  ;;  %v1328_v21 = vadd.f32 %v3408_v32, %v1186_v16  ;;  %v1113_v48 = vmul.f32 %v3208_v49, %v3181_v43  ;;  %v52_v43 = vld [vmem:[%s3994_s1 + $0xe8] sm:$0xff] }
 0x1f6   :  { %1817 = vst [vmem:[#allocation1 + $0x5] ss:$9 sm:$0xff] %v1428_v13  ;;  %v1149_v1 = vadd.f32 %v1101_v29, %v1049_v37  ;;  %v1103_v37 = vmul.f32 %v3208_v49, %v3247_v14  ;;  %v53_v14 = vld [vmem:[%s3994_s1 + $0xf0] sm:$0xff] }
 0x1f7   :  { %1819 = vst [vmem:[#allocation1 + $0x6] ss:$9 sm:$0xff] %v1429_v3  ;;  %v1431_v33 = vperm.slane %v1328_v21, 0  ;;  %v1432_v50 = vperm.slane %v1328_v21, 1  ;;  %v1433_v44 = vperm.slane %v1328_v21, 2  ;;  %v1434_v55 = vperm.slane %v1328_v21, 3 }
 0x1f8   :  { %1821 = vst [vmem:[#allocation1 + $0x7] ss:$9 sm:$0xff] %v1430_v42  ;;  %v1229_v41 = vsel %vm727_vm10, %v1149_v1, 0.0  ;;  %v1435_v36 = vperm.slane %v1328_v21, 4  ;;  %v1436_v13 = vperm.slane %v1328_v21, 5  ;;  %v3456_v3 = vadd.f32 %v1113_v48, %v1061_v25 }
 0x1f9   :  { %v1437_v6 = vperm.slane %v1328_v21, 6  ;;  %v1438_v29 = vperm.slane %v1328_v21, 7  ;;  %v1062_v1 = vmul.f32 %v976_v11, %v52_v43  ;;  %v42_v11 = vld [vmem:[%s3994_s1 + $0x98] sm:$0xff]  ;;  %v1115_v48 = vmul.f32 %v3208_v49, %v3197_v47 }
 0x1fa   :  { %1230 = vadd.xlane.f32.xlu2 %v1229_v41  ;;  %v1114_v41 = vmul.f32 %v3208_v49, %v3189_v45 }
 0x1fb   :  { %v940_v27 = vpop.f32.mrf.mxu1 }
 0x1fc   :  { %v1050_v5 = vmul.f32 %v940_v27, %v40_v58  ;;  %v1189_v15 = vpop.xlane.xlu2 %1188  ;;  %v3468_v58 = vpop.f32.mrf.mxu3  ;;  %v3471_v27 = vadd.f32 %v1114_v41, %v1062_v1 }
 0x1fd   :  { %v1329_v21 = vadd.f32 %v3408_v32, %v1189_v15 }
 0x1fe   :  { %v1150_v57 = vadd.f32 %v1102_v40, %v1050_v5  ;;  %v1063_v5 = vmul.f32 %v979_v9, %v53_v14  ;;  %v1105_v14 = vmul.f32 %v3208_v49, %v3278_v38 }
 0x1ff   :  { %v3449_v62 = vld [vmem:[#allocation1] sm:$0xff]  ;;  %v258_v46 = vpop.permute.xlu0 %257  ;;  %v1439_v40 = vperm.slane %v1329_v21, 0  ;;  %v1441_v25 = vperm.slane %v1329_v21, 2  ;;  %v1446_v9 = vperm.slane %v1329_v21, 7 }
 0x200   :  { %1823 = vst [vmem:[#allocation1] ss:$9 sm:$0xff] %v1431_v33  ;;  %vm310_vm3 = vcmp.eq.s32.totalorder %v258_v46, %v2930_v56  ;;  %v1232_v4 = vsel %vm727_vm10, %v1150_v57, 0.0  ;;  %v1440_v33 = vperm.slane %v1329_v21, 1  ;;  %v1442_v57 = vperm.slane %v1329_v21, 3 }
 0x201   :  { %1824 = vst [vmem:[#allocation1 + $0x1] ss:$9 sm:$0xff] %v1432_v50  ;;  %v2586_v35 = vsel %vm310_vm3, 1.0, %v2733_v59  ;;  %1233 = vadd.xlane.f32.xlu1 %v1232_v4  ;;  %v1443_v46 = vperm.slane %v1329_v21, 4  ;;  %vm2445_vm3 = vcmask 982912  }
 0x202   :  { %1825 = vst [vmem:[#allocation1 + $0x2] ss:$9 sm:$0xff] %v1433_v44  ;;  %2634 = vmatmul.msk.f32.gmra.mxu2 %vm417_vm0, %v2586_v35 }
 0x203   :  { %1826 = vst [vmem:[#allocation1 + $0x3] ss:$9 sm:$0xff] %v1434_v55  ;;  %v943_v42 = vpop.f32.mrf.mxu1  ;;  %v1104_v55 = vmul.f32 %v3208_v49, %v3264_v24  ;;  %v43_v24 = vld [vmem:[%s3994_s1 + $0xa0] sm:$0xff] }
 0x204   :  { %1827 = vst [vmem:[#allocation1 + $0x4] ss:$9 sm:$0xff] %v1435_v36  ;;  %v1051_v16 = vmul.f32 %v943_v42, %v41_v63  ;;  %v1444_v36 = vperm.slane %v1329_v21, 5  ;;  %v3485_v63 = vadd.f32 %v1115_v48, %v1063_v5  ;;  %v985_v43 = vpop.f32.mrf.mxu3  ;;  %v55_v42 = vld [vmem:[%s3994_s1 + $0x100] sm:$0xff] }
 0x205   :  { %1828 = vst [vmem:[#allocation1 + $0x5] ss:$9 sm:$0xff] %v1436_v13  ;;  %v1445_v13 = vperm.slane %v1329_v21, 6  ;;  %v1065_v21 = vmul.f32 %v985_v43, %v55_v42  ;;  %v1106_v42 = vmul.f32 %v3208_v49, %v3292_v60 }
 0x206   :  { %1829 = vst [vmem:[#allocation1 + $0x6] ss:$9 sm:$0xff] %v1437_v6  ;;  %v1151_v22 = vadd.f32 %v1103_v37, %v1051_v16  ;;  %v1192_v6 = vpop.xlane.xlu2 %1191 }
 0x207   :  { %1830 = vst [vmem:[#allocation1 + $0x7] ss:$9 sm:$0xff] %v1438_v29  ;;  %v1330_v47 = vadd.f32 %v3408_v32, %v1192_v6 }
 0x208   :  { %v1235_v30 = vsel %vm727_vm10, %v1151_v22, 0.0 }
 0x209   :  { %1236 = vadd.xlane.f32.xlu0 %v1235_v30  ;;  %v1447_v37 = vperm.slane %v1330_v47, 0  ;;  %v1448_v15 = vperm.slane %v1330_v47, 1  ;;  %v1449_v16 = vperm.slane %v1330_v47, 2  ;;  %v1450_v30 = vperm.slane %v1330_v47, 3 }
 0x20b   :  { %v946_v45 = vpop.f32.mrf.mxu1 }
 0x20c   :  { %v1052_v50 = vmul.f32 %v946_v45, %v42_v11  ;;  %v988_v1 = vpop.f32.mrf.mxu3  ;;  %v1451_v11 = vperm.slane %v1330_v47, 4  ;;  %v1452_v45 = vperm.slane %v1330_v47, 5 }
 0x20e   :  { %v3479_v44 = vld [vmem:[#allocation1] sm:$0xff]  ;;  %v1152_v4 = vadd.f32 %v1104_v55, %v1052_v50 }
 0x20f   :  { %1832 = vst [vmem:[#allocation1] ss:$9 sm:$0xff] %v1439_v40  ;;  %v1117_v40 = vmul.f32 %v3208_v49, %v3227_v0  ;;  %v56_v0 = vld [vmem:[%s3994_s1 + $0x108] sm:$0xff] }
 0x210   :  { %1833 = vst [vmem:[#allocation1 + $0x1] ss:$9 sm:$0xff] %v1440_v33  ;;  %v1238_v35 = vsel %vm727_vm10, %v1152_v4, 0.0  ;;  %v1453_v33 = vperm.slane %v1330_v47, 6  ;;  %v1118_v4 = vmul.f32 %v3208_v49, %v3241_v10 }
 0x211   :  { %1834 = vst [vmem:[#allocation1 + $0x2] ss:$9 sm:$0xff] %v1441_v25  ;;  %1239 = vadd.xlane.f32.xlu2 %v1238_v35  ;;  %v1454_v25 = vperm.slane %v1330_v47, 7  ;;  %v3501_v50 = vadd.f32 %v1117_v40, %v1065_v21 }
 0x212   :  { %1835 = vst [vmem:[#allocation1 + $0x3] ss:$9 sm:$0xff] %v1442_v57  ;;  %v1195_v57 = vpop.xlane.xlu1 %1194 }
 0x213   :  { %1836 = vst [vmem:[#allocation1 + $0x4] ss:$9 sm:$0xff] %v1443_v46  ;;  %v949_v29 = vpop.f32.mrf.mxu1  ;;  %v1331_v38 = vadd.f32 %v3408_v32, %v1195_v57  ;;  %v1066_v46 = vmul.f32 %v988_v1, %v56_v0  ;;  %v1107_v0 = vmul.f32 %v3208_v49, %v3306_v7 }
 0x214   :  { %1837 = vst [vmem:[#allocation1 + $0x5] ss:$9 sm:$0xff] %v1444_v36  ;;  %v1053_v22 = vmul.f32 %v949_v29, %v43_v24  ;;  %v3508_v55 = vpop.f32.mrf.mxu3  ;;  %v44_v36 = vld [vmem:[%s3994_s1 + $0xa8] sm:$0xff]  ;;  %v1198_v21 = vpop.xlane.xlu2 %1197 }
 0x215   :  { %1838 = vst [vmem:[#allocation1 + $0x6] ss:$9 sm:$0xff] %v1445_v13  ;;  %v1456_v43 = vperm.slane %v1331_v38, 1  ;;  %v1457_v6 = vperm.slane %v1331_v38, 2  ;;  %v3515_v47 = vadd.f32 %v1118_v4, %v1066_v46  ;;  %v1458_v29 = vperm.slane %v1331_v38, 3 }
 0x216   :  { %1839 = vst [vmem:[#allocation1 + $0x7] ss:$9 sm:$0xff] %v1446_v9  ;;  %v1153_v5 = vadd.f32 %v1105_v14, %v1053_v22  ;;  %v1455_v9 = vperm.slane %v1331_v38, 0  ;;  %v1462_v10 = vperm.slane %v1331_v38, 7  ;;  %v1332_v60 = vadd.f32 %v3408_v32, %v1198_v21  ;;  %v45_v14 = vld [vmem:[%s3994_s1 + $0xb0] sm:$0xff] }
 0x218   :  { %v1241_v48 = vsel %vm727_vm10, %v1153_v5, 0.0  ;;  %v1463_v40 = vperm.slane %v1332_v60, 0  ;;  %v1468_v46 = vperm.slane %v1332_v60, 5  ;;  %v1470_v4 = vperm.slane %v1332_v60, 7 }
 0x219   :  { %1242 = vadd.xlane.f32.xlu1 %v1241_v48  ;;  %v1466_v48 = vperm.slane %v1332_v60, 3 }
 0x21b   :  { %v952_v13 = vpop.f32.mrf.mxu1 }
 0x21c   :  { %v1054_v35 = vmul.f32 %v952_v13, %v44_v36  ;;  %v3521_v22 = vpop.f32.mrf.mxu3  ;;  %v1469_v36 = vperm.slane %v1332_v60, 6 }
 0x21d   :  { %v3495_v41 = vld [vmem:[#allocation1] sm:$0xff] }
 0x21e   :  { %1841 = vst [vmem:[#allocation1] ss:$9 sm:$0xff] %v1447_v37  ;;  %v1459_v37 = vperm.slane %v1331_v38, 4  ;;  %v1154_v1 = vadd.f32 %v1106_v42, %v1054_v35  ;;  %v46_v35 = vld [vmem:[%s3994_s1 + $0xb8] sm:$0xff] }
 0x21f   :  { %1842 = vst [vmem:[#allocation1 + $0x1] ss:$9 sm:$0xff] %v1448_v15  ;;  %v1460_v15 = vperm.slane %v1331_v38, 5 }
 0x220   :  { %1843 = vst [vmem:[#allocation1 + $0x2] ss:$9 sm:$0xff] %v1449_v16  ;;  %v1461_v16 = vperm.slane %v1331_v38, 6  ;;  %v1467_v38 = vperm.slane %v1332_v60, 4 }
 0x221   :  { %1844 = vst [vmem:[#allocation1 + $0x3] ss:$9 sm:$0xff] %v1450_v30  ;;  %v1244_v30 = vsel %vm727_vm10, %v1154_v1, 0.0 }
 0x222   :  { %1845 = vst [vmem:[#allocation1 + $0x4] ss:$9 sm:$0xff] %v1451_v11  ;;  %1245 = vadd.xlane.f32.xlu0 %v1244_v30  ;;  %v1108_v30 = vmul.f32 %v3208_v49, %v3320_v18 }
 0x223   :  { %1846 = vst [vmem:[#allocation1 + $0x5] ss:$9 sm:$0xff] %v1452_v45  ;;  %v955_v11 = vpop.f32.mrf.mxu1  ;;  %v1464_v45 = vperm.slane %v1332_v60, 1 }
 0x224   :  { %1847 = vst [vmem:[#allocation1 + $0x6] ss:$9 sm:$0xff] %v1453_v33  ;;  %v1465_v33 = vperm.slane %v1332_v60, 2  ;;  %v3528_v5 = vpop.f32.mrf.mxu3 }
 0x225   :  { %1848 = vst [vmem:[#allocation1 + $0x7] ss:$9 sm:$0xff] %v1454_v25  ;;  %v1055_v25 = vmul.f32 %v955_v11, %v45_v14  ;;  %v54_v11 = vld [vmem:[%s3994_s1 + $0xf8] sm:$0xff] }
 0x226   :  { %v1064_v18 = vmul.f32 %v3468_v58, %v54_v11  ;;  %v1109_v58 = vmul.f32 %v3208_v49, %v3139_v28  ;;  %v1259_v28 = vsel %vm727_vm10, %v3425_v17, 0.0 }
 0x227   :  { %v1155_v13 = vadd.f32 %v1107_v0, %v1055_v25  ;;  %v1265_v0 = vsel %vm727_vm10, %v3456_v3, 0.0 }
 0x22c   :  { %v3517_v24 = vld [vmem:[#allocation1] sm:$0xff]  ;;  %v3536_v7 = vpop.f32.mrf.mxu3 }
 0x22d   :  { %1850 = vst [vmem:[#allocation1] ss:$9 sm:$0xff] %v1455_v9  ;;  %v1201_v9 = vpop.xlane.xlu1 %1200 }
 0x22e   :  { %1851 = vst [vmem:[#allocation1 + $0x1] ss:$9 sm:$0xff] %v1456_v43  ;;  %v1247_v43 = vsel %vm727_vm10, %v1155_v13, 0.0 }
 0x22f   :  { %1852 = vst [vmem:[#allocation1 + $0x2] ss:$9 sm:$0xff] %v1457_v6  ;;  %1248 = vadd.xlane.f32.xlu2 %v1247_v43  ;;  %v1333_v6 = vadd.f32 %v3408_v32, %v1201_v9 }
 0x230   :  { %1853 = vst [vmem:[#allocation1 + $0x3] ss:$9 sm:$0xff] %v1458_v29  ;;  %v958_v29 = vpop.f32.mrf.mxu1 }
 0x231   :  { %1854 = vst [vmem:[#allocation1 + $0x4] ss:$9 sm:$0xff] %v1459_v37  ;;  %v1471_v42 = vperm.slane %v1333_v6, 0  ;;  %v1472_v37 = vperm.slane %v1333_v6, 1  ;;  %v1056_v1 = vmul.f32 %v958_v29, %v46_v35  ;;  %v1474_v21 = vperm.slane %v1333_v6, 3 }
 0x232   :  { %1855 = vst [vmem:[#allocation1 + $0x5] ss:$9 sm:$0xff] %v1460_v15  ;;  %v1256_v15 = vsel %vm727_vm10, %v3400_v61, 0.0  ;;  %v1475_v60 = vperm.slane %v1333_v6, 4  ;;  %v1476_v14 = vperm.slane %v1333_v6, 5  ;;  %v1204_v61 = vpop.xlane.xlu2 %1203 }
 0x233   :  { %1856 = vst [vmem:[#allocation1 + $0x6] ss:$9 sm:$0xff] %v1461_v16  ;;  %v1473_v16 = vperm.slane %v1333_v6, 2 }
 0x234   :  { %1857 = vst [vmem:[#allocation1 + $0x7] ss:$9 sm:$0xff] %v1462_v10  ;;  %v3550_v25 = vpop.f32.mrf.mxu3 }
 0x235   :  { %v261_v9 = vpop.permute.xlu1 %260 }
 0x236   :  { %vm311_vm4 = vcmp.eq.s32.totalorder %v261_v9, %v2930_v56 }
 0x237   :  { %1257 = vadd.xlane.f32.xlu2 %v1256_v15  ;;  %v2587_v43 = vsel %vm311_vm4, 1.0, %v2733_v59  ;;  %vm2449_vm4 = vcmask 1048512  }
 0x238   :  { %v961_v13 = vpop.f32.mrf.mxu1  ;;  %2635 = vmatmul.msk.f32.gmra.mxu2 %vm417_vm0, %v2587_v43 }
 0x23b   :  { %v3530_v57 = vld [vmem:[#allocation1] sm:$0xff] }
 0x23c   :  { %1859 = vst [vmem:[#allocation1] ss:$9 sm:$0xff] %v1463_v40  ;;  %v1477_v40 = vperm.slane %v1333_v6, 6  ;;  %v3570_v29 = vpop.f32.mrf.mxu3 }
 0x23d   :  { %1860 = vst [vmem:[#allocation1 + $0x1] ss:$9 sm:$0xff] %v1464_v45  ;;  %v1156_v45 = vadd.f32 %v1108_v30, %v1056_v1 }
 0x23e   :  { %1861 = vst [vmem:[#allocation1 + $0x2] ss:$9 sm:$0xff] %v1465_v33  ;;  %v1478_v33 = vperm.slane %v1333_v6, 7 }
 0x23f   :  { %1862 = vst [vmem:[#allocation1 + $0x3] ss:$9 sm:$0xff] %v1466_v48  ;;  %v1250_v48 = vsel %vm727_vm10, %v1156_v45, 0.0  ;;  %1266 = vadd.xlane.f32.xlu2 %v1265_v0  ;;  %v60_v45 = vld [vmem:[%s3994_s1 + $0x128] sm:$0xff]  ;;  %v1262_v0 = vsel %vm727_vm10, %v3440_v26, 0.0 }
 0x240   :  { %1863 = vst [vmem:[#allocation1 + $0x4] ss:$9 sm:$0xff] %v1467_v38  ;;  %1251 = vadd.xlane.f32.xlu1 %v1250_v48  ;;  %v1116_v38 = vmul.f32 %v3208_v49, %v3213_v52  ;;  %v57_v52 = vld [vmem:[%s3994_s1 + $0x110] sm:$0xff]  ;;  %v1207_v48 = vpop.xlane.xlu0 %1206 }
 0x241   :  { %1864 = vst [vmem:[#allocation1 + $0x5] ss:$9 sm:$0xff] %v1468_v46  ;;  %v1334_v46 = vadd.f32 %v3408_v32, %v1204_v61 }
 0x242   :  { %1865 = vst [vmem:[#allocation1 + $0x6] ss:$9 sm:$0xff] %v1469_v36  ;;  %v47_v36 = vld [vmem:[%s3994_s1 + $0xc0] sm:$0xff]  ;;  %v1164_v3 = vadd.f32 %v1116_v38, %v1064_v18  ;;  %v1268_v18 = vsel %vm727_vm10, %v3471_v27, 0.0  ;;  %v1070_v38 = vmul.f32 %v3536_v7, %v60_v45  ;;  %v58_v27 = vld [vmem:[%s3994_s1 + $0x118] sm:$0xff] }
 0x243   :  { %1866 = vst [vmem:[#allocation1 + $0x7] ss:$9 sm:$0xff] %v1470_v4  ;;  %v1057_v4 = vmul.f32 %v961_v13, %v47_v36  ;;  %v1479_v35 = vperm.slane %v1334_v46, 0  ;;  %v1481_v1 = vperm.slane %v1334_v46, 2  ;;  %v1483_v11 = vperm.slane %v1334_v46, 4  ;;  %v63_v7 = vld [vmem:[%s3994_s1 + $0x140] sm:$0xff] }
 0x244   :  { %v1484_v17 = vperm.slane %v1334_v46, 5  ;;  %v1486_v61 = vperm.slane %v1334_v46, 7  ;;  %v1122_v36 = vmul.f32 %v3208_v49, %v3300_v2  ;;  %v1068_v9 = vmul.f32 %v3521_v22, %v58_v27 }
 0x245   :  { %v1157_v6 = vadd.f32 %v1109_v58, %v1057_v4  ;;  %v1271_v2 = vsel %vm727_vm10, %v3485_v63, 0.0  ;;  %v59_v63 = vld [vmem:[%s3994_s1 + $0x120] sm:$0xff] }
 0x246   :  { %v1170_v13 = vadd.f32 %v1122_v36, %v1070_v38 }
 0x247   :  { %v1253_v15 = vsel %vm727_vm10, %v1157_v6, 0.0 }
 0x248   :  { %1260 = vadd.xlane.f32.xlu1 %v1259_v28  ;;  %1254 = vadd.xlane.f32.xlu0 %v1253_v15 }
 0x24a   :  { %v3543_v10 = vld [vmem:[#allocation1] sm:$0xff] }
 0x24b   :  { %1868 = vst [vmem:[#allocation1] ss:$9 sm:$0xff] %v1471_v42  ;;  %v1480_v42 = vperm.slane %v1334_v46, 1 }
 0x24c   :  { %1869 = vst [vmem:[#allocation1 + $0x1] ss:$9 sm:$0xff] %v1472_v37  ;;  %v264_v37 = vpop.permute.xlu2 %263 }
 0x24d   :  { %1870 = vst [vmem:[#allocation1 + $0x2] ss:$9 sm:$0xff] %v1473_v16  ;;  %v1067_v16 = vmul.f32 %v3508_v55, %v57_v52  ;;  %vm312_vm5 = vcmp.eq.s32.totalorder %v264_v37, %v2930_v56  ;;  %v1277_v52 = vsel %vm727_vm10, %v3501_v50, 0.0  ;;  %v1120_v37 = vmul.f32 %v3208_v49, %v3272_v31 }
 0x24e   :  { %1871 = vst [vmem:[#allocation1 + $0x3] ss:$9 sm:$0xff] %v1474_v21  ;;  %v1274_v21 = vsel %vm727_vm10, %v1164_v3, 0.0  ;;  %v1125_v50 = vmul.f32 %v3208_v49, %v3337_v34  ;;  %v1069_v34 = vmul.f32 %v3528_v5, %v59_v63 }
 0x24f   :  { %1872 = vst [vmem:[#allocation1 + $0x4] ss:$9 sm:$0xff] %v1475_v60  ;;  %v1482_v60 = vperm.slane %v1334_v46, 3  ;;  %1275 = vadd.xlane.f32.xlu2 %v1274_v21 }
 0x250   :  { %1873 = vst [vmem:[#allocation1 + $0x5] ss:$9 sm:$0xff] %v1476_v14  ;;  %v1119_v14 = vmul.f32 %v3208_v49, %v3258_v19  ;;  %v1009_v19 = vpop.f32.mrf.mxu3  ;;  %1269 = vadd.xlane.f32.xlu1 %v1268_v18  ;;  %1263 = vadd.xlane.f32.xlu0 %v1262_v0 }
 0x251   :  { %1874 = vst [vmem:[#allocation1 + $0x6] ss:$9 sm:$0xff] %v1477_v40  ;;  %v1485_v40 = vperm.slane %v1334_v46, 6 }
 0x252   :  { %1875 = vst [vmem:[#allocation1 + $0x7] ss:$9 sm:$0xff] %v1478_v33  ;;  %v1167_v55 = vadd.f32 %v1119_v14, %v1067_v16  ;;  %v2588_v33 = vsel %vm312_vm5, 1.0, %v2733_v59  ;;  %v1335_v59 = vadd.f32 %v3408_v32, %v1207_v48  ;;  %v61_v16 = vld [vmem:[%s3994_s1 + $0x130] sm:$0xff]  ;;  %vm2515_vm5 = vcmask 1040384  }
 0x253   :  { %2636 = vmatmul.msk.f32.gmra.mxu2 %vm417_vm0, %v2588_v33  ;;  %v1071_v14 = vmul.f32 %v3550_v25, %v61_v16  ;;  %vm2393_vm0 = vcmask 130112  }
 0x254   :  { %v1283_v46 = vsel %vm727_vm10, %v1167_v55, 0.0  ;;  %v1487_v26 = vperm.slane %v1335_v59, 0  ;;  %v1488_v58 = vperm.slane %v1335_v59, 1  ;;  %v1489_v3 = vperm.slane %v1335_v59, 2 }
 0x255   :  { %v1490_v6 = vperm.slane %v1335_v59, 3  ;;  %v1491_v28 = vperm.slane %v1335_v59, 4  ;;  %v1492_v22 = vperm.slane %v1335_v59, 5  ;;  %v1493_v15 = vperm.slane %v1335_v59, 6 }
 0x256   :  { %v1494_v31 = vperm.slane %v1335_v59, 7  ;;  %v1280_v55 = vsel %vm727_vm10, %v3515_v47, 0.0  ;;  %v64_v47 = vld [vmem:[%s3994_s1 + $0x148] sm:$0xff] }
 0x257   :  { %1284 = vadd.xlane.f32.xlu2 %v1283_v46 }
 0x258   :  { %v1012_v4 = vpop.f32.mrf.mxu3  ;;  %1278 = vadd.xlane.f32.xlu1 %v1277_v52  ;;  %1272 = vadd.xlane.f32.xlu0 %v1271_v2 }
 0x259   :  { %v3577_v30 = vld [vmem:[#allocation1] sm:$0xff] }
 0x25a   :  { %1877 = vst [vmem:[#allocation1] ss:$9 sm:$0xff] %v1479_v35  ;;  %v1073_v35 = vmul.f32 %v1009_v19, %v63_v7  ;;  %v3643_v19 = vld [vmem:[%s3998_s5] ss:$0 sm:$0xff] }
 0x25b   :  { %1878 = vst [vmem:[#allocation1 + $0x1] ss:$9 sm:$0xff] %v1480_v42  ;;  %v1292_v42 = vsel %vm727_vm10, %v1170_v13, 0.0  ;;  %v1128_v18 = vmul.f32 %v3643_v19, %v3364_v8  ;;  %v1074_v13 = vmul.f32 %v1012_v4, %v64_v47  ;;  %v1124_v8 = vmul.f32 %v3643_v19, %v3328_v23 }
 0x25c   :  { %1879 = vst [vmem:[#allocation1 + $0x2] ss:$9 sm:$0xff] %v1481_v1  ;;  %v1168_v1 = vadd.f32 %v1120_v37, %v1068_v9  ;;  %v1173_v21 = vadd.f32 %v1125_v50, %v1073_v35  ;;  %v1126_v9 = vmul.f32 %v3643_v19, %v3344_v39  ;;  %v67_v50 = vld [vmem:[%s3994_s1 + $0x160] sm:$0xff]  ;;  %v1127_v63 = vmul.f32 %v3643_v19, %v3354_v54 }
 0x25d   :  { %1880 = vst [vmem:[#allocation1 + $0x3] ss:$9 sm:$0xff] %v1482_v60 }
 0x25e   :  { %1881 = vst [vmem:[#allocation1 + $0x4] ss:$9 sm:$0xff] %v1483_v11  ;;  %v1301_v5 = vsel %vm727_vm10, %v1173_v21, 0.0  ;;  %v1174_v4 = vadd.f32 %v1126_v9, %v1074_v13 }
 0x25f   :  { %1882 = vst [vmem:[#allocation1 + $0x5] ss:$9 sm:$0xff] %v1484_v17  ;;  %1293 = vadd.xlane.f32.xlu2 %v1292_v42  ;;  %v1210_v60 = vpop.xlane.xlu1 %1209  ;;  %v1121_v17 = vmul.f32 %v3208_v49, %v3286_v53  ;;  %v62_v53 = vld [vmem:[%s3994_s1 + $0x138] sm:$0xff]  ;;  %v65_v42 = vld [vmem:[%s3994_s1 + $0x150] sm:$0xff] }
 0x260   :  { %1883 = vst [vmem:[#allocation1 + $0x6] ss:$9 sm:$0xff] %v1485_v40  ;;  %v1015_v11 = vpop.f32.mrf.mxu3  ;;  %v1286_v40 = vsel %vm727_vm10, %v1168_v1, 0.0  ;;  %1281 = vadd.xlane.f32.xlu0 %v1280_v55  ;;  %v1336_v25 = vadd.f32 %v3408_v32, %v1210_v60  ;;  %v1072_v27 = vmul.f32 %v3570_v29, %v62_v53  ;;  %v1304_v37 = vsel %vm727_vm10, %v1174_v4, 0.0 }
 0x261   :  { %1884 = vst [vmem:[#allocation1 + $0x7] ss:$9 sm:$0xff] %v1486_v61  ;;  %v1123_v61 = vmul.f32 %v3208_v49, %v3314_v12  ;;  %1287 = vadd.xlane.f32.xlu1 %v1286_v40  ;;  %v1169_v33 = vadd.f32 %v1121_v17, %v1069_v34  ;;  %v66_v49 = vld [vmem:[%s3994_s1 + $0x158] sm:$0xff]  ;;  %v1075_v39 = vmul.f32 %v1015_v11, %v65_v42 }
 0x262   :  { %v1495_v12 = vperm.slane %v1336_v25, 0  ;;  %v1496_v48 = vperm.slane %v1336_v25, 1  ;;  %v1497_v59 = vperm.slane %v1336_v25, 2  ;;  %v1498_v7 = vperm.slane %v1336_v25, 3 }
 0x263   :  { %v1171_v45 = vadd.f32 %v1123_v61, %v1071_v14  ;;  %v1289_v46 = vsel %vm727_vm10, %v1169_v33, 0.0  ;;  %v1501_v2 = vperm.slane %v1336_v25, 6  ;;  %v1172_v35 = vadd.f32 %v1124_v8, %v1072_v27 }
 0x264   :  { %v1175_v1 = vadd.f32 %v1127_v63, %v1075_v39 }
 0x265   :  { %v1295_v38 = vsel %vm727_vm10, %v1171_v45, 0.0  ;;  %v1213_v23 = vpop.xlane.xlu2 %1212 }
 0x266   :  { %v1307_v17 = vsel %vm727_vm10, %v1175_v1, 0.0 }
 0x267   :  { %1302 = vadd.xlane.f32.xlu2 %v1301_v5 }
 0x268   :  { %v3607_v43 = vld [vmem:[#allocation1] sm:$0xff]  ;;  %v1018_v0 = vpop.f32.mrf.mxu3  ;;  %1290 = vadd.xlane.f32.xlu0 %v1289_v46 }
 0x269   :  { %1886 = vst [vmem:[#allocation1] ss:$9 sm:$0xff] %v1487_v26  ;;  %v1076_v26 = vmul.f32 %v1018_v0, %v66_v49  ;;  %1296 = vadd.xlane.f32.xlu1 %v1295_v38 }
 0x26a   :  { %1887 = vst [vmem:[#allocation1 + $0x1] ss:$9 sm:$0xff] %v1488_v58  ;;  %v1499_v58 = vperm.slane %v1336_v25, 4 }
 0x26b   :  { %1888 = vst [vmem:[#allocation1 + $0x2] ss:$9 sm:$0xff] %v1489_v3  ;;  %v1500_v3 = vperm.slane %v1336_v25, 5  ;;  %v1176_v52 = vadd.f32 %v1128_v18, %v1076_v26 }
 0x26c   :  { %1889 = vst [vmem:[#allocation1 + $0x3] ss:$9 sm:$0xff] %v1490_v6  ;;  %v1502_v6 = vperm.slane %v1336_v25, 7  ;;  %v1216_v25 = vpop.xlane.xlu0 %1215 }
 0x26d   :  { %1890 = vst [vmem:[#allocation1 + $0x4] ss:$9 sm:$0xff] %v1491_v28  ;;  %v1310_v29 = vsel %vm727_vm10, %v1176_v52, 0.0  ;;  %v1298_v28 = vsel %vm727_vm10, %v1172_v35, 0.0  ;;  %v1338_v45 = vadd.f32 %v3408_v32, %v1216_v25 }
 0x26e   :  { %1891 = vst [vmem:[#allocation1 + $0x5] ss:$9 sm:$0xff] %v1492_v22 }
 0x26f   :  { %1892 = vst [vmem:[#allocation1 + $0x6] ss:$9 sm:$0xff] %v1493_v15  ;;  %1311 = vadd.xlane.f32.xlu2 %v1310_v29  ;;  %v1337_v15 = vadd.f32 %v3408_v32, %v1213_v23  ;;  %v1511_v33 = vperm.slane %v1338_v45, 0  ;;  %v1512_v53 = vperm.slane %v1338_v45, 1  ;;  %v1513_v49 = vperm.slane %v1338_v45, 2 }
 0x270   :  { %1893 = vst [vmem:[#allocation1 + $0x7] ss:$9 sm:$0xff] %v1494_v31  ;;  %v1021_v22 = vpop.f32.mrf.mxu3  ;;  %1299 = vadd.xlane.f32.xlu0 %v1298_v28  ;;  %v1129_v31 = vmul.f32 %v3643_v19, %v3374_v20  ;;  %v1516_v18 = vperm.slane %v1338_v45, 5  ;;  %v1517_v0 = vperm.slane %v1338_v45, 6  ;;  %v1518_v38 = vperm.slane %v1338_v45, 7 }
 0x271   :  { %1305 = vadd.xlane.f32.xlu1 %v1304_v37  ;;  %v1077_v16 = vmul.f32 %v1021_v22, %v67_v50  ;;  %v1503_v21 = vperm.slane %v1337_v15, 0  ;;  %v1504_v34 = vperm.slane %v1337_v15, 1  ;;  %v1505_v14 = vperm.slane %v1337_v15, 2 }
 0x272   :  { %v1506_v40 = vperm.slane %v1337_v15, 3  ;;  %v1507_v54 = vperm.slane %v1337_v15, 4  ;;  %v1508_v55 = vperm.slane %v1337_v15, 5  ;;  %v1509_v61 = vperm.slane %v1337_v15, 6 }
 0x273   :  { %v1177_v11 = vadd.f32 %v1129_v31, %v1077_v16  ;;  %v1510_v5 = vperm.slane %v1337_v15, 7 }
 0x274   :  { %v1219_v46 = vpop.xlane.xlu0 %1218 }
 0x275   :  { %v1313_v20 = vsel %vm727_vm10, %v1177_v11, 0.0 }
 0x277   :  { %v3649_v36 = vld [vmem:[#allocation1] sm:$0xff] }
 0x278   :  { %1895 = vst [vmem:[#allocation1] ss:$9 sm:$0xff] %v1495_v12  ;;  %1308 = vadd.xlane.f32.xlu0 %v1307_v17  ;;  %v1514_v12 = vperm.slane %v1338_v45, 3 }
 0x279   :  { %1896 = vst [vmem:[#allocation1 + $0x1] ss:$9 sm:$0xff] %v1496_v48  ;;  %1314 = vadd.xlane.f32.xlu1 %v1313_v20  ;;  %v1515_v48 = vperm.slane %v1338_v45, 4 }
 0x27a   :  { %1897 = vst [vmem:[#allocation1 + $0x2] ss:$9 sm:$0xff] %v1497_v59  ;;  %v1339_v59 = vadd.f32 %v3408_v32, %v1219_v46 }
 0x27b   :  { %1898 = vst [vmem:[#allocation1 + $0x3] ss:$9 sm:$0xff] %v1498_v7 }
 0x27c   :  { %1899 = vst [vmem:[#allocation1 + $0x4] ss:$9 sm:$0xff] %v1499_v58  ;;  %v1519_v27 = vperm.slane %v1339_v59, 0  ;;  %v1520_v13 = vperm.slane %v1339_v59, 1  ;;  %v1521_v7 = vperm.slane %v1339_v59, 2  ;;  %v1522_v58 = vperm.slane %v1339_v59, 3 }
 0x27d   :  { %1900 = vst [vmem:[#allocation1 + $0x5] ss:$9 sm:$0xff] %v1500_v3  ;;  %v1523_v8 = vperm.slane %v1339_v59, 4  ;;  %v1524_v9 = vperm.slane %v1339_v59, 5  ;;  %v1525_v3 = vperm.slane %v1339_v59, 6  ;;  %v1526_v52 = vperm.slane %v1339_v59, 7 }
 0x27e   :  { %1901 = vst [vmem:[#allocation1 + $0x6] ss:$9 sm:$0xff] %v1501_v2  ;;  %v1222_v2 = vpop.xlane.xlu0 %1221 }
 0x27f   :  { %1902 = vst [vmem:[#allocation1 + $0x7] ss:$9 sm:$0xff] %v1502_v6  ;;  %v1340_v6 = vadd.f32 %v3408_v32, %v1222_v2 }
 0x281   :  { %v1527_v29 = vperm.slane %v1340_v6, 0  ;;  %v1528_v4 = vperm.slane %v1340_v6, 1  ;;  %v1529_v35 = vperm.slane %v1340_v6, 2  ;;  %v1530_v42 = vperm.slane %v1340_v6, 3 }
 0x282   :  { %v1531_v23 = vperm.slane %v1340_v6, 4  ;;  %v1532_v39 = vperm.slane %v1340_v6, 5  ;;  %v1533_v37 = vperm.slane %v1340_v6, 6  ;;  %v1534_v28 = vperm.slane %v1340_v6, 7 }
 0x286   :  { %v3670_v60 = vld [vmem:[#allocation1] sm:$0xff]  ;;  %v1228_v17 = vpop.xlane.xlu0 %1227 }
 0x287   :  { %1904 = vst [vmem:[#allocation1] ss:$9 sm:$0xff] %v1503_v21 }
 0x288   :  { %1905 = vst [vmem:[#allocation1 + $0x1] ss:$9 sm:$0xff] %v1504_v34  ;;  %v3688_v34 = vpop.f32.mrf.mxu2 }
 0x289   :  { %1906 = vst [vmem:[#allocation1 + $0x2] ss:$9 sm:$0xff] %v1505_v14  ;;  %2682 = vmatmul.msk.f32.gmra.mxu3 %vm727_vm10, %v3688_v34 }
 0x28a   :  { %1907 = vst [vmem:[#allocation1 + $0x3] ss:$9 sm:$0xff] %v1506_v40  ;;  %v1342_v40 = vadd.f32 %v3408_v32, %v1228_v17 }
 0x28b   :  { %1908 = vst [vmem:[#allocation1 + $0x4] ss:$9 sm:$0xff] %v1507_v54 }
 0x28c   :  { %1909 = vst [vmem:[#allocation1 + $0x5] ss:$9 sm:$0xff] %v1508_v55  ;;  %v1543_v54 = vperm.slane %v1342_v40, 0  ;;  %v1544_v55 = vperm.slane %v1342_v40, 1  ;;  %v1545_v20 = vperm.slane %v1342_v40, 2  ;;  %v1547_v25 = vperm.slane %v1342_v40, 4 }
 0x28d   :  { %1910 = vst [vmem:[#allocation1 + $0x6] ss:$9 sm:$0xff] %v1509_v61  ;;  %v1548_v45 = vperm.slane %v1342_v40, 5 }
 0x28e   :  { %1911 = vst [vmem:[#allocation1 + $0x7] ss:$9 sm:$0xff] %v1510_v5  ;;  %v1546_v5 = vperm.slane %v1342_v40, 3 }
 0x292   :  { %2253 = vperm.xlu1 %2701, %v3495_v41  }
 0x295   :  { %v3675_v47 = vld [vmem:[#allocation1] sm:$0xff] }
 0x296   :  { %1913 = vst [vmem:[#allocation1] ss:$9 sm:$0xff] %v1511_v33  ;;  %v1549_v33 = vperm.slane %v1342_v40, 6 }
 0x297   :  { %1914 = vst [vmem:[#allocation1 + $0x1] ss:$9 sm:$0xff] %v1512_v53  ;;  %v1550_v53 = vperm.slane %v1342_v40, 7 }
 0x298   :  { %1915 = vst [vmem:[#allocation1 + $0x2] ss:$9 sm:$0xff] %v1513_v49  ;;  %v1231_v49 = vpop.xlane.xlu2 %1230 }
 0x299   :  { %1916 = vst [vmem:[#allocation1 + $0x3] ss:$9 sm:$0xff] %v1514_v12  ;;  %v1343_v12 = vadd.f32 %v3408_v32, %v1231_v49 }
 0x29a   :  { %1917 = vst [vmem:[#allocation1 + $0x4] ss:$9 sm:$0xff] %v1515_v48  ;;  %2265 = vperm.xlu1 %2701, %v3577_v30   ;;  %v1225_v30 = vpop.xlane.xlu1 %1224 }
 0x29b   :  { %1918 = vst [vmem:[#allocation1 + $0x5] ss:$9 sm:$0xff] %v1516_v18  ;;  %v1341_v50 = vadd.f32 %v3408_v32, %v1225_v30  ;;  %v1551_v48 = vperm.slane %v1343_v12, 0  ;;  %v1554_v46 = vperm.slane %v1343_v12, 3  ;;  %v1555_v59 = vperm.slane %v1343_v12, 4 }
 0x29c   :  { %1919 = vst [vmem:[#allocation1 + $0x6] ss:$9 sm:$0xff] %v1517_v0  ;;  %v1552_v0 = vperm.slane %v1343_v12, 1 }
 0x29d   :  { %1920 = vst [vmem:[#allocation1 + $0x7] ss:$9 sm:$0xff] %v1518_v38  ;;  %v1535_v22 = vperm.slane %v1341_v50, 0  ;;  %v1536_v63 = vperm.slane %v1341_v50, 1  ;;  %v1537_v16 = vperm.slane %v1341_v50, 2  ;;  %v1538_v1 = vperm.slane %v1341_v50, 3 }
 0x29e   :  { %v1539_v31 = vperm.slane %v1341_v50, 4  ;;  %v1540_v21 = vperm.slane %v1341_v50, 5  ;;  %v1541_v14 = vperm.slane %v1341_v50, 6  ;;  %v1542_v11 = vperm.slane %v1341_v50, 7 }
 0x29f   :  { %v1553_v38 = vperm.slane %v1343_v12, 2 }
 0x2a4   :  { %v3678_v26 = vld [vmem:[#allocation1] sm:$0xff] }
 0x2a5   :  { %1922 = vst [vmem:[#allocation1] ss:$9 sm:$0xff] %v1519_v27  ;;  %v1556_v27 = vperm.slane %v1343_v12, 5 }
 0x2a6   :  { %1923 = vst [vmem:[#allocation1 + $0x1] ss:$9 sm:$0xff] %v1520_v13  ;;  %v1557_v13 = vperm.slane %v1343_v12, 6 }
 0x2a7   :  { %1924 = vst [vmem:[#allocation1 + $0x2] ss:$9 sm:$0xff] %v1521_v7  ;;  %v1558_v7 = vperm.slane %v1343_v12, 7 }
 0x2a8   :  { %1925 = vst [vmem:[#allocation1 + $0x3] ss:$9 sm:$0xff] %v1522_v58  ;;  %v1234_v58 = vpop.xlane.xlu1 %1233 }
 0x2a9   :  { %1926 = vst [vmem:[#allocation1 + $0x4] ss:$9 sm:$0xff] %v1523_v8  ;;  %v1344_v8 = vadd.f32 %v3408_v32, %v1234_v58 }
 0x2aa   :  { %1927 = vst [vmem:[#allocation1 + $0x5] ss:$9 sm:$0xff] %v1524_v9 }
 0x2ab   :  { %1928 = vst [vmem:[#allocation1 + $0x6] ss:$9 sm:$0xff] %v1525_v3  ;;  %v1559_v9 = vperm.slane %v1344_v8, 0  ;;  %v1561_v2 = vperm.slane %v1344_v8, 2  ;;  %v1562_v6 = vperm.slane %v1344_v8, 3 }
 0x2ac   :  { %1929 = vst [vmem:[#allocation1 + $0x7] ss:$9 sm:$0xff] %v1526_v52  ;;  %v1560_v52 = vperm.slane %v1344_v8, 1 }
 0x2b3   :  { %v3683_v41 = vld [vmem:[#allocation1] sm:$0xff] }
 0x2b4   :  { %1931 = vst [vmem:[#allocation1] ss:$9 sm:$0xff] %v1527_v29  ;;  %v1563_v29 = vperm.slane %v1344_v8, 4 }
 0x2b5   :  { %1932 = vst [vmem:[#allocation1 + $0x1] ss:$9 sm:$0xff] %v1528_v4  ;;  %v1564_v4 = vperm.slane %v1344_v8, 5 }
 0x2b6   :  { %1933 = vst [vmem:[#allocation1 + $0x2] ss:$9 sm:$0xff] %v1529_v35  ;;  %v1565_v35 = vperm.slane %v1344_v8, 6 }
 0x2b7   :  { %1934 = vst [vmem:[#allocation1 + $0x3] ss:$9 sm:$0xff] %v1530_v42  ;;  %v1566_v42 = vperm.slane %v1344_v8, 7 }
 0x2b8   :  { %1935 = vst [vmem:[#allocation1 + $0x4] ss:$9 sm:$0xff] %v1531_v23  ;;  %v1237_v23 = vpop.xlane.xlu0 %1236 }
 0x2b9   :  { %1936 = vst [vmem:[#allocation1 + $0x5] ss:$9 sm:$0xff] %v1532_v39  ;;  %v1345_v39 = vadd.f32 %v3408_v32, %v1237_v23 }
 0x2ba   :  { %1937 = vst [vmem:[#allocation1 + $0x6] ss:$9 sm:$0xff] %v1533_v37 }
 0x2bb   :  { %1938 = vst [vmem:[#allocation1 + $0x7] ss:$9 sm:$0xff] %v1534_v28  ;;  %v1567_v37 = vperm.slane %v1345_v39, 0  ;;  %v1568_v30 = vperm.slane %v1345_v39, 1  ;;  %v1569_v50 = vperm.slane %v1345_v39, 2 }
 0x2c2   :  { %v3686_v15 = vld [vmem:[#allocation1] sm:$0xff] }
 0x2c3   :  { %1940 = vst [vmem:[#allocation1] ss:$9 sm:$0xff] %v1535_v22  ;;  %v1570_v22 = vperm.slane %v1345_v39, 3 }
 0x2c4   :  { %1941 = vst [vmem:[#allocation1 + $0x1] ss:$9 sm:$0xff] %v1536_v63  ;;  %v1571_v63 = vperm.slane %v1345_v39, 4 }
 0x2c5   :  { %1942 = vst [vmem:[#allocation1 + $0x2] ss:$9 sm:$0xff] %v1537_v16  ;;  %v1572_v16 = vperm.slane %v1345_v39, 5 }
 0x2c6   :  { %1943 = vst [vmem:[#allocation1 + $0x3] ss:$9 sm:$0xff] %v1538_v1  ;;  %v1573_v1 = vperm.slane %v1345_v39, 6 }
 0x2c7   :  { %1944 = vst [vmem:[#allocation1 + $0x4] ss:$9 sm:$0xff] %v1539_v31  ;;  %v1574_v31 = vperm.slane %v1345_v39, 7 }
 0x2c8   :  { %1945 = vst [vmem:[#allocation1 + $0x5] ss:$9 sm:$0xff] %v1540_v21  ;;  %v1240_v21 = vpop.xlane.xlu2 %1239 }
 0x2c9   :  { %1946 = vst [vmem:[#allocation1 + $0x6] ss:$9 sm:$0xff] %v1541_v14  ;;  %v1346_v14 = vadd.f32 %v3408_v32, %v1240_v21 }
 0x2ca   :  { %1947 = vst [vmem:[#allocation1 + $0x7] ss:$9 sm:$0xff] %v1542_v11 }
 0x2cb   :  { %v1575_v11 = vperm.slane %v1346_v14, 0  ;;  %v1576_v40 = vperm.slane %v1346_v14, 1 }
 0x2d0   :  { %v1249_v23 = vpop.xlane.xlu2 %1248 }
 0x2d1   :  { %v3693_v61 = vld [vmem:[#allocation1] sm:$0xff]  ;;  %v1349_v39 = vadd.f32 %v3408_v32, %v1249_v23 }
 0x2d2   :  { %1949 = vst [vmem:[#allocation1] ss:$9 sm:$0xff] %v1543_v54  ;;  %v1577_v54 = vperm.slane %v1346_v14, 2 }
 0x2d3   :  { %1950 = vst [vmem:[#allocation1 + $0x1] ss:$9 sm:$0xff] %v1544_v55  ;;  %v1578_v55 = vperm.slane %v1346_v14, 3  ;;  %v1606_v21 = vperm.slane %v1349_v39, 7 }
 0x2d4   :  { %1951 = vst [vmem:[#allocation1 + $0x2] ss:$9 sm:$0xff] %v1545_v20  ;;  %v1579_v20 = vperm.slane %v1346_v14, 4 }
 0x2d5   :  { %1952 = vst [vmem:[#allocation1 + $0x3] ss:$9 sm:$0xff] %v1546_v5  ;;  %v1580_v5 = vperm.slane %v1346_v14, 5 }
 0x2d6   :  { %1953 = vst [vmem:[#allocation1 + $0x4] ss:$9 sm:$0xff] %v1547_v25  ;;  %v1581_v25 = vperm.slane %v1346_v14, 6 }
 0x2d7   :  { %1954 = vst [vmem:[#allocation1 + $0x5] ss:$9 sm:$0xff] %v1548_v45  ;;  %v1582_v45 = vperm.slane %v1346_v14, 7 }
 0x2d8   :  { %1955 = vst [vmem:[#allocation1 + $0x6] ss:$9 sm:$0xff] %v1549_v33  ;;  %v1243_v33 = vpop.xlane.xlu1 %1242 }
 0x2d9   :  { %1956 = vst [vmem:[#allocation1 + $0x7] ss:$9 sm:$0xff] %v1550_v53  ;;  %v1347_v53 = vadd.f32 %v3408_v32, %v1243_v33 }
 0x2db   :  { %v1583_v49 = vperm.slane %v1347_v53, 0 }
 0x2e0   :  { %v3696_v18 = vld [vmem:[#allocation1] sm:$0xff]  ;;  %v1252_v14 = vpop.xlane.xlu1 %1251 }
 0x2e1   :  { %1958 = vst [vmem:[#allocation1] ss:$9 sm:$0xff] %v1551_v48  ;;  %v1584_v48 = vperm.slane %v1347_v53, 1 }
 0x2e2   :  { %1959 = vst [vmem:[#allocation1 + $0x1] ss:$9 sm:$0xff] %v1552_v0  ;;  %v1585_v0 = vperm.slane %v1347_v53, 2 }
 0x2e3   :  { %1960 = vst [vmem:[#allocation1 + $0x2] ss:$9 sm:$0xff] %v1553_v38  ;;  %v1586_v38 = vperm.slane %v1347_v53, 3 }
 0x2e4   :  { %1961 = vst [vmem:[#allocation1 + $0x3] ss:$9 sm:$0xff] %v1554_v46  ;;  %v1587_v46 = vperm.slane %v1347_v53, 4 }
 0x2e5   :  { %1962 = vst [vmem:[#allocation1 + $0x4] ss:$9 sm:$0xff] %v1555_v59  ;;  %v1588_v59 = vperm.slane %v1347_v53, 5 }
 0x2e6   :  { %1963 = vst [vmem:[#allocation1 + $0x5] ss:$9 sm:$0xff] %v1556_v27  ;;  %v1589_v27 = vperm.slane %v1347_v53, 6 }
 0x2e7   :  { %1964 = vst [vmem:[#allocation1 + $0x6] ss:$9 sm:$0xff] %v1557_v13  ;;  %v1590_v13 = vperm.slane %v1347_v53, 7 }
 0x2e8   :  { %1965 = vst [vmem:[#allocation1 + $0x7] ss:$9 sm:$0xff] %v1558_v7  ;;  %v1246_v7 = vpop.xlane.xlu0 %1245 }
 0x2e9   :  { %v1348_v58 = vadd.f32 %v3408_v32, %v1246_v7 }
 0x2eb   :  { %v1591_v8 = vperm.slane %v1348_v58, 0 }
 0x2ef   :  { %v3699_v3 = vld [vmem:[#allocation1] sm:$0xff] }
 0x2f0   :  { %1967 = vst [vmem:[#allocation1] ss:$9 sm:$0xff] %v1559_v9 }
 0x2f1   :  { %1968 = vst [vmem:[#allocation1 + $0x1] ss:$9 sm:$0xff] %v1560_v52  ;;  %v1592_v52 = vperm.slane %v1348_v58, 1 }
 0x2f2   :  { %1969 = vst [vmem:[#allocation1 + $0x2] ss:$9 sm:$0xff] %v1561_v2  ;;  %v1593_v2 = vperm.slane %v1348_v58, 2 }
 0x2f3   :  { %1970 = vst [vmem:[#allocation1 + $0x3] ss:$9 sm:$0xff] %v1562_v6  ;;  %v1594_v6 = vperm.slane %v1348_v58, 3 }
 0x2f4   :  { %1971 = vst [vmem:[#allocation1 + $0x4] ss:$9 sm:$0xff] %v1563_v29  ;;  %v1595_v29 = vperm.slane %v1348_v58, 4 }
 0x2f5   :  { %1972 = vst [vmem:[#allocation1 + $0x5] ss:$9 sm:$0xff] %v1564_v4  ;;  %v1596_v4 = vperm.slane %v1348_v58, 5 }
 0x2f6   :  { %1973 = vst [vmem:[#allocation1 + $0x6] ss:$9 sm:$0xff] %v1565_v35  ;;  %v1597_v35 = vperm.slane %v1348_v58, 6 }
 0x2f7   :  { %1974 = vst [vmem:[#allocation1 + $0x7] ss:$9 sm:$0xff] %v1566_v42  ;;  %v1598_v42 = vperm.slane %v1348_v58, 7 }
 0x2fe   :  { %v3702_v28 = vld [vmem:[#allocation1] sm:$0xff] }
 0x2ff   :  { %1976 = vst [vmem:[#allocation1] ss:$9 sm:$0xff] %v1567_v37  ;;  %v1599_v37 = vperm.slane %v1349_v39, 0 }
 0x300   :  { %1977 = vst [vmem:[#allocation1 + $0x1] ss:$9 sm:$0xff] %v1568_v30 }
 0x301   :  { %1978 = vst [vmem:[#allocation1 + $0x2] ss:$9 sm:$0xff] %v1569_v50  ;;  %v1600_v50 = vperm.slane %v1349_v39, 1 }
 0x302   :  { %1979 = vst [vmem:[#allocation1 + $0x3] ss:$9 sm:$0xff] %v1570_v22  ;;  %v1601_v22 = vperm.slane %v1349_v39, 2 }
 0x303   :  { %1980 = vst [vmem:[#allocation1 + $0x4] ss:$9 sm:$0xff] %v1571_v63  ;;  %v1602_v63 = vperm.slane %v1349_v39, 3 }
 0x304   :  { %1981 = vst [vmem:[#allocation1 + $0x5] ss:$9 sm:$0xff] %v1572_v16  ;;  %v1603_v16 = vperm.slane %v1349_v39, 4 }
 0x305   :  { %1982 = vst [vmem:[#allocation1 + $0x6] ss:$9 sm:$0xff] %v1573_v1  ;;  %v1604_v1 = vperm.slane %v1349_v39, 5 }
 0x306   :  { %1983 = vst [vmem:[#allocation1 + $0x7] ss:$9 sm:$0xff] %v1574_v31  ;;  %v1605_v31 = vperm.slane %v1349_v39, 6 }
 0x30d   :  { %v3705_v17 = vld [vmem:[#allocation1] sm:$0xff] }
 0x30e   :  { %1985 = vst [vmem:[#allocation1] ss:$9 sm:$0xff] %v1575_v11  ;;  %v3716_v11 = vpop.f32.mrf.mxu2 }
 0x30f   :  { %1986 = vst [vmem:[#allocation1 + $0x1] ss:$9 sm:$0xff] %v1576_v40  ;;  %2683 = vmatmul.msk.f32.gmra.mxu3 %vm727_vm10, %v3716_v11  ;;  %v1350_v40 = vadd.f32 %v3408_v32, %v1252_v14 }
 0x310   :  { %1987 = vst [vmem:[#allocation1 + $0x2] ss:$9 sm:$0xff] %v1577_v54 }
 0x311   :  { %1988 = vst [vmem:[#allocation1 + $0x3] ss:$9 sm:$0xff] %v1578_v55  ;;  %v1607_v54 = vperm.slane %v1350_v40, 0  ;;  %v1612_v33 = vperm.slane %v1350_v40, 5  ;;  %v1613_v53 = vperm.slane %v1350_v40, 6 }
 0x312   :  { %1989 = vst [vmem:[#allocation1 + $0x4] ss:$9 sm:$0xff] %v1579_v20  ;;  %v1608_v20 = vperm.slane %v1350_v40, 1 }
 0x313   :  { %1990 = vst [vmem:[#allocation1 + $0x5] ss:$9 sm:$0xff] %v1580_v5  ;;  %v1609_v5 = vperm.slane %v1350_v40, 2 }
 0x314   :  { %1991 = vst [vmem:[#allocation1 + $0x6] ss:$9 sm:$0xff] %v1581_v25  ;;  %v1610_v25 = vperm.slane %v1350_v40, 3 }
 0x315   :  { %1992 = vst [vmem:[#allocation1 + $0x7] ss:$9 sm:$0xff] %v1582_v45  ;;  %v1611_v45 = vperm.slane %v1350_v40, 4 }
 0x31c   :  { %v3708_v12 = vld [vmem:[#allocation1] sm:$0xff] }
 0x31d   :  { %1994 = vst [vmem:[#allocation1] ss:$9 sm:$0xff] %v1583_v49  ;;  %v1614_v49 = vperm.slane %v1350_v40, 7 }
 0x31e   :  { %1995 = vst [vmem:[#allocation1 + $0x1] ss:$9 sm:$0xff] %v1584_v48  ;;  %v1255_v48 = vpop.xlane.xlu0 %1254 }
 0x31f   :  { %1996 = vst [vmem:[#allocation1 + $0x2] ss:$9 sm:$0xff] %v1585_v0  ;;  %v1351_v0 = vadd.f32 %v3408_v32, %v1255_v48 }
 0x320   :  { %1997 = vst [vmem:[#allocation1 + $0x3] ss:$9 sm:$0xff] %v1586_v38 }
 0x321   :  { %1998 = vst [vmem:[#allocation1 + $0x4] ss:$9 sm:$0xff] %v1587_v46  ;;  %v1615_v38 = vperm.slane %v1351_v0, 0  ;;  %v1619_v7 = vperm.slane %v1351_v0, 4  ;;  %v1620_v58 = vperm.slane %v1351_v0, 5 }
 0x322   :  { %1999 = vst [vmem:[#allocation1 + $0x5] ss:$9 sm:$0xff] %v1588_v59  ;;  %v1616_v59 = vperm.slane %v1351_v0, 1 }
 0x323   :  { %2000 = vst [vmem:[#allocation1 + $0x6] ss:$9 sm:$0xff] %v1589_v27  ;;  %v1617_v27 = vperm.slane %v1351_v0, 2 }
 0x324   :  { %2001 = vst [vmem:[#allocation1 + $0x7] ss:$9 sm:$0xff] %v1590_v13  ;;  %v1618_v13 = vperm.slane %v1351_v0, 3 }
 0x32b   :  { %v3711_v9 = vld [vmem:[#allocation1] sm:$0xff] }
 0x32c   :  { %2003 = vst [vmem:[#allocation1] ss:$9 sm:$0xff] %v1591_v8  ;;  %v1621_v8 = vperm.slane %v1351_v0, 6 }
 0x32d   :  { %2004 = vst [vmem:[#allocation1 + $0x1] ss:$9 sm:$0xff] %v1592_v52  ;;  %v1622_v52 = vperm.slane %v1351_v0, 7 }
 0x32e   :  { %2005 = vst [vmem:[#allocation1 + $0x2] ss:$9 sm:$0xff] %v1593_v2  ;;  %v3726_v2 = vpop.f32.mrf.mxu2 }
 0x32f   :  { %2006 = vst [vmem:[#allocation1 + $0x3] ss:$9 sm:$0xff] %v1594_v6  ;;  %v1258_v6 = vpop.xlane.xlu2 %1257  ;;  %2684 = vmatmul.msk.f32.gmra.mxu3 %vm727_vm10, %v3726_v2 }
 0x330   :  { %2007 = vst [vmem:[#allocation1 + $0x4] ss:$9 sm:$0xff] %v1595_v29  ;;  %v1352_v29 = vadd.f32 %v3408_v32, %v1258_v6 }
 0x331   :  { %2008 = vst [vmem:[#allocation1 + $0x5] ss:$9 sm:$0xff] %v1596_v4 }
 0x332   :  { %2009 = vst [vmem:[#allocation1 + $0x6] ss:$9 sm:$0xff] %v1597_v35  ;;  %v1623_v4 = vperm.slane %v1352_v29, 0  ;;  %v1624_v35 = vperm.slane %v1352_v29, 1  ;;  %v1625_v23 = vperm.slane %v1352_v29, 2  ;;  %v1626_v39 = vperm.slane %v1352_v29, 3 }
 0x333   :  { %2010 = vst [vmem:[#allocation1 + $0x7] ss:$9 sm:$0xff] %v1598_v42 }
 0x33a   :  { %v3714_v30 = vld [vmem:[#allocation1] sm:$0xff] }
 0x33b   :  { %2012 = vst [vmem:[#allocation1] ss:$9 sm:$0xff] %v1599_v37  ;;  %v1627_v37 = vperm.slane %v1352_v29, 4 }
 0x33c   :  { %2013 = vst [vmem:[#allocation1 + $0x1] ss:$9 sm:$0xff] %v1600_v50  ;;  %v1628_v50 = vperm.slane %v1352_v29, 5 }
 0x33d   :  { %2014 = vst [vmem:[#allocation1 + $0x2] ss:$9 sm:$0xff] %v1601_v22  ;;  %v1629_v22 = vperm.slane %v1352_v29, 6 }
 0x33e   :  { %2015 = vst [vmem:[#allocation1 + $0x3] ss:$9 sm:$0xff] %v1602_v63  ;;  %v1630_v63 = vperm.slane %v1352_v29, 7 }
 0x33f   :  { %2016 = vst [vmem:[#allocation1 + $0x4] ss:$9 sm:$0xff] %v1603_v16  ;;  %v1261_v16 = vpop.xlane.xlu1 %1260 }
 0x340   :  { %2017 = vst [vmem:[#allocation1 + $0x5] ss:$9 sm:$0xff] %v1604_v1  ;;  %v1353_v1 = vadd.f32 %v3408_v32, %v1261_v16 }
 0x341   :  { %2018 = vst [vmem:[#allocation1 + $0x6] ss:$9 sm:$0xff] %v1605_v31 }
 0x342   :  { %2019 = vst [vmem:[#allocation1 + $0x7] ss:$9 sm:$0xff] %v1606_v21  ;;  %v1631_v31 = vperm.slane %v1353_v1, 0  ;;  %v1632_v21 = vperm.slane %v1353_v1, 1  ;;  %v1633_v40 = vperm.slane %v1353_v1, 2 }
 0x349   :  { %v3721_v55 = vld [vmem:[#allocation1] sm:$0xff] }
 0x34a   :  { %2021 = vst [vmem:[#allocation1] ss:$9 sm:$0xff] %v1607_v54  ;;  %v1634_v54 = vperm.slane %v1353_v1, 3 }
 0x34b   :  { %2022 = vst [vmem:[#allocation1 + $0x1] ss:$9 sm:$0xff] %v1608_v20  ;;  %v1635_v20 = vperm.slane %v1353_v1, 4 }
 0x34c   :  { %2023 = vst [vmem:[#allocation1 + $0x2] ss:$9 sm:$0xff] %v1609_v5  ;;  %v1636_v5 = vperm.slane %v1353_v1, 5 }
 0x34d   :  { %2024 = vst [vmem:[#allocation1 + $0x3] ss:$9 sm:$0xff] %v1610_v25  ;;  %v1637_v25 = vperm.slane %v1353_v1, 6 }
 0x34e   :  { %2025 = vst [vmem:[#allocation1 + $0x4] ss:$9 sm:$0xff] %v1611_v45  ;;  %v1638_v45 = vperm.slane %v1353_v1, 7 }
 0x34f   :  { %2026 = vst [vmem:[#allocation1 + $0x5] ss:$9 sm:$0xff] %v1612_v33  ;;  %v1264_v33 = vpop.xlane.xlu0 %1263 }
 0x350   :  { %2027 = vst [vmem:[#allocation1 + $0x6] ss:$9 sm:$0xff] %v1613_v53  ;;  %v1354_v53 = vadd.f32 %v3408_v32, %v1264_v33 }
 0x351   :  { %2028 = vst [vmem:[#allocation1 + $0x7] ss:$9 sm:$0xff] %v1614_v49 }
 0x352   :  { %v1639_v49 = vperm.slane %v1354_v53, 0  ;;  %v1640_v0 = vperm.slane %v1354_v53, 1 }
 0x357   :  { %v1273_v33 = vpop.xlane.xlu0 %1272 }
 0x358   :  { %v3724_v46 = vld [vmem:[#allocation1] sm:$0xff] }
 0x359   :  { %2030 = vst [vmem:[#allocation1] ss:$9 sm:$0xff] %v1615_v38  ;;  %v1641_v38 = vperm.slane %v1354_v53, 2 }
 0x35a   :  { %2031 = vst [vmem:[#allocation1 + $0x1] ss:$9 sm:$0xff] %v1616_v59  ;;  %v1642_v59 = vperm.slane %v1354_v53, 3 }
 0x35b   :  { %2032 = vst [vmem:[#allocation1 + $0x2] ss:$9 sm:$0xff] %v1617_v27  ;;  %v1643_v27 = vperm.slane %v1354_v53, 4 }
 0x35c   :  { %2033 = vst [vmem:[#allocation1 + $0x3] ss:$9 sm:$0xff] %v1618_v13  ;;  %v1644_v13 = vperm.slane %v1354_v53, 5 }
 0x35d   :  { %2034 = vst [vmem:[#allocation1 + $0x4] ss:$9 sm:$0xff] %v1619_v7  ;;  %v1645_v7 = vperm.slane %v1354_v53, 6 }
 0x35e   :  { %2035 = vst [vmem:[#allocation1 + $0x5] ss:$9 sm:$0xff] %v1620_v58  ;;  %v1646_v58 = vperm.slane %v1354_v53, 7  ;;  %v1357_v53 = vadd.f32 %v3408_v32, %v1273_v33 }
 0x35f   :  { %2036 = vst [vmem:[#allocation1 + $0x6] ss:$9 sm:$0xff] %v1621_v8  ;;  %v1267_v8 = vpop.xlane.xlu2 %1266 }
 0x360   :  { %2037 = vst [vmem:[#allocation1 + $0x7] ss:$9 sm:$0xff] %v1622_v52  ;;  %v1355_v52 = vadd.f32 %v3408_v32, %v1267_v8  ;;  %v1670_v8 = vperm.slane %v1357_v53, 7 }
 0x362   :  { %v1647_v6 = vperm.slane %v1355_v52, 0  ;;  %v1648_v29 = vperm.slane %v1355_v52, 1 }
 0x367   :  { %v3731_v42 = vld [vmem:[#allocation1] sm:$0xff] }
 0x368   :  { %2039 = vst [vmem:[#allocation1] ss:$9 sm:$0xff] %v1623_v4 }
 0x369   :  { %2040 = vst [vmem:[#allocation1 + $0x1] ss:$9 sm:$0xff] %v1624_v35  ;;  %v1649_v35 = vperm.slane %v1355_v52, 2 }
 0x36a   :  { %2041 = vst [vmem:[#allocation1 + $0x2] ss:$9 sm:$0xff] %v1625_v23  ;;  %v1650_v23 = vperm.slane %v1355_v52, 3 }
 0x36b   :  { %2042 = vst [vmem:[#allocation1 + $0x3] ss:$9 sm:$0xff] %v1626_v39  ;;  %v1651_v39 = vperm.slane %v1355_v52, 4 }
 0x36c   :  { %2043 = vst [vmem:[#allocation1 + $0x4] ss:$9 sm:$0xff] %v1627_v37  ;;  %v1652_v37 = vperm.slane %v1355_v52, 5 }
 0x36d   :  { %2044 = vst [vmem:[#allocation1 + $0x5] ss:$9 sm:$0xff] %v1628_v50  ;;  %v1653_v50 = vperm.slane %v1355_v52, 6 }
 0x36e   :  { %2045 = vst [vmem:[#allocation1 + $0x6] ss:$9 sm:$0xff] %v1629_v22  ;;  %v1654_v22 = vperm.slane %v1355_v52, 7  ;;  %v1276_v52 = vpop.xlane.xlu2 %1275 }
 0x36f   :  { %2046 = vst [vmem:[#allocation1 + $0x7] ss:$9 sm:$0xff] %v1630_v63  ;;  %v1270_v63 = vpop.xlane.xlu1 %1269 }
 0x370   :  { %v1356_v16 = vadd.f32 %v3408_v32, %v1270_v63 }
 0x372   :  { %v1655_v1 = vperm.slane %v1356_v16, 0 }
 0x376   :  { %v3734_v14 = vld [vmem:[#allocation1] sm:$0xff] }
 0x377   :  { %2048 = vst [vmem:[#allocation1] ss:$9 sm:$0xff] %v1631_v31  ;;  %v1656_v31 = vperm.slane %v1356_v16, 1 }
 0x378   :  { %2049 = vst [vmem:[#allocation1 + $0x1] ss:$9 sm:$0xff] %v1632_v21 }
 0x379   :  { %2050 = vst [vmem:[#allocation1 + $0x2] ss:$9 sm:$0xff] %v1633_v40  ;;  %v1657_v40 = vperm.slane %v1356_v16, 2 }
 0x37a   :  { %2051 = vst [vmem:[#allocation1 + $0x3] ss:$9 sm:$0xff] %v1634_v54  ;;  %v1658_v54 = vperm.slane %v1356_v16, 3 }
 0x37b   :  { %2052 = vst [vmem:[#allocation1 + $0x4] ss:$9 sm:$0xff] %v1635_v20  ;;  %v1659_v20 = vperm.slane %v1356_v16, 4 }
 0x37c   :  { %2053 = vst [vmem:[#allocation1 + $0x5] ss:$9 sm:$0xff] %v1636_v5  ;;  %v1660_v5 = vperm.slane %v1356_v16, 5 }
 0x37d   :  { %2054 = vst [vmem:[#allocation1 + $0x6] ss:$9 sm:$0xff] %v1637_v25  ;;  %v1661_v25 = vperm.slane %v1356_v16, 6 }
 0x37e   :  { %2055 = vst [vmem:[#allocation1 + $0x7] ss:$9 sm:$0xff] %v1638_v45  ;;  %v1662_v45 = vperm.slane %v1356_v16, 7 }
 0x385   :  { %v3737_v48 = vld [vmem:[#allocation1] sm:$0xff] }
 0x386   :  { %2057 = vst [vmem:[#allocation1] ss:$9 sm:$0xff] %v1639_v49  ;;  %v1663_v49 = vperm.slane %v1357_v53, 0 }
 0x387   :  { %2058 = vst [vmem:[#allocation1 + $0x1] ss:$9 sm:$0xff] %v1640_v0 }
 0x388   :  { %2059 = vst [vmem:[#allocation1 + $0x2] ss:$9 sm:$0xff] %v1641_v38  ;;  %v1664_v38 = vperm.slane %v1357_v53, 1 }
 0x389   :  { %2060 = vst [vmem:[#allocation1 + $0x3] ss:$9 sm:$0xff] %v1642_v59  ;;  %v1665_v59 = vperm.slane %v1357_v53, 2 }
 0x38a   :  { %2061 = vst [vmem:[#allocation1 + $0x4] ss:$9 sm:$0xff] %v1643_v27  ;;  %v1666_v27 = vperm.slane %v1357_v53, 3 }
 0x38b   :  { %2062 = vst [vmem:[#allocation1 + $0x5] ss:$9 sm:$0xff] %v1644_v13  ;;  %v1667_v13 = vperm.slane %v1357_v53, 4 }
 0x38c   :  { %2063 = vst [vmem:[#allocation1 + $0x6] ss:$9 sm:$0xff] %v1645_v7  ;;  %v1668_v7 = vperm.slane %v1357_v53, 5 }
 0x38d   :  { %2064 = vst [vmem:[#allocation1 + $0x7] ss:$9 sm:$0xff] %v1646_v58  ;;  %v1669_v58 = vperm.slane %v1357_v53, 6 }
 0x394   :  { %v3740_v4 = vld [vmem:[#allocation1] sm:$0xff] }
 0x395   :  { %2066 = vst [vmem:[#allocation1] ss:$9 sm:$0xff] %v1647_v6  ;;  %v1358_v6 = vadd.f32 %v3408_v32, %v1276_v52 }
 0x396   :  { %2067 = vst [vmem:[#allocation1 + $0x1] ss:$9 sm:$0xff] %v1648_v29 }
 0x397   :  { %2068 = vst [vmem:[#allocation1 + $0x2] ss:$9 sm:$0xff] %v1649_v35  ;;  %v1671_v29 = vperm.slane %v1358_v6, 0  ;;  %v1672_v35 = vperm.slane %v1358_v6, 1  ;;  %v1677_v63 = vperm.slane %v1358_v6, 6  ;;  %v1678_v16 = vperm.slane %v1358_v6, 7 }
 0x398   :  { %2069 = vst [vmem:[#allocation1 + $0x3] ss:$9 sm:$0xff] %v1650_v23 }
 0x399   :  { %2070 = vst [vmem:[#allocation1 + $0x4] ss:$9 sm:$0xff] %v1651_v39  ;;  %v1673_v39 = vperm.slane %v1358_v6, 2 }
 0x39a   :  { %2071 = vst [vmem:[#allocation1 + $0x5] ss:$9 sm:$0xff] %v1652_v37  ;;  %v1674_v37 = vperm.slane %v1358_v6, 3 }
 0x39b   :  { %2072 = vst [vmem:[#allocation1 + $0x6] ss:$9 sm:$0xff] %v1653_v50  ;;  %v1675_v50 = vperm.slane %v1358_v6, 4 }
 0x39c   :  { %2073 = vst [vmem:[#allocation1 + $0x7] ss:$9 sm:$0xff] %v1654_v22  ;;  %v1676_v22 = vperm.slane %v1358_v6, 5 }
 0x3a3   :  { %v3743_v21 = vld [vmem:[#allocation1] sm:$0xff] }
 0x3a4   :  { %2075 = vst [vmem:[#allocation1] ss:$9 sm:$0xff] %v1655_v1  ;;  %v1279_v1 = vpop.xlane.xlu1 %1278 }
 0x3a5   :  { %2076 = vst [vmem:[#allocation1 + $0x1] ss:$9 sm:$0xff] %v1656_v31  ;;  %v1359_v31 = vadd.f32 %v3408_v32, %v1279_v1 }
 0x3a6   :  { %2077 = vst [vmem:[#allocation1 + $0x2] ss:$9 sm:$0xff] %v1657_v40 }
 0x3a7   :  { %2078 = vst [vmem:[#allocation1 + $0x3] ss:$9 sm:$0xff] %v1658_v54  ;;  %v1679_v40 = vperm.slane %v1359_v31, 0  ;;  %v1680_v54 = vperm.slane %v1359_v31, 1  ;;  %v1684_v33 = vperm.slane %v1359_v31, 5  ;;  %v1685_v53 = vperm.slane %v1359_v31, 6 }
 0x3a8   :  { %2079 = vst [vmem:[#allocation1 + $0x4] ss:$9 sm:$0xff] %v1659_v20 }
 0x3a9   :  { %2080 = vst [vmem:[#allocation1 + $0x5] ss:$9 sm:$0xff] %v1660_v5  ;;  %v1681_v5 = vperm.slane %v1359_v31, 2 }
 0x3aa   :  { %2081 = vst [vmem:[#allocation1 + $0x6] ss:$9 sm:$0xff] %v1661_v25  ;;  %v1682_v25 = vperm.slane %v1359_v31, 3 }
 0x3ab   :  { %2082 = vst [vmem:[#allocation1 + $0x7] ss:$9 sm:$0xff] %v1662_v45  ;;  %v1683_v45 = vperm.slane %v1359_v31, 4 }
 0x3b2   :  { %v3746_v0 = vld [vmem:[#allocation1] sm:$0xff] }
 0x3b3   :  { %2084 = vst [vmem:[#allocation1] ss:$9 sm:$0xff] %v1663_v49  ;;  %v1686_v49 = vperm.slane %v1359_v31, 7 }
 0x3b4   :  { %2085 = vst [vmem:[#allocation1 + $0x1] ss:$9 sm:$0xff] %v1664_v38  ;;  %v1282_v38 = vpop.xlane.xlu0 %1281 }
 0x3b5   :  { %2086 = vst [vmem:[#allocation1 + $0x2] ss:$9 sm:$0xff] %v1665_v59  ;;  %v1360_v59 = vadd.f32 %v3408_v32, %v1282_v38 }
 0x3b6   :  { %2087 = vst [vmem:[#allocation1 + $0x3] ss:$9 sm:$0xff] %v1666_v27  ;;  %v68_v27 = vld [vmem:[%s3994_s1 + $0x168] sm:$0xff] }
 0x3b7   :  { %2088 = vst [vmem:[#allocation1 + $0x4] ss:$9 sm:$0xff] %v1667_v13  ;;  %v1024_v13 = vpop.f32.mrf.mxu3  ;;  %v1688_v6 = vperm.slane %v1360_v59, 1 }
 0x3b8   :  { %2089 = vst [vmem:[#allocation1 + $0x5] ss:$9 sm:$0xff] %v1668_v7  ;;  %v1130_v7 = vmul.f32 %v3643_v19, %v3688_v34  ;;  %v1694_v19 = vperm.slane %v1360_v59, 7  ;;  %v1285_v34 = vpop.xlane.xlu2 %1284 }
 0x3b9   :  { %2090 = vst [vmem:[#allocation1 + $0x6] ss:$9 sm:$0xff] %v1669_v58  ;;  %v1687_v58 = vperm.slane %v1360_v59, 0 }
 0x3ba   :  { %2091 = vst [vmem:[#allocation1 + $0x7] ss:$9 sm:$0xff] %v1670_v8  ;;  %v1078_v8 = vmul.f32 %v1024_v13, %v68_v27 }
 0x3c1   :  { %v3749_v23 = vld [vmem:[#allocation1] sm:$0xff] }
 0x3c2   :  { %2093 = vst [vmem:[#allocation1] ss:$9 sm:$0xff] %v1671_v29  ;;  %v1689_v29 = vperm.slane %v1360_v59, 2 }
 0x3c3   :  { %2094 = vst [vmem:[#allocation1 + $0x1] ss:$9 sm:$0xff] %v1672_v35  ;;  %v1178_v35 = vadd.f32 %v1130_v7, %v1078_v8 }
 0x3c4   :  { %2095 = vst [vmem:[#allocation1 + $0x2] ss:$9 sm:$0xff] %v1673_v39  ;;  %v1690_v39 = vperm.slane %v1360_v59, 3 }
 0x3c5   :  { %2096 = vst [vmem:[#allocation1 + $0x3] ss:$9 sm:$0xff] %v1674_v37  ;;  %v1691_v37 = vperm.slane %v1360_v59, 4 }
 0x3c6   :  { %2097 = vst [vmem:[#allocation1 + $0x4] ss:$9 sm:$0xff] %v1675_v50  ;;  %v1316_v50 = vsel %vm727_vm10, %v1178_v35, 0.0 }
 0x3c7   :  { %2098 = vst [vmem:[#allocation1 + $0x5] ss:$9 sm:$0xff] %v1676_v22  ;;  %v1692_v22 = vperm.slane %v1360_v59, 5  ;;  %1317 = vadd.xlane.f32.xlu0 %v1316_v50 }
 0x3c8   :  { %2099 = vst [vmem:[#allocation1 + $0x6] ss:$9 sm:$0xff] %v1677_v63  ;;  %v1693_v63 = vperm.slane %v1360_v59, 6 }
 0x3c9   :  { %2100 = vst [vmem:[#allocation1 + $0x7] ss:$9 sm:$0xff] %v1678_v16  ;;  %v1361_v16 = vadd.f32 %v3408_v32, %v1285_v34 }
 0x3cb   :  { %v1695_v1 = vperm.slane %v1361_v16, 0  ;;  %v1696_v31 = vperm.slane %v1361_v16, 1 }
 0x3d0   :  { %v3752_v20 = vld [vmem:[#allocation1] sm:$0xff] }
 0x3d1   :  { %2102 = vst [vmem:[#allocation1] ss:$9 sm:$0xff] %v1679_v40 }
 0x3d2   :  { %2103 = vst [vmem:[#allocation1 + $0x1] ss:$9 sm:$0xff] %v1680_v54  ;;  %v1697_v54 = vperm.slane %v1361_v16, 2 }
 0x3d3   :  { %2104 = vst [vmem:[#allocation1 + $0x2] ss:$9 sm:$0xff] %v1681_v5  ;;  %v1698_v5 = vperm.slane %v1361_v16, 3 }
 0x3d4   :  { %2105 = vst [vmem:[#allocation1 + $0x3] ss:$9 sm:$0xff] %v1682_v25  ;;  %v1699_v25 = vperm.slane %v1361_v16, 4 }
 0x3d5   :  { %2106 = vst [vmem:[#allocation1 + $0x4] ss:$9 sm:$0xff] %v1683_v45  ;;  %v1700_v45 = vperm.slane %v1361_v16, 5 }
 0x3d6   :  { %2107 = vst [vmem:[#allocation1 + $0x5] ss:$9 sm:$0xff] %v1684_v33  ;;  %v1701_v33 = vperm.slane %v1361_v16, 6 }
 0x3d7   :  { %2108 = vst [vmem:[#allocation1 + $0x6] ss:$9 sm:$0xff] %v1685_v53  ;;  %v1702_v53 = vperm.slane %v1361_v16, 7 }
 0x3d8   :  { %2109 = vst [vmem:[#allocation1 + $0x7] ss:$9 sm:$0xff] %v1686_v49  ;;  %v1288_v49 = vpop.xlane.xlu1 %1287 }
 0x3d9   :  { %v1362_v38 = vadd.f32 %v3408_v32, %v1288_v49 }
 0x3db   :  { %2247 = vperm.xlu0 %2700, %v3449_v62   ;;  %v1703_v59 = vperm.slane %v1362_v38, 0  ;;  %v1704_v27 = vperm.slane %v1362_v38, 1  ;;  %v1705_v7 = vperm.slane %v1362_v38, 2  ;;  %v1707_v8 = vperm.slane %v1362_v38, 4  ;;  %v1291_v62 = vpop.xlane.xlu0 %1290 }
 0x3dc   :  { %v1710_v35 = vperm.slane %v1362_v38, 7 }
 0x3df   :  { %v3760_v52 = vld [vmem:[#allocation1] sm:$0xff] }
 0x3e0   :  { %2111 = vst [vmem:[#allocation1] ss:$9 sm:$0xff] %v1687_v58  ;;  %v1706_v58 = vperm.slane %v1362_v38, 3 }
 0x3e1   :  { %2112 = vst [vmem:[#allocation1 + $0x1] ss:$9 sm:$0xff] %v1688_v6  ;;  %v1708_v6 = vperm.slane %v1362_v38, 5 }
 0x3e2   :  { %2113 = vst [vmem:[#allocation1 + $0x2] ss:$9 sm:$0xff] %v1689_v29  ;;  %v1709_v29 = vperm.slane %v1362_v38, 6  ;;  %v70_v38 = vld [vmem:[%s3994_s1 + $0x178] sm:$0xff] }
 0x3e3   :  { %2114 = vst [vmem:[#allocation1 + $0x3] ss:$9 sm:$0xff] %v1690_v39  ;;  %2256 = vperm.xlu0 %2700, %v3517_v24   ;;  %v1363_v39 = vadd.f32 %v3408_v32, %v1291_v62 }
 0x3e4   :  { %2115 = vst [vmem:[#allocation1 + $0x4] ss:$9 sm:$0xff] %v1691_v37 }
 0x3e5   :  { %2116 = vst [vmem:[#allocation1 + $0x5] ss:$9 sm:$0xff] %v1692_v22  ;;  %v1711_v37 = vperm.slane %v1363_v39, 0  ;;  %v1712_v22 = vperm.slane %v1363_v39, 1  ;;  %v1713_v24 = vperm.slane %v1363_v39, 2  ;;  %v1716_v34 = vperm.slane %v1363_v39, 5 }
 0x3e6   :  { %2117 = vst [vmem:[#allocation1 + $0x6] ss:$9 sm:$0xff] %v1693_v63  ;;  %v1714_v63 = vperm.slane %v1363_v39, 3  ;;  %v1717_v16 = vperm.slane %v1363_v39, 6 }
 0x3e7   :  { %2118 = vst [vmem:[#allocation1 + $0x7] ss:$9 sm:$0xff] %v1694_v19  ;;  %v1715_v19 = vperm.slane %v1363_v39, 4 }
 0x3eb   :  { %2262 = vperm.xlu0 %2700, %v3543_v10   ;;  %v69_v10 = vld [vmem:[%s3994_s1 + $0x170] sm:$0xff]  ;;  %s2734_s1 = smov [#allocation4]  }
 0x3ee   :  { %v3764_v40 = vld [vmem:[#allocation1] sm:$0xff] }
 0x3ef   :  { %2120 = vst [vmem:[#allocation1] ss:$9 sm:$0xff] %v1695_v1  ;;  %v1718_v1 = vperm.slane %v1363_v39, 7 }
 0x3f0   :  { %2121 = vst [vmem:[#allocation1 + $0x1] ss:$9 sm:$0xff] %v1696_v31  ;;  %v1027_v31 = vpop.f32.mrf.mxu3 }
 0x3f1   :  { %2122 = vst [vmem:[#allocation1 + $0x2] ss:$9 sm:$0xff] %v1697_v54  ;;  %v2705_v54 = vld [vmem:[%s3998_s5] ss:$0 sm:$0xff]  ;;  %s2530_s5 = sshll.u32 %s2734_s1, 4  ;;  %s2531_s5 = int_to_ptr.vmem [resolvable:$true] %s2530_s5 }
 0x3f2   :  { %2123 = vst [vmem:[#allocation1 + $0x3] ss:$9 sm:$0xff] %v1698_v5  ;;  %v1131_v5 = vmul.f32 %v2705_v54, %v3716_v11  ;;  %v1132_v11 = vmul.f32 %v2705_v54, %v3726_v2 }
 0x3f3   :  { %2124 = vst [vmem:[#allocation1 + $0x4] ss:$9 sm:$0xff] %v1699_v25  ;;  %2271 = vperm.xlu0 %2700, %v3649_v36   ;;  %v1294_v25 = vpop.xlane.xlu2 %1293  ;;  %v1079_v36 = vmul.f32 %v1027_v31, %v69_v10 }
 0x3f4   :  { %2125 = vst [vmem:[#allocation1 + $0x5] ss:$9 sm:$0xff] %v1700_v45 }
 0x3f5   :  { %2126 = vst [vmem:[#allocation1 + $0x6] ss:$9 sm:$0xff] %v1701_v33  ;;  %v1179_v45 = vadd.f32 %v1131_v5, %v1079_v36  ;;  %v1364_v33 = vadd.f32 %v3408_v32, %v1294_v25 }
 0x3f6   :  { %2127 = vst [vmem:[#allocation1 + $0x7] ss:$9 sm:$0xff] %v1702_v53 }
 0x3f7   :  { %v1319_v53 = vsel %vm727_vm10, %v1179_v45, 0.0  ;;  %v1719_v49 = vperm.slane %v1364_v33, 0  ;;  %v1725_v39 = vperm.slane %v1364_v33, 6  ;;  %v1726_v2 = vperm.slane %v1364_v33, 7 }
 0x3f8   :  { %1320 = vadd.xlane.f32.xlu2 %v1319_v53 }
 0x3fb   :  { %2280 = vperm.xlu0 %2700, %v3678_v26  }
 0x3fd   :  { %v3768_v13 = vld [vmem:[#allocation1] sm:$0xff] }
 0x3fe   :  { %2129 = vst [vmem:[#allocation1] ss:$9 sm:$0xff] %v1703_v59  ;;  %v1030_v59 = vpop.f32.mrf.mxu3 }
 0x3ff   :  { %2130 = vst [vmem:[#allocation1 + $0x1] ss:$9 sm:$0xff] %v1704_v27  ;;  %v1720_v27 = vperm.slane %v1364_v33, 1 }
 0x400   :  { %2131 = vst [vmem:[#allocation1 + $0x2] ss:$9 sm:$0xff] %v1705_v7 }
 0x401   :  { %2132 = vst [vmem:[#allocation1 + $0x3] ss:$9 sm:$0xff] %v1706_v58  ;;  %v1080_v58 = vmul.f32 %v1030_v59, %v70_v38 }
 0x402   :  { %2133 = vst [vmem:[#allocation1 + $0x4] ss:$9 sm:$0xff] %v1707_v8  ;;  %v1721_v8 = vperm.slane %v1364_v33, 2 }
 0x403   :  { %2134 = vst [vmem:[#allocation1 + $0x5] ss:$9 sm:$0xff] %v1708_v6  ;;  %v1722_v6 = vperm.slane %v1364_v33, 3  ;;  %v1180_v26 = vadd.f32 %v1132_v11, %v1080_v58  ;;  %2289 = vperm.xlu0 %2700, %v3693_v61  }
 0x404   :  { %2135 = vst [vmem:[#allocation1 + $0x6] ss:$9 sm:$0xff] %v1709_v29  ;;  %v1723_v29 = vperm.slane %v1364_v33, 4 }
 0x405   :  { %2136 = vst [vmem:[#allocation1 + $0x7] ss:$9 sm:$0xff] %v1710_v35  ;;  %v1724_v35 = vperm.slane %v1364_v33, 5  ;;  %v1322_v62 = vsel %vm727_vm10, %v1180_v26, 0.0  ;;  %vm2397_vm10 = vcmask 195712  }
 0x406   :  { %1323 = vadd.xlane.f32.xlu1 %v1322_v62 }
 0x40b   :  { %2298 = vperm.xlu0 %2700, %v3702_v28   ;;  %v1300_v28 = vpop.xlane.xlu0 %1299 }
 0x40c   :  { %v3773_v50 = vld [vmem:[#allocation1] sm:$0xff]  ;;  %v1366_v54 = vadd.f32 %v3408_v32, %v1300_v28 }
 0x40d   :  { %2138 = vst [vmem:[#allocation1] ss:$9 sm:$0xff] %v1711_v37  ;;  %v1297_v37 = vpop.xlane.xlu1 %1296 }
 0x40e   :  { %2139 = vst [vmem:[#allocation1 + $0x1] ss:$9 sm:$0xff] %v1712_v22  ;;  %v1365_v22 = vadd.f32 %v3408_v32, %v1297_v37  ;;  %v1735_v5 = vperm.slane %v1366_v54, 0  ;;  %v1736_v36 = vperm.slane %v1366_v54, 1  ;;  %v1738_v45 = vperm.slane %v1366_v54, 3 }
 0x40f   :  { %2140 = vst [vmem:[#allocation1 + $0x2] ss:$9 sm:$0xff] %v1713_v24  ;;  %v1740_v33 = vperm.slane %v1366_v54, 5  ;;  %v1741_v53 = vperm.slane %v1366_v54, 6 }
 0x410   :  { %2141 = vst [vmem:[#allocation1 + $0x3] ss:$9 sm:$0xff] %v1714_v63  ;;  %v1727_v24 = vperm.slane %v1365_v22, 0  ;;  %v1728_v63 = vperm.slane %v1365_v22, 1  ;;  %v1730_v61 = vperm.slane %v1365_v22, 3  ;;  %v1733_v10 = vperm.slane %v1365_v22, 6  ;;  %2250 = vperm.xlu2 %2702, %v3479_v44  }
 0x411   :  { %2142 = vst [vmem:[#allocation1 + $0x4] ss:$9 sm:$0xff] %v1715_v19  ;;  %v1734_v31 = vperm.slane %v1365_v22, 7  ;;  %v1739_v44 = vperm.slane %v1366_v54, 4 }
 0x412   :  { %2143 = vst [vmem:[#allocation1 + $0x5] ss:$9 sm:$0xff] %v1716_v34  ;;  %v1729_v34 = vperm.slane %v1365_v22, 2 }
 0x413   :  { %2144 = vst [vmem:[#allocation1 + $0x6] ss:$9 sm:$0xff] %v1717_v16  ;;  %v1731_v16 = vperm.slane %v1365_v22, 4  ;;  %2307 = vperm.xlu0 %2700, %v3711_v9   ;;  %v1737_v9 = vperm.slane %v1366_v54, 2  ;;  %v1309_v62 = vpop.xlane.xlu0 %1308 }
 0x414   :  { %2145 = vst [vmem:[#allocation1 + $0x7] ss:$9 sm:$0xff] %v1718_v1  ;;  %v1732_v1 = vperm.slane %v1365_v22, 5 }
 0x418   :  { %2259 = vperm.xlu2 %2702, %v3530_v57   ;;  %v1303_v57 = vpop.xlane.xlu2 %1302 }
 0x41b   :  { %v3790_v7 = vld [vmem:[#allocation1] sm:$0xff]  ;;  %2316 = vperm.xlu0 %2700, %v3724_v46  }
 0x41c   :  { %2147 = vst [vmem:[#allocation1] ss:$9 sm:$0xff] %v1719_v49  ;;  %v1742_v49 = vperm.slane %v1366_v54, 7 }
 0x41d   :  { %2148 = vst [vmem:[#allocation1 + $0x1] ss:$9 sm:$0xff] %v1720_v27 }
 0x41e   :  { %2149 = vst [vmem:[#allocation1 + $0x2] ss:$9 sm:$0xff] %v1721_v8 }
 0x41f   :  { %2150 = vst [vmem:[#allocation1 + $0x3] ss:$9 sm:$0xff] %v1722_v6  ;;  %2274 = vperm.xlu1 %2701, %v3670_v60   ;;  %v1367_v60 = vadd.f32 %v3408_v32, %v1303_v57 }
 0x420   :  { %2151 = vst [vmem:[#allocation1 + $0x4] ss:$9 sm:$0xff] %v1723_v29  ;;  %2268 = vperm.xlu2 %2702, %v3607_v43  }
 0x421   :  { %2152 = vst [vmem:[#allocation1 + $0x5] ss:$9 sm:$0xff] %v1724_v35  ;;  %v1743_v46 = vperm.slane %v1367_v60, 0  ;;  %v1744_v38 = vperm.slane %v1367_v60, 1  ;;  %v1745_v11 = vperm.slane %v1367_v60, 2  ;;  %v1747_v43 = vperm.slane %v1367_v60, 4 }
 0x422   :  { %2153 = vst [vmem:[#allocation1 + $0x6] ss:$9 sm:$0xff] %v1725_v39  ;;  %v1748_v27 = vperm.slane %v1367_v60, 5  ;;  %v1750_v58 = vperm.slane %v1367_v60, 7 }
 0x423   :  { %2154 = vst [vmem:[#allocation1 + $0x7] ss:$9 sm:$0xff] %v1726_v2  ;;  %2325 = vperm.xlu0 %2700, %v3737_v48   ;;  %v1746_v48 = vperm.slane %v1367_v60, 3 }
 0x427   :  { %2283 = vperm.xlu1 %2701, %v3683_v41   ;;  %v1749_v41 = vperm.slane %v1367_v60, 6 }
 0x428   :  { %2277 = vperm.xlu2 %2702, %v3675_v47  }
 0x42a   :  { %v3796_v19 = vld [vmem:[#allocation1] sm:$0xff] }
 0x42b   :  { %2156 = vst [vmem:[#allocation1] ss:$9 sm:$0xff] %v1727_v24  ;;  %2334 = vperm.xlu0 %2700, %v3746_v0   ;;  %v1306_v0 = vpop.xlane.xlu1 %1305 }
 0x42c   :  { %2157 = vst [vmem:[#allocation1 + $0x1] ss:$9 sm:$0xff] %v1728_v63  ;;  %v1368_v47 = vadd.f32 %v3408_v32, %v1306_v0 }
 0x42d   :  { %2158 = vst [vmem:[#allocation1 + $0x2] ss:$9 sm:$0xff] %v1729_v34 }
 0x42e   :  { %2159 = vst [vmem:[#allocation1 + $0x3] ss:$9 sm:$0xff] %v1730_v61  ;;  %v1752_v8 = vperm.slane %v1368_v47, 1  ;;  %v1753_v26 = vperm.slane %v1368_v47, 2  ;;  %v1754_v29 = vperm.slane %v1368_v47, 3  ;;  %v1758_v35 = vperm.slane %v1368_v47, 7 }
 0x42f   :  { %2160 = vst [vmem:[#allocation1 + $0x4] ss:$9 sm:$0xff] %v1731_v16  ;;  %2292 = vperm.xlu1 %2701, %v3696_v18   ;;  %v1751_v18 = vperm.slane %v1368_v47, 0 }
 0x430   :  { %2161 = vst [vmem:[#allocation1 + $0x5] ss:$9 sm:$0xff] %v1732_v1  ;;  %2286 = vperm.xlu2 %2702, %v3686_v15   ;;  %v1756_v15 = vperm.slane %v1368_v47, 5 }
 0x431   :  { %2162 = vst [vmem:[#allocation1 + $0x6] ss:$9 sm:$0xff] %v1733_v10 }
 0x432   :  { %2163 = vst [vmem:[#allocation1 + $0x7] ss:$9 sm:$0xff] %v1734_v31 }
 0x433   :  { %2343 = vperm.xlu0 %2700, %v3760_v52   ;;  %v1755_v52 = vperm.slane %v1368_v47, 4 }
 0x437   :  { %2301 = vperm.xlu1 %2701, %v3705_v17   ;;  %v1757_v17 = vperm.slane %v1368_v47, 6 }
 0x438   :  { %2295 = vperm.xlu2 %2702, %v3699_v3   ;;  %v1369_v3 = vadd.f32 %v3408_v32, %v1309_v62  ;;  %v3860_v62 = vadd.s32 4294967264, %v2930_v56 }
 0x439   :  { %v3803_v25 = vld [vmem:[#allocation1] sm:$0xff] }
 0x43a   :  { %2165 = vst [vmem:[#allocation1] ss:$9 sm:$0xff] %v1735_v5  ;;  %v1761_v2 = vperm.slane %v1369_v3, 2  ;;  %v1762_v37 = vperm.slane %v1369_v3, 3  ;;  %v1763_v22 = vperm.slane %v1369_v3, 4  ;;  %v1764_v24 = vperm.slane %v1369_v3, 5 }
 0x43b   :  { %2166 = vst [vmem:[#allocation1 + $0x1] ss:$9 sm:$0xff] %v1736_v36  ;;  %2352 = vperm.xlu0 %2700, %v3773_v50   ;;  %v1760_v50 = vperm.slane %v1369_v3, 1  ;;  %v1766_v63 = vperm.slane %v1369_v3, 7 }
 0x43c   :  { %2167 = vst [vmem:[#allocation1 + $0x2] ss:$9 sm:$0xff] %v1737_v9 }
 0x43d   :  { %2168 = vst [vmem:[#allocation1 + $0x3] ss:$9 sm:$0xff] %v1738_v45 }
 0x43e   :  { %2169 = vst [vmem:[#allocation1 + $0x4] ss:$9 sm:$0xff] %v1739_v44 }
 0x43f   :  { %2170 = vst [vmem:[#allocation1 + $0x5] ss:$9 sm:$0xff] %v1740_v33  ;;  %2310 = vperm.xlu1 %2701, %v3714_v30   ;;  %v1759_v30 = vperm.slane %v1369_v3, 0 }
 0x440   :  { %2171 = vst [vmem:[#allocation1 + $0x6] ss:$9 sm:$0xff] %v1741_v53  ;;  %2304 = vperm.xlu2 %2702, %v3708_v12   ;;  %v1765_v12 = vperm.slane %v1369_v3, 6  ;;  %v3863_v3 = vadd.s32 4294967256, %v2930_v56 }
 0x441   :  { %2172 = vst [vmem:[#allocation1 + $0x7] ss:$9 sm:$0xff] %v1742_v49 }
 0x443   :  { %2361 = vperm.xlu0 %2700, %v3803_v25  }
 0x447   :  { %2319 = vperm.xlu1 %2701, %v3731_v42   ;;  %v1312_v42 = vpop.xlane.xlu2 %1311 }
 0x448   :  { %v3811_v59 = vld [vmem:[#allocation1] sm:$0xff]  ;;  %2313 = vperm.xlu2 %2702, %v3721_v55   ;;  %v1370_v34 = vadd.f32 %v3408_v32, %v1312_v42 }
 0x449   :  { %2174 = vst [vmem:[#allocation1] ss:$9 sm:$0xff] %v1743_v46 }
 0x44a   :  { %2175 = vst [vmem:[#allocation1 + $0x1] ss:$9 sm:$0xff] %v1744_v38  ;;  %v1767_v55 = vperm.slane %v1370_v34, 0  ;;  %v1768_v61 = vperm.slane %v1370_v34, 1  ;;  %v1769_v1 = vperm.slane %v1370_v34, 2  ;;  %v1770_v10 = vperm.slane %v1370_v34, 3 }
 0x44b   :  { %2176 = vst [vmem:[#allocation1 + $0x2] ss:$9 sm:$0xff] %v1745_v11  ;;  %v1771_v31 = vperm.slane %v1370_v34, 4  ;;  %v1772_v28 = vperm.slane %v1370_v34, 5  ;;  %v1773_v54 = vperm.slane %v1370_v34, 6  ;;  %v3844_v38 = vadd.s32 4294967288, %v2930_v56 }
 0x44c   :  { %2177 = vst [vmem:[#allocation1 + $0x3] ss:$9 sm:$0xff] %v1746_v48 }
 0x44d   :  { %2178 = vst [vmem:[#allocation1 + $0x4] ss:$9 sm:$0xff] %v1747_v43 }
 0x44e   :  { %2179 = vst [vmem:[#allocation1 + $0x5] ss:$9 sm:$0xff] %v1748_v27 }
 0x44f   :  { %2180 = vst [vmem:[#allocation1 + $0x6] ss:$9 sm:$0xff] %v1749_v41  ;;  %2328 = vperm.xlu1 %2701, %v3740_v4   ;;  %v1318_v4 = vpop.xlane.xlu0 %1317 }
 0x450   :  { %2181 = vst [vmem:[#allocation1 + $0x7] ss:$9 sm:$0xff] %v1750_v58  ;;  %2322 = vperm.xlu2 %2702, %v3734_v14   ;;  %v1774_v14 = vperm.slane %v1370_v34, 7  ;;  %v1372_v60 = vadd.f32 %v3408_v32, %v1318_v4  ;;  %v3850_v58 = vadd.s32 4294967272, %v2930_v56 }
 0x452   :  { %v1783_v46 = vperm.slane %v1372_v60, 0  ;;  %v1784_v11 = vperm.slane %v1372_v60, 1  ;;  %v1785_v48 = vperm.slane %v1372_v60, 2  ;;  %v1786_v27 = vperm.slane %v1372_v60, 3 }
 0x453   :  { %v1787_v47 = vperm.slane %v1372_v60, 4 }
 0x457   :  { %v3820_v6 = vld [vmem:[#allocation1] sm:$0xff]  ;;  %2346 = vperm.xlu1 %2701, %v3764_v40   ;;  %v1315_v40 = vpop.xlane.xlu1 %1314  ;;  %v2248_v5 = vpop.permute.xlu0 %2247 }
 0x458   :  { %2183 = vst [vmem:[#allocation1] ss:$9 sm:$0xff] %v1751_v18  ;;  %2331 = vperm.xlu2 %2702, %v3743_v21   ;;  %v1371_v25 = vadd.f32 %v3408_v32, %v1315_v40 }
 0x459   :  { %2184 = vst [vmem:[#allocation1 + $0x1] ss:$9 sm:$0xff] %v1752_v8 }
 0x45a   :  { %2185 = vst [vmem:[#allocation1 + $0x2] ss:$9 sm:$0xff] %v1753_v26  ;;  %v1775_v36 = vperm.slane %v1371_v25, 0  ;;  %v1776_v21 = vperm.slane %v1371_v25, 1  ;;  %v1777_v45 = vperm.slane %v1371_v25, 2  ;;  %v1779_v44 = vperm.slane %v1371_v25, 4 }
 0x45b   :  { %2186 = vst [vmem:[#allocation1 + $0x3] ss:$9 sm:$0xff] %v1754_v29  ;;  %v1780_v33 = vperm.slane %v1371_v25, 5  ;;  %v1781_v49 = vperm.slane %v1371_v25, 6  ;;  %v1788_v26 = vperm.slane %v1372_v60, 5  ;;  %v1789_v29 = vperm.slane %v1372_v60, 6 }
 0x45c   :  { %2187 = vst [vmem:[#allocation1 + $0x4] ss:$9 sm:$0xff] %v1755_v52 }
 0x45d   :  { %2188 = vst [vmem:[#allocation1 + $0x5] ss:$9 sm:$0xff] %v1756_v15  ;;  %v1790_v15 = vperm.slane %v1372_v60, 7 }
 0x45e   :  { %2189 = vst [vmem:[#allocation1 + $0x6] ss:$9 sm:$0xff] %v1757_v17 }
 0x45f   :  { %2190 = vst [vmem:[#allocation1 + $0x7] ss:$9 sm:$0xff] %v1758_v35  ;;  %2355 = vperm.xlu1 %2701, %v3790_v7   ;;  %v1778_v7 = vperm.slane %v1371_v25, 3  ;;  %v2257_v53 = vpop.permute.xlu0 %2256 }
 0x460   :  { %2337 = vperm.xlu2 %2702, %v3749_v23   ;;  %v1782_v23 = vperm.slane %v1371_v25, 7  ;;  %v2400_v17 = vperm.slane %v2257_v53, %v3850_v58 }
 0x466   :  { %v2191_v39 = vld [vmem:[#allocation1] sm:$0xff] }
 0x467   :  { %2370 = vperm.xlu0 %2700, %v2191_v39   ;;  %2192 = vst [vmem:[#allocation1] ss:$9 sm:$0xff] %v1759_v30  ;;  %2364 = vperm.xlu1 %2701, %v3811_v59   ;;  %v3847_v59 = vadd.s32 4294967280, %v2930_v56  ;;  %v2263_v43 = vpop.permute.xlu0 %2262 }
 0x468   :  { %2193 = vst [vmem:[#allocation1 + $0x1] ss:$9 sm:$0xff] %v1760_v50  ;;  %2349 = vperm.xlu2 %2702, %v3768_v13   ;;  %v2254_v13 = vpop.permute.xlu1 %2253 }
 0x469   :  { %2194 = vst [vmem:[#allocation1 + $0x2] ss:$9 sm:$0xff] %v1761_v2  ;;  %v2396_v8 = vperm.slane %v2254_v13, %v3847_v59 }
 0x46a   :  { %2195 = vst [vmem:[#allocation1 + $0x3] ss:$9 sm:$0xff] %v1762_v37 }
 0x46b   :  { %2196 = vst [vmem:[#allocation1 + $0x4] ss:$9 sm:$0xff] %v1763_v22  ;;  %v1321_v57 = vpop.xlane.xlu2 %1320  ;;  %v2408_v22 = vperm.slane %v2263_v43, %v3863_v3 }
 0x46c   :  { %2197 = vst [vmem:[#allocation1 + $0x5] ss:$9 sm:$0xff] %v1764_v24  ;;  %v1373_v39 = vadd.f32 %v3408_v32, %v1321_v57 }
 0x46d   :  { %2198 = vst [vmem:[#allocation1 + $0x6] ss:$9 sm:$0xff] %v1765_v12  ;;  %v3872_v12 = vadd.s32 4294967248, %v2930_v56 }
 0x46e   :  { %2199 = vst [vmem:[#allocation1 + $0x7] ss:$9 sm:$0xff] %v1766_v63  ;;  %v1791_v63 = vperm.slane %v1373_v39, 0  ;;  %v1792_v34 = vperm.slane %v1373_v39, 1 }
 0x46f   :  { %v2272_v37 = vpop.permute.xlu0 %2271 }
 0x470   :  { %2358 = vperm.xlu2 %2702, %v3796_v19   ;;  %v2390_v19 = vperm.slane %v2248_v5, %v2930_v56  ;;  %v2266_v50 = vpop.permute.xlu1 %2265  ;;  %v1797_v5 = vperm.slane %v1373_v39, 6 }
 0x471   :  { %v2412_v4 = vperm.slane %v2266_v50, %v3872_v12 }
 0x473   :  { %v2251_v0 = vpop.permute.xlu2 %2250 }
 0x474   :  { %v2392_v18 = vperm.slane %v2251_v0, %v3844_v38 }
 0x475   :  { %v2200_v16 = vld [vmem:[#allocation1] sm:$0xff] }
 0x476   :  { %2201 = vst [vmem:[#allocation1] ss:$9 sm:$0xff] %v1767_v55  ;;  %2373 = vperm.xlu1 %2701, %v2200_v16   ;;  %v2394_v52 = vsel %vm2393_vm0, %v2392_v18, %v2390_v19  ;;  %v3877_v55 = vadd.s32 4294967232, %v2930_v56  ;;  %v3908_v18 = vadd.s32 4294967192, %v2930_v56 }
 0x477   :  { %2202 = vst [vmem:[#allocation1 + $0x1] ss:$9 sm:$0xff] %v1768_v61  ;;  %v2398_v35 = vsel %vm2397_vm10, %v2396_v8, %v2394_v52  ;;  %v3880_v61 = vadd.s32 4294967240, %v2930_v56  ;;  %v3911_v8 = vadd.s32 4294967184, %v2930_v56 }
 0x478   :  { %2203 = vst [vmem:[#allocation1 + $0x2] ss:$9 sm:$0xff] %v1769_v1  ;;  %2367 = vperm.xlu2 %2702, %v3820_v6   ;;  %v2402_v30 = vsel %vm2401_vm6, %v2400_v17, %v2398_v35  ;;  %v1794_v1 = vperm.slane %v1373_v39, 3  ;;  %v2420_v40 = vperm.slane %v2272_v37, %v3877_v55 }
 0x479   :  { %2204 = vst [vmem:[#allocation1 + $0x3] ss:$9 sm:$0xff] %v1770_v10  ;;  %v1795_v10 = vperm.slane %v1373_v39, 4 }
 0x47a   :  { %2205 = vst [vmem:[#allocation1 + $0x4] ss:$9 sm:$0xff] %v1771_v31  ;;  %v1324_v31 = vpop.xlane.xlu1 %1323 }
 0x47b   :  { %2206 = vst [vmem:[#allocation1 + $0x5] ss:$9 sm:$0xff] %v1772_v28  ;;  %v2260_v2 = vpop.permute.xlu2 %2259  ;;  %v1374_v53 = vadd.f32 %v3408_v32, %v1324_v31  ;;  %v3904_v32 = vadd.s32 4294967200, %v2930_v56 }
 0x47c   :  { %2207 = vst [vmem:[#allocation1 + $0x6] ss:$9 sm:$0xff] %v1773_v54  ;;  %v2404_v6 = vperm.slane %v2260_v2, %v3860_v62  ;;  %v1796_v54 = vperm.slane %v1373_v39, 5 }
 0x47d   :  { %2208 = vst [vmem:[#allocation1 + $0x7] ss:$9 sm:$0xff] %v1774_v14  ;;  %v1799_v13 = vperm.slane %v1374_v53, 0 }
 0x47e   :  { %v2406_v24 = vsel %vm2405_vm7, %v2404_v6, %v2402_v30  ;;  %v1806_v30 = vperm.slane %v1374_v53, 7  ;;  %v3919_v6 = vadd.s32 4294967176, %v2930_v56 }
 0x47f   :  { %v2410_v42 = vsel %vm2409_vm8, %v2408_v22, %v2406_v24 }
 0x480   :  { %v2414_v25 = vsel %vm2413_vm9, %v2412_v4, %v2410_v42 }
 0x483   :  { %v2269_v28 = vpop.permute.xlu2 %2268 }
 0x484   :  { %v3838_v9 = vld [vmem:[#allocation1] sm:$0xff]  ;;  %v2416_v14 = vperm.slane %v2269_v28, %v3880_v61 }
 0x485   :  { %2210 = vst [vmem:[#allocation1] ss:$9 sm:$0xff] %v1775_v36  ;;  %2376 = vperm.xlu2 %2702, %v3838_v9   ;;  %v2281_v36 = vpop.permute.xlu0 %2280 }
 0x486   :  { %2211 = vst [vmem:[#allocation1 + $0x1] ss:$9 sm:$0xff] %v1776_v21  ;;  %v1798_v21 = vperm.slane %v1373_v39, 7  ;;  %v2418_v9 = vsel %vm2417_vm11, %v2416_v14, %v2414_v25 }
 0x487   :  { %2212 = vst [vmem:[#allocation1 + $0x2] ss:$9 sm:$0xff] %v1777_v45  ;;  %v2422_v45 = vsel %vm2421_vm12, %v2420_v40, %v2418_v9 }
 0x488   :  { %2213 = vst [vmem:[#allocation1 + $0x3] ss:$9 sm:$0xff] %v1778_v7  ;;  %v3889_v7 = vadd.s32 4294967224, %v2930_v56 }
 0x489   :  { %2214 = vst [vmem:[#allocation1 + $0x4] ss:$9 sm:$0xff] %v1779_v44  ;;  %v3892_v44 = vadd.s32 4294967216, %v2930_v56 }
 0x48a   :  { %2215 = vst [vmem:[#allocation1 + $0x5] ss:$9 sm:$0xff] %v1780_v33  ;;  %v3895_v33 = vadd.s32 4294967208, %v2930_v56 }
 0x48b   :  { %2216 = vst [vmem:[#allocation1 + $0x6] ss:$9 sm:$0xff] %v1781_v49  ;;  %v2278_v57 = vpop.permute.xlu2 %2277 }
 0x48c   :  { %2217 = vst [vmem:[#allocation1 + $0x7] ss:$9 sm:$0xff] %v1782_v23  ;;  %v2428_v60 = vperm.slane %v2278_v57, %v3892_v44 }
 0x491   :  { %v2275_v49 = vpop.permute.xlu1 %2274 }
 0x492   :  { %v2424_v23 = vperm.slane %v2275_v49, %v3889_v7 }
 0x493   :  { %v2218_v41 = vld [vmem:[#allocation1] sm:$0xff]  ;;  %v2287_v35 = vpop.permute.xlu2 %2286 }
 0x494   :  { %2219 = vst [vmem:[#allocation1] ss:$9 sm:$0xff] %v1783_v46  ;;  %2379 = vperm.xlu1 %2701, %v2218_v41   ;;  %v2432_v46 = vperm.slane %v2281_v36, %v3895_v33  ;;  %v1801_v41 = vperm.slane %v1374_v53, 2  ;;  %v2440_v50 = vperm.slane %v2287_v35, %v3908_v18 }
 0x495   :  { %2220 = vst [vmem:[#allocation1 + $0x1] ss:$9 sm:$0xff] %v1784_v11  ;;  %v2426_v11 = vsel %vm2425_vm13, %v2424_v23, %v2422_v45 }
 0x496   :  { %2221 = vst [vmem:[#allocation1 + $0x2] ss:$9 sm:$0xff] %v1785_v48  ;;  %v1800_v48 = vperm.slane %v1374_v53, 1  ;;  %v2430_v43 = vsel %vm2429_vm14, %v2428_v60, %v2426_v11 }
 0x497   :  { %2222 = vst [vmem:[#allocation1 + $0x3] ss:$9 sm:$0xff] %v1786_v27  ;;  %v2290_v27 = vpop.permute.xlu0 %2289  ;;  %v2434_v0 = vsel %vm2433_vm15, %v2432_v46, %v2430_v43 }
 0x498   :  { %2223 = vst [vmem:[#allocation1 + $0x4] ss:$9 sm:$0xff] %v1787_v47  ;;  %v1802_v47 = vperm.slane %v1374_v53, 3 }
 0x499   :  { %2224 = vst [vmem:[#allocation1 + $0x5] ss:$9 sm:$0xff] %v1788_v26  ;;  %v1803_v26 = vperm.slane %v1374_v53, 4  ;;  %v2284_v52 = vpop.permute.xlu1 %2283 }
 0x49a   :  { %2225 = vst [vmem:[#allocation1 + $0x6] ss:$9 sm:$0xff] %v1789_v29  ;;  %v1804_v29 = vperm.slane %v1374_v53, 5  ;;  %v2436_v17 = vperm.slane %v2284_v52, %v3904_v32 }
 0x49b   :  { %2226 = vst [vmem:[#allocation1 + $0x7] ss:$9 sm:$0xff] %v1790_v15  ;;  %v1805_v15 = vperm.slane %v1374_v53, 6 }
 0x49c   :  { %2340 = vperm.xlu1 %2701, %v3752_v20   ;;  %v1793_v20 = vperm.slane %v1373_v39, 2  ;;  %v2444_v39 = vperm.slane %v2290_v27, %v3911_v8  ;;  %v2438_v2 = vsel %vm2437_vm1, %v2436_v17, %v2434_v0 }
 0x49d   :  { %v2442_v37 = vsel %vm2441_vm2, %v2440_v50, %v2438_v2 }
 0x49e   :  { %v2446_v22 = vsel %vm2445_vm3, %v2444_v39, %v2442_v37 }
 0x49f   :  { %v2299_v24 = vpop.permute.xlu0 %2298 }
 0x4a2   :  { %v2227_v16 = vld [vmem:[#allocation1] sm:$0xff] }
 0x4a3   :  { %2382 = vperm.xlu0 %2700, %v2227_v16   ;;  %2228 = vst [vmem:[#allocation1] ss:$9 sm:$0xff] %v1791_v63  ;;  %v2293_v63 = vpop.permute.xlu1 %2292 }
 0x4a4   :  { %2229 = vst [vmem:[#allocation1 + $0x1] ss:$9 sm:$0xff] %v1792_v34  ;;  %v2448_v42 = vperm.slane %v2293_v63, %v3919_v6  ;;  %v2296_v34 = vpop.permute.xlu2 %2295 }
 0x4a5   :  { %2230 = vst [vmem:[#allocation1 + $0x2] ss:$9 sm:$0xff] %v1793_v20  ;;  %v2452_v20 = vperm.slane %v2299_v24, %v3844_v38  ;;  %v2451_v16 = vperm.slane %v2296_v34, %v2930_v56 }
 0x4a6   :  { %2231 = vst [vmem:[#allocation1 + $0x3] ss:$9 sm:$0xff] %v1794_v1  ;;  %v3926_v1 = vsel %vm2449_vm4, %v2448_v42, %v2446_v22 }
 0x4a7   :  { %2232 = vst [vmem:[#allocation1 + $0x4] ss:$9 sm:$0xff] %v1795_v10  ;;  %v2453_v4 = vsel %vm2393_vm0, %v2452_v20, %v2451_v16  ;;  %v2308_v14 = vpop.permute.xlu0 %2307 }
 0x4a8   :  { %2233 = vst [vmem:[#allocation1 + $0x5] ss:$9 sm:$0xff] %v1796_v54  ;;  %v2458_v0 = vperm.slane %v2308_v14, %v3860_v62 }
 0x4a9   :  { %2234 = vst [vmem:[#allocation1 + $0x6] ss:$9 sm:$0xff] %v1797_v5 }
 0x4aa   :  { %2235 = vst [vmem:[#allocation1 + $0x7] ss:$9 sm:$0xff] %v1798_v21 }
 0x4ab   :  { %v2302_v31 = vpop.permute.xlu1 %2301 }
 0x4ac   :  { %v2305_v28 = vpop.permute.xlu2 %2304  ;;  %v2454_v60 = vperm.slane %v2302_v31, %v3847_v59 }
 0x4ae   :  { %v2455_v11 = vsel %vm2397_vm10, %v2454_v60, %v2453_v4 }
 0x4af   :  { %v2317_v25 = vpop.permute.xlu0 %2316 }
 0x4b0   :  { %v2464_v35 = vperm.slane %v2317_v25, %v3880_v61 }
 0x4b1   :  { %v2236_v19 = vld [vmem:[#allocation1] sm:$0xff] }
 0x4b2   :  { %2237 = vst [vmem:[#allocation1] ss:$9 sm:$0xff] %v1799_v13  ;;  %2385 = vperm.xlu2 %2702, %v2236_v19   ;;  %v2456_v13 = vperm.slane %v2305_v28, %v3850_v58 }
 0x4b3   :  { %2238 = vst [vmem:[#allocation1 + $0x1] ss:$9 sm:$0xff] %v1800_v48  ;;  %v2311_v54 = vpop.permute.xlu1 %2310 }
 0x4b4   :  { %2239 = vst [vmem:[#allocation1 + $0x2] ss:$9 sm:$0xff] %v1801_v41  ;;  %v2314_v40 = vpop.permute.xlu2 %2313  ;;  %v2457_v27 = vsel %vm2401_vm6, %v2456_v13, %v2455_v11  ;;  %v2460_v41 = vperm.slane %v2311_v54, %v3863_v3 }
 0x4b5   :  { %2240 = vst [vmem:[#allocation1 + $0x3] ss:$9 sm:$0xff] %v1802_v47  ;;  %v2459_v47 = vsel %vm2405_vm7, %v2458_v0, %v2457_v27  ;;  %v2462_v19 = vperm.slane %v2314_v40, %v3872_v12 }
 0x4b6   :  { %2241 = vst [vmem:[#allocation1 + $0x4] ss:$9 sm:$0xff] %v1803_v26  ;;  %v2461_v26 = vsel %vm2409_vm8, %v2460_v41, %v2459_v47 }
 0x4b7   :  { %2242 = vst [vmem:[#allocation1 + $0x5] ss:$9 sm:$0xff] %v1804_v29  ;;  %v2326_v9 = vpop.permute.xlu0 %2325  ;;  %v2463_v52 = vsel %vm2413_vm9, %v2462_v19, %v2461_v26 }
 0x4b8   :  { %2243 = vst [vmem:[#allocation1 + $0x6] ss:$9 sm:$0xff] %v1805_v15  ;;  %v2465_v50 = vsel %vm2417_vm11, %v2464_v35, %v2463_v52  ;;  %v2470_v42 = vperm.slane %v2326_v9, %v3892_v44 }
 0x4b9   :  { %2244 = vst [vmem:[#allocation1 + $0x7] ss:$9 sm:$0xff] %v1806_v30 }
 0x4bb   :  { %v2320_v5 = vpop.permute.xlu1 %2319 }
 0x4bc   :  { %v2323_v36 = vpop.permute.xlu2 %2322  ;;  %v2466_v15 = vperm.slane %v2320_v5, %v3877_v55 }
 0x4bd   :  { %v2468_v39 = vperm.slane %v2323_v36, %v3889_v7 }
 0x4be   :  { %v2467_v2 = vsel %vm2421_vm12, %v2466_v15, %v2465_v50 }
 0x4bf   :  { %v2335_v49 = vpop.permute.xlu0 %2334  ;;  %v2469_v22 = vsel %vm2425_vm13, %v2468_v39, %v2467_v2 }
 0x4c0   :  { %v2245_v10 = vld [vmem:[#allocation1] sm:$0xff]  ;;  %v2471_v4 = vsel %vm2429_vm14, %v2470_v42, %v2469_v22  ;;  %v2476_v25 = vperm.slane %v2335_v49, %v3908_v18 }
 0x4c1   :  { %2388 = vperm.xlu0 %2700, %v2245_v10  }
 0x4c3   :  { %v2329_v21 = vpop.permute.xlu1 %2328 }
 0x4c4   :  { %v2332_v45 = vpop.permute.xlu2 %2331  ;;  %v2472_v24 = vperm.slane %v2329_v21, %v3895_v33 }
 0x4c5   :  { %v2474_v10 = vperm.slane %v2332_v45, %v3904_v32 }
 0x4c7   :  { %v2344_v46 = vpop.permute.xlu0 %2343 }
 0x4c8   :  { %v2482_v34 = vperm.slane %v2344_v46, %v2930_v56 }
 0x4cb   :  { %v2347_v53 = vpop.permute.xlu1 %2346 }
 0x4cc   :  { %v2338_v23 = vpop.permute.xlu2 %2337  ;;  %v2483_v37 = vperm.slane %v2347_v53, %v3844_v38  ;;  %v2473_v38 = vsel %vm2433_vm15, %v2472_v24, %v2471_v4 }
 0x4cd   :  { %v2478_v40 = vperm.slane %v2338_v23, %v3911_v8 }
 0x4ce   :  { %v2484_v31 = vsel %vm2393_vm0, %v2483_v37, %v2482_v34  ;;  %vm2517_vm0 = vcmask 1041408  }
 0x4cf   :  { %v2353_v29 = vpop.permute.xlu0 %2352 }
 0x4d0   :  { %v2487_v54 = vperm.slane %v2353_v29, %v3850_v58 }
 0x4d3   :  { %v2356_v57 = vpop.permute.xlu1 %2355 }
 0x4d4   :  { %v2350_v48 = vpop.permute.xlu2 %2349  ;;  %v2489_v36 = vperm.slane %v2356_v57, %v3860_v62 }
 0x4d5   :  { %v2485_v63 = vperm.slane %v2350_v48, %v3847_v59  ;;  %v2475_v59 = vsel %vm2437_vm1, %v2474_v10, %v2473_v38 }
 0x4d6   :  { %v2477_v9 = vsel %vm2441_vm2, %v2476_v25, %v2475_v59 }
 0x4d7   :  { %v2362_v16 = vpop.permute.xlu0 %2361  ;;  %v2486_v28 = vsel %vm2397_vm10, %v2485_v63, %v2484_v31  ;;  %v2479_v53 = vsel %vm2445_vm3, %v2478_v40, %v2477_v9  ;;  %vm2522_vm10 = vcmp.lt.s32.totalorder %v119_v51, 384 }
 0x4d8   :  { %v2488_v56 = vsel %vm2401_vm6, %v2487_v54, %v2486_v28  ;;  %v2493_v23 = vperm.slane %v2362_v16, %v3872_v12 }
 0x4d9   :  { %v2490_v45 = vsel %vm2405_vm7, %v2489_v36, %v2488_v56 }
 0x4db   :  { %v2365_v43 = vpop.permute.xlu1 %2364 }
 0x4dc   :  { %v2359_v30 = vpop.permute.xlu2 %2358  ;;  %v2495_v13 = vperm.slane %v2365_v43, %v3880_v61 }
 0x4dd   :  { %v2491_v5 = vperm.slane %v2359_v30, %v3863_v3 }
 0x4df   :  { %v2492_v60 = vsel %vm2409_vm8, %v2491_v5, %v2490_v45  ;;  %v2371_v46 = vpop.permute.xlu0 %2370 }
 0x4e0   :  { %v2494_v62 = vsel %vm2413_vm9, %v2493_v23, %v2492_v60  ;;  %v2499_v12 = vperm.slane %v2371_v46, %v3889_v7 }
 0x4e1   :  { %v2496_v27 = vsel %vm2417_vm11, %v2495_v13, %v2494_v62 }
 0x4e4   :  { %v2368_v14 = vpop.permute.xlu2 %2367 }
 0x4e5   :  { %v2497_v57 = vperm.slane %v2368_v14, %v3877_v55 }
 0x4e7   :  { %v2498_v41 = vsel %vm2421_vm12, %v2497_v57, %v2496_v27 }
 0x4e8   :  { %v2374_v17 = vpop.permute.xlu1 %2373  ;;  %v2500_v0 = vsel %vm2425_vm13, %v2499_v12, %v2498_v41 }
 0x4e9   :  { %v2501_v26 = vperm.slane %v2374_v17, %v3892_v44 }
 0x4eb   :  { %v2502_v55 = vsel %vm2429_vm14, %v2501_v26, %v2500_v0 }
 0x4ec   :  { %v2377_v11 = vpop.permute.xlu2 %2376 }
 0x4ed   :  { %v2503_v47 = vperm.slane %v2377_v11, %v3895_v33 }
 0x4ef   :  { %v2504_v43 = vsel %vm2433_vm15, %v2503_v47, %v2502_v55 }
 0x506   :  { %v2380_v20 = vpop.permute.xlu1 %2379 }
 0x507   :  { %v2505_v61 = vperm.slane %v2380_v20, %v3904_v32 }
 0x509   :  { %v2506_v29 = vsel %vm2437_vm1, %v2505_v61, %v2504_v43 }
 0x50e   :  { %v2341_v21 = vpop.permute.xlu1 %2340 }
 0x50f   :  { %v2480_v58 = vperm.slane %v2341_v21, %v3919_v6 }
 0x511   :  { %v2481_v3 = vsel %vm2449_vm4, %v2480_v58, %v2479_v53 }
 0x512   :  { %v2513_v49 = vrot.slane %v2481_v3, 7 }
 0x514   :  { %v2516_v48 = vsel %vm2515_vm5, %v3926_v1, %v2513_v49  ;;  %v2386_v1 = vpop.permute.xlu2 %2385 }
 0x515   :  { %v2383_v19 = vpop.permute.xlu0 %2382  ;;  %v2509_v52 = vperm.slane %v2386_v1, %v3911_v8 }
 0x516   :  { %v2507_v7 = vperm.slane %v2383_v19, %v3908_v18 }
 0x518   :  { %v2508_v35 = vsel %vm2441_vm2, %v2507_v7, %v2506_v29 }
 0x519   :  { %v2510_v44 = vsel %vm2445_vm3, %v2509_v52, %v2508_v35 }
 0x533   :  { %v2389_v15 = vpop.permute.xlu0 %2388 }
 0x534   :  { %v2511_v33 = vperm.slane %v2389_v15, %v3919_v6 }
 0x536   :  { %v2512_v32 = vsel %vm2449_vm4, %v2511_v33, %v2510_v44 }
 0x537   :  { %v2514_v17 = vrot.slane %v2512_v32, 6 }
 0x539   :  { %v2518_v18 = vsel %vm2517_vm0, %v2516_v48, %v2514_v17 }
 0x53a   :  { %2524 = vst.msk [vmem:[#allocation4] sm:$0x7] %vm2522_vm10, %v2518_v18 }
 0x53b   :  { %2535 = dma.vmem_to_hbm [thread:$0]  %s2531_s5, 48, %s2533_s2, [#allocation5]  }
 0x53c   :  { %2730 = dma.done.wait [#allocation5], 48  }
 0x53d   :  { %2731 = vsyncadd [#allocation5], 4294967248 }
 0x53e   :  { %2540 = vsyncpa [#allocation5], 1 }

</bundles_post_ra>
